<compile_context>
chip_gen: v5e
topology: v5e:2x2
jax: 0.10.0
libtpu: 0.0.40
codegen_flags: <defaults>
</compile_context>

<pallas_src>
import functools

import jax
import jax.numpy as jnp
from jax import lax
from jax.experimental import pallas as pl
from jax.experimental.pallas import tpu as pltpu


def _round_up(x, m):
    return (x + m - 1) // m * m


# ---------------------------------------------------------------------------
# Pallas kernel: K-tiled matmul + bias (+ ReLU), f32 accumulator in VMEM
# ---------------------------------------------------------------------------
def _matmul_bias_kernel(x_ref, w_ref, b_ref, o_ref, acc_ref, *, relu):
    k = pl.program_id(1)

    @pl.when(k == 0)
    def _():
        acc_ref[...] = jnp.zeros_like(acc_ref)

    acc_ref[...] += jnp.dot(x_ref[...], w_ref[...],
                            preferred_element_type=jnp.float32)

    @pl.when(k == pl.num_programs(1) - 1)
    def _():
        acc = acc_ref[...] + b_ref[...]
        if relu:
            acc = jnp.maximum(acc, 0.0)
        o_ref[...] = acc.astype(o_ref.dtype)


def matmul_bias(x, w, b, relu=False, tm=512, tk=512):
    """y = x @ w + b (optionally ReLU).  x:(M,K)  w:(K,N)  b:(N,).

    bf16 operands feed the MXU; accumulation / bias / ReLU in f32.
    M, K are padded to tile multiples, N to a multiple of 128 (lane-dense
    stores); padding is sliced off on return.
    """
    M, K = x.shape
    K2, N = w.shape
    assert K == K2
    tm = min(tm, _round_up(M, 8))
    tk = min(tk, _round_up(K, 128))
    Mp, Kp, Np = _round_up(M, tm), _round_up(K, tk), _round_up(N, 128)

    xp = jnp.pad(x, ((0, Mp - M), (0, Kp - K))).astype(jnp.bfloat16)
    wp = jnp.pad(w, ((0, Kp - K), (0, Np - N))).astype(jnp.bfloat16)
    bp = jnp.pad(b.reshape(1, N).astype(jnp.float32), ((0, 0), (0, Np - N)))

    out = pl.pallas_call(
        functools.partial(_matmul_bias_kernel, relu=relu),
        out_shape=jax.ShapeDtypeStruct((Mp, Np), jnp.float32),
        grid=(Mp // tm, Kp // tk),                       # reduction axis last
        in_specs=[
            pl.BlockSpec((tm, tk), lambda i, k: (i, k)),
            pl.BlockSpec((tk, Np), lambda i, k: (k, 0)),
            pl.BlockSpec((1, Np), lambda i, k: (0, 0)),
        ],
        out_specs=pl.BlockSpec((tm, Np), lambda i, k: (i, 0)),
        scratch_shapes=[pltpu.VMEM((tm, Np), jnp.float32)],
        compiler_params=pltpu.CompilerParams(
            dimension_semantics=("parallel", "arbitrary"),
            vmem_limit_bytes=48 * 1024 * 1024),          # fits v7x's 64 MiB VMEM
    )(xp, wp, bp)
    return out[:M, :N]


# ---------------------------------------------------------------------------
# Pallas kernel: fused 3x3 conv (stride 1, pad 1) + bias + ReLU, NHWC
# ---------------------------------------------------------------------------
def _conv3x3_kernel(x_ref, w_ref, b_ref, o_ref):
    # x_ref: (1, H+2, W+2, Cin) bf16 padded frame
    # w_ref: (9, Cin, Cout) f32, b_ref: (1, Cout) f32
    # o_ref: (1, H*W, Cout) bf16
    Hp, Wp, Cin = x_ref.shape[1], x_ref.shape[2], x_ref.shape[3]
    H, W = Hp - 2, Wp - 2
    Cout = o_ref.shape[2]

    x = x_ref[0].astype(jnp.float32)          # single upcast; slices stay f32
    acc = jnp.zeros((H * W, Cout), jnp.float32)
    for kh in range(3):
        for kw in range(3):
            patch = x[kh:kh + H, kw:kw + W, :].reshape(H * W, Cin)
            acc = acc + jnp.dot(patch, w_ref[kh * 3 + kw],
                                preferred_element_type=jnp.float32)
    acc = jnp.maximum(acc + b_ref[...], 0.0)
    # NOTE: Cout (16/32) < 128 lanes -> masked stores; output bytes are small
    # relative to the input DMA this kernel eliminates (no 9x im2col traffic).
    o_ref[0] = acc.astype(o_ref.dtype)


def conv3x3_relu(x_nhwc, wk9, b):
    """3x3 conv, stride 1, pad 1, ReLU.  x:(N,H,W,Cin), wk9:(9,Cin,Cout)."""
    N, H, W, Cin = x_nhwc.shape
    Cout = wk9.shape[-1]
    xp = jnp.pad(x_nhwc, ((0, 0), (1, 1), (1, 1), (0, 0))).astype(jnp.bfloat16)
    out = pl.pallas_call(
        _conv3x3_kernel,
        out_shape=jax.ShapeDtypeStruct((N, H * W, Cout), jnp.bfloat16),
        grid=(N,),
        in_specs=[
            pl.BlockSpec((1, H + 2, W + 2, Cin), lambda n: (n, 0, 0, 0)),
            pl.BlockSpec((9, Cin, Cout), lambda n: (0, 0, 0)),
            pl.BlockSpec((1, Cout), lambda n: (0, 0)),
        ],
        out_specs=pl.BlockSpec((1, H * W, Cout), lambda n: (n, 0, 0)),
        compiler_params=pltpu.CompilerParams(
            dimension_semantics=("parallel",)),   # v7x: shard frames over 2 TCs
    )(xp, wk9, b.reshape(1, Cout).astype(jnp.float32))
    return out.reshape(N, H, W, Cout)


# ---------------------------------------------------------------------------
# Pallas kernel: full LSTM recurrence in ONE grid point
# ---------------------------------------------------------------------------
def _lstm_kernel(xg_ref, whh_ref, h_out_ref):
    # xg_ref: (T, B, 4H) f32 = x_t @ W_ih^T + b_ih + b_hh, whh_ref: (H, 4H) f32
    T, B, _ = xg_ref.shape
    H = whh_ref.shape[0]
    w = whh_ref[...]                                   # hoisted, stays in vregs/VMEM

    def step(t, carry):
        h, c = carry
        gates = xg_ref[t] + jnp.dot(h, w, preferred_element_type=jnp.float32)
        # PyTorch gate order i, f, g, o; H=128 -> slices are 128-lane aligned.
        i = jax.nn.sigmoid(gates[:, 0 * H:1 * H])
        f = jax.nn.sigmoid(gates[:, 1 * H:2 * H])
        g = jnp.tanh(gates[:, 2 * H:3 * H])
        o = jax.nn.sigmoid(gates[:, 3 * H:4 * H])
        c = f * c + i * g
        h = o * jnp.tanh(c)
        h_out_ref[t] = h.astype(h_out_ref.dtype)
        return (h, c)

    lax.fori_loop(0, T, step,
                  (jnp.zeros((B, H), jnp.float32),
                   jnp.zeros((B, H), jnp.float32)),
                  unroll=True)


def lstm_forward(gates_tbg, w_hh_t):
    T, B, G = gates_tbg.shape
    H = w_hh_t.shape[0]
    return pl.pallas_call(
        _lstm_kernel,
        out_shape=jax.ShapeDtypeStruct((T, B, H), jnp.float32),
        grid=(1,),
        in_specs=[
            pl.BlockSpec((T, B, G), lambda i: (0, 0, 0)),
            pl.BlockSpec((H, G), lambda i: (0, 0)),
        ],
        out_specs=pl.BlockSpec((T, B, H), lambda i: (0, 0, 0)),
        compiler_params=pltpu.CompilerParams(dimension_semantics=("arbitrary",)),
    )(gates_tbg, w_hh_t)


# ---------------------------------------------------------------------------
# Pallas kernel: attention (all batches in one call)
# ---------------------------------------------------------------------------
def _attention_kernel(h_ref, w_ref, b_ref, ctx_ref):
    h = h_ref[...]                                               # (B, T, H)
    w = w_ref[...]                                               # (1, H)
    s = jnp.sum(h * w[jnp.newaxis], axis=-1, keepdims=True) + b_ref[0, 0]  # (B,T,1)
    m = jnp.max(s, axis=1, keepdims=True)
    e = jnp.exp(s - m)
    denom = jnp.sum(e, axis=1, keepdims=True)
    wts = e * pl.reciprocal(denom, approx=True)                  # softmax over seq
    ctx_ref[...] = jnp.sum(wts * h, axis=1).astype(ctx_ref.dtype)  # (B, H)


def attention_forward(lstm_out_bth, w_attn_row, b_attn):
    B, T, H = lstm_out_bth.shape
    return pl.pallas_call(
        _attention_kernel,
        out_shape=jax.ShapeDtypeStruct((B, H), jnp.float32),
        grid=(1,),
        in_specs=[
            pl.BlockSpec((B, T, H), lambda i: (0, 0, 0)),
            pl.BlockSpec((1, H), lambda i: (0, 0)),
            pl.BlockSpec((1, 1), lambda i: (0, 0)),
        ],
        out_specs=pl.BlockSpec((B, H), lambda i: (0, 0)),
        compiler_params=pltpu.CompilerParams(dimension_semantics=("arbitrary",)),
    )(lstm_out_bth, w_attn_row, b_attn.reshape(1, 1))


# ---------------------------------------------------------------------------
# Plain-JAX glue (data movement only)
# ---------------------------------------------------------------------------
def maxpool2(x):
    """2x2 max pool, stride 2, NHWC."""
    N, H, W, C = x.shape
    return jnp.max(x.reshape(N, H // 2, 2, W // 2, 2, C), axis=(2, 4))


# ---------------------------------------------------------------------------
# Parameters (deterministic synthetic init, PyTorch-shaped) + prep
# ---------------------------------------------------------------------------
def init_params(key, cnn_output_dim=128, lstm_hidden_dim=128, h=16, w=16):
    ks = jax.random.split(key, 12)
    s = 0.05
    flat_dim = 32 * (h // 4) * (w // 4)
    p = {
        "conv1_w": jax.random.normal(ks[0], (16, 3, 3, 3)) * s,     # (Cout,Cin,KH,KW)
        "conv1_b": jax.random.normal(ks[1], (16,)) * s,
        "conv2_w": jax.random.normal(ks[2], (32, 16, 3, 3)) * s,
        "conv2_b": jax.random.normal(ks[3], (32,)) * s,
        "fc_w": jax.random.normal(ks[4], (cnn_output_dim, flat_dim)) * s,  # (out,in)
        "fc_b": jax.random.normal(ks[5], (cnn_output_dim,)) * s,
        "w_ih": jax.random.normal(ks[6], (4 * lstm_hidden_dim, cnn_output_dim)) * s,
        "w_hh": jax.random.normal(ks[7], (4 * lstm_hidden_dim, lstm_hidden_dim)) * s,
        "b_ih": jax.random.normal(ks[8], (4 * lstm_hidden_dim,)) * s,
        "b_hh": jax.random.normal(ks[9], (4 * lstm_hidden_dim,)) * s,
        "attn_w": jax.random.normal(ks[10], (1, lstm_hidden_dim)) * s,  # Linear(H,1).weight
        "attn_b": jax.random.normal(ks[11], (1,)) * s,
    }
    return jax.tree_util.tree_map(lambda a: a.astype(jnp.float32), p)


def prepare_params(p):
    """Hoist all weight transposes / reorders out of the per-call path."""
    c1 = p["conv1_w"].transpose(2, 3, 1, 0)                  # (KH,KW,Cin,Cout)
    c2 = p["conv2_w"].transpose(2, 3, 1, 0)
    return {
        "conv1_w": c1.reshape(9, c1.shape[2], c1.shape[3]),   # (9, Cin, Cout)
        "conv1_b": p["conv1_b"],
        "conv2_w": c2.reshape(9, c2.shape[2], c2.shape[3]),
        "conv2_b": p["conv2_b"],
        "fc_w_t": p["fc_w"].T,                                # (flat_dim, cnn_dim)
        "fc_b": p["fc_b"],
        "w_ih_t": p["w_ih"].T,                                # (cnn_dim, 4H)
        "b_lstm": p["b_ih"] + p["b_hh"],
        "w_hh_t": p["w_hh"].T,                                # (H, 4H)
        "attn_w": p["attn_w"],
        "attn_b": p["attn_b"],
    }


# ---------------------------------------------------------------------------
# Forward pass (mirrors CNNLSTMAttention.forward)
# ---------------------------------------------------------------------------
def cnn_lstm_attention_forward(prepped, x):
    # x: (B, T, 3, H, W)  -- PyTorch NCHW per frame
    B, T, C, H, W = x.shape
    N = B * T
    xf = x.reshape(N, C, H, W).transpose(0, 2, 3, 1)          # NCHW -> NHWC

    # Conv1(3->16) + ReLU + MaxPool2
    y = conv3x3_relu(xf, prepped["conv1_w"], prepped["conv1_b"])   # (N,H,W,16) bf16
    y = maxpool2(y)
    # Conv2(16->32) + ReLU + MaxPool2
    y = conv3x3_relu(y, prepped["conv2_w"], prepped["conv2_b"])    # (N,H/2,W/2,32)
    y = maxpool2(y)                                                # (N,H/4,W/4,32)

    # TODO(synk): training-mode Dropout(0.5) omitted (eval-mode identity).

    # Flatten in PyTorch NCHW order, then Linear + ReLU
    feat = y.transpose(0, 3, 1, 2).reshape(N, -1)             # (N, 32*(H/4)*(W/4))
    cnn_feat = matmul_bias(feat, prepped["fc_w_t"], prepped["fc_b"], relu=True)

    Hhid = prepped["w_hh_t"].shape[0]

    # LSTM (batch_first): precompute x_t @ W_ih^T + b_ih + b_hh for all steps
    gates = matmul_bias(cnn_feat, prepped["w_ih_t"], prepped["b_lstm"],
                        relu=False)                            # (B*T, 4H)
    gates = gates.reshape(B, T, 4 * Hhid).transpose(1, 0, 2)   # (T, B, 4H)
    h_seq = lstm_forward(gates, prepped["w_hh_t"])             # (T, B, H)
    lstm_out = h_seq.transpose(1, 0, 2)                        # (B, T, H)

    # Attention: linear -> softmax over seq -> weighted sum -> context (B, H)
    context = attention_forward(lstm_out, prepped["attn_w"], prepped["attn_b"])
    return context


if __name__ == "__main__":
    key = jax.random.PRNGKey(0)
    pkey, xkey = jax.random.split(key)

    B, T, C, H, W = 2, 4, 3, 16, 16
    CNN_DIM, HIDDEN = 128, 128          # lane-dense (multiples of 128)

    params = init_params(pkey, cnn_output_dim=CNN_DIM, lstm_hidden_dim=HIDDEN,
                         h=H, w=W)
    prepped = prepare_params(params)
    x = jax.random.normal(xkey, (B, T, C, H, W), dtype=jnp.float32)

    fwd = jax.jit(cnn_lstm_attention_forward)
    out = fwd(prepped, x)
    out = jax.block_until_ready(out)
    assert out.shape == (B, HIDDEN) and out.dtype == jnp.float32
    print("KERNEL_OK")
</pallas_src>

<mosaic_0001>
module attributes {stable_mosaic.version = 11 : i64} {
  func.func @_conv3x3_kernel(%arg0: i32, %arg1: memref<1x18x18x3xbf16, #tpu.memory_space<vmem>>, %arg2: memref<9x3x16xf32, #tpu.memory_space<vmem>>, %arg3: memref<1x16xf32, #tpu.memory_space<vmem>>, %arg4: memref<1x256x16xbf16, #tpu.memory_space<vmem>>) attributes {dimension_semantics = [#tpu.dimension_semantics<parallel>], iteration_bounds = array<i64: 8>, scalar_prefetch = 0 : i64, scratch_operands = 0 : i64, tpu.core_type = #tpu.core_type<tc>, window_params = [{transform_indices = @transform_0, window_bounds = array<i64: 1, 18, 18, 3>}, {pipeline_mode = #tpu.pipeline_mode<synchronous>, transform_indices = @transform_1, window_bounds = array<i64: 9, 3, 16>}, {pipeline_mode = #tpu.pipeline_mode<synchronous>, transform_indices = @transform_2, window_bounds = array<i64: 1, 16>}, {transform_indices = @transform_3, window_bounds = array<i64: 1, 256, 16>}]} {
    %c0 = arith.constant 0 : index
    %c0_0 = arith.constant 0 : index
    %c0_1 = arith.constant 0 : index
    %c0_2 = arith.constant 0 : index
    %0 = vector.load %arg1[%c0, %c0_0, %c0_1, %c0_2] : memref<1x18x18x3xbf16, #tpu.memory_space<vmem>>, vector<1x18x18x3xbf16>
    %1 = vector.shape_cast %0 : vector<1x18x18x3xbf16> to vector<18x18x3xbf16>
    %2 = arith.extf %1 : vector<18x18x3xbf16> to vector<18x18x3xf32>
    %cst = arith.constant 0.000000e+00 : f32
    %3 = vector.broadcast %cst : f32 to vector<256x16xf32>
    %4 = vector.extract_strided_slice %2 {offsets = [0, 0, 0], sizes = [16, 16, 3], strides = [1, 1, 1]} : vector<18x18x3xf32> to vector<16x16x3xf32>
    %5 = vector.shape_cast %4 : vector<16x16x3xf32> to vector<256x3xf32>
    %c0_3 = arith.constant 0 : index
    %c0_4 = arith.constant 0 : index
    %c0_5 = arith.constant 0 : index
    %6 = vector.load %arg2[%c0_3, %c0_4, %c0_5] : memref<9x3x16xf32, #tpu.memory_space<vmem>>, vector<1x3x16xf32>
    %7 = vector.shape_cast %6 : vector<1x3x16xf32> to vector<3x16xf32>
    %cst_6 = arith.constant dense<0.000000e+00> : vector<256x16xf32>
    %8 = tpu.matmul %5, %7, %cst_6 {dimension_numbers = #tpu.dot_dimension_numbers<[1], [0], [0], [1], [0, 0, 1, 1], [], []>} : vector<256x3xf32>, vector<3x16xf32>, vector<256x16xf32> -> vector<256x16xf32>
    %9 = arith.addf %3, %8 : vector<256x16xf32>
    %10 = vector.extract_strided_slice %2 {offsets = [0, 1, 0], sizes = [16, 16, 3], strides = [1, 1, 1]} : vector<18x18x3xf32> to vector<16x16x3xf32>
    %11 = vector.shape_cast %10 : vector<16x16x3xf32> to vector<256x3xf32>
    %c1 = arith.constant 1 : index
    %c0_7 = arith.constant 0 : index
    %c0_8 = arith.constant 0 : index
    %12 = vector.load %arg2[%c1, %c0_7, %c0_8] : memref<9x3x16xf32, #tpu.memory_space<vmem>>, vector<1x3x16xf32>
    %13 = vector.shape_cast %12 : vector<1x3x16xf32> to vector<3x16xf32>
    %cst_9 = arith.constant dense<0.000000e+00> : vector<256x16xf32>
    %14 = tpu.matmul %11, %13, %cst_9 {dimension_numbers = #tpu.dot_dimension_numbers<[1], [0], [0], [1], [0, 0, 1, 1], [], []>} : vector<256x3xf32>, vector<3x16xf32>, vector<256x16xf32> -> vector<256x16xf32>
    %15 = arith.addf %9, %14 : vector<256x16xf32>
    %16 = vector.extract_strided_slice %2 {offsets = [0, 2, 0], sizes = [16, 16, 3], strides = [1, 1, 1]} : vector<18x18x3xf32> to vector<16x16x3xf32>
    %17 = vector.shape_cast %16 : vector<16x16x3xf32> to vector<256x3xf32>
    %c2 = arith.constant 2 : index
    %c0_10 = arith.constant 0 : index
    %c0_11 = arith.constant 0 : index
    %18 = vector.load %arg2[%c2, %c0_10, %c0_11] : memref<9x3x16xf32, #tpu.memory_space<vmem>>, vector<1x3x16xf32>
    %19 = vector.shape_cast %18 : vector<1x3x16xf32> to vector<3x16xf32>
    %cst_12 = arith.constant dense<0.000000e+00> : vector<256x16xf32>
    %20 = tpu.matmul %17, %19, %cst_12 {dimension_numbers = #tpu.dot_dimension_numbers<[1], [0], [0], [1], [0, 0, 1, 1], [], []>} : vector<256x3xf32>, vector<3x16xf32>, vector<256x16xf32> -> vector<256x16xf32>
    %21 = arith.addf %15, %20 : vector<256x16xf32>
    %22 = vector.extract_strided_slice %2 {offsets = [1, 0, 0], sizes = [16, 16, 3], strides = [1, 1, 1]} : vector<18x18x3xf32> to vector<16x16x3xf32>
    %23 = vector.shape_cast %22 : vector<16x16x3xf32> to vector<256x3xf32>
    %c3 = arith.constant 3 : index
    %c0_13 = arith.constant 0 : index
    %c0_14 = arith.constant 0 : index
    %24 = vector.load %arg2[%c3, %c0_13, %c0_14] : memref<9x3x16xf32, #tpu.memory_space<vmem>>, vector<1x3x16xf32>
    %25 = vector.shape_cast %24 : vector<1x3x16xf32> to vector<3x16xf32>
    %cst_15 = arith.constant dense<0.000000e+00> : vector<256x16xf32>
    %26 = tpu.matmul %23, %25, %cst_15 {dimension_numbers = #tpu.dot_dimension_numbers<[1], [0], [0], [1], [0, 0, 1, 1], [], []>} : vector<256x3xf32>, vector<3x16xf32>, vector<256x16xf32> -> vector<256x16xf32>
    %27 = arith.addf %21, %26 : vector<256x16xf32>
    %28 = vector.extract_strided_slice %2 {offsets = [1, 1, 0], sizes = [16, 16, 3], strides = [1, 1, 1]} : vector<18x18x3xf32> to vector<16x16x3xf32>
    %29 = vector.shape_cast %28 : vector<16x16x3xf32> to vector<256x3xf32>
    %c4 = arith.constant 4 : index
    %c0_16 = arith.constant 0 : index
    %c0_17 = arith.constant 0 : index
    %30 = vector.load %arg2[%c4, %c0_16, %c0_17] : memref<9x3x16xf32, #tpu.memory_space<vmem>>, vector<1x3x16xf32>
    %31 = vector.shape_cast %30 : vector<1x3x16xf32> to vector<3x16xf32>
    %cst_18 = arith.constant dense<0.000000e+00> : vector<256x16xf32>
    %32 = tpu.matmul %29, %31, %cst_18 {dimension_numbers = #tpu.dot_dimension_numbers<[1], [0], [0], [1], [0, 0, 1, 1], [], []>} : vector<256x3xf32>, vector<3x16xf32>, vector<256x16xf32> -> vector<256x16xf32>
    %33 = arith.addf %27, %32 : vector<256x16xf32>
    %34 = vector.extract_strided_slice %2 {offsets = [1, 2, 0], sizes = [16, 16, 3], strides = [1, 1, 1]} : vector<18x18x3xf32> to vector<16x16x3xf32>
    %35 = vector.shape_cast %34 : vector<16x16x3xf32> to vector<256x3xf32>
    %c5 = arith.constant 5 : index
    %c0_19 = arith.constant 0 : index
    %c0_20 = arith.constant 0 : index
    %36 = vector.load %arg2[%c5, %c0_19, %c0_20] : memref<9x3x16xf32, #tpu.memory_space<vmem>>, vector<1x3x16xf32>
    %37 = vector.shape_cast %36 : vector<1x3x16xf32> to vector<3x16xf32>
    %cst_21 = arith.constant dense<0.000000e+00> : vector<256x16xf32>
    %38 = tpu.matmul %35, %37, %cst_21 {dimension_numbers = #tpu.dot_dimension_numbers<[1], [0], [0], [1], [0, 0, 1, 1], [], []>} : vector<256x3xf32>, vector<3x16xf32>, vector<256x16xf32> -> vector<256x16xf32>
    %39 = arith.addf %33, %38 : vector<256x16xf32>
    %40 = vector.extract_strided_slice %2 {offsets = [2, 0, 0], sizes = [16, 16, 3], strides = [1, 1, 1]} : vector<18x18x3xf32> to vector<16x16x3xf32>
    %41 = vector.shape_cast %40 : vector<16x16x3xf32> to vector<256x3xf32>
    %c6 = arith.constant 6 : index
    %c0_22 = arith.constant 0 : index
    %c0_23 = arith.constant 0 : index
    %42 = vector.load %arg2[%c6, %c0_22, %c0_23] : memref<9x3x16xf32, #tpu.memory_space<vmem>>, vector<1x3x16xf32>
    %43 = vector.shape_cast %42 : vector<1x3x16xf32> to vector<3x16xf32>
    %cst_24 = arith.constant dense<0.000000e+00> : vector<256x16xf32>
    %44 = tpu.matmul %41, %43, %cst_24 {dimension_numbers = #tpu.dot_dimension_numbers<[1], [0], [0], [1], [0, 0, 1, 1], [], []>} : vector<256x3xf32>, vector<3x16xf32>, vector<256x16xf32> -> vector<256x16xf32>
    %45 = arith.addf %39, %44 : vector<256x16xf32>
    %46 = vector.extract_strided_slice %2 {offsets = [2, 1, 0], sizes = [16, 16, 3], strides = [1, 1, 1]} : vector<18x18x3xf32> to vector<16x16x3xf32>
    %47 = vector.shape_cast %46 : vector<16x16x3xf32> to vector<256x3xf32>
    %c7 = arith.constant 7 : index
    %c0_25 = arith.constant 0 : index
    %c0_26 = arith.constant 0 : index
    %48 = vector.load %arg2[%c7, %c0_25, %c0_26] : memref<9x3x16xf32, #tpu.memory_space<vmem>>, vector<1x3x16xf32>
    %49 = vector.shape_cast %48 : vector<1x3x16xf32> to vector<3x16xf32>
    %cst_27 = arith.constant dense<0.000000e+00> : vector<256x16xf32>
    %50 = tpu.matmul %47, %49, %cst_27 {dimension_numbers = #tpu.dot_dimension_numbers<[1], [0], [0], [1], [0, 0, 1, 1], [], []>} : vector<256x3xf32>, vector<3x16xf32>, vector<256x16xf32> -> vector<256x16xf32>
    %51 = arith.addf %45, %50 : vector<256x16xf32>
    %52 = vector.extract_strided_slice %2 {offsets = [2, 2, 0], sizes = [16, 16, 3], strides = [1, 1, 1]} : vector<18x18x3xf32> to vector<16x16x3xf32>
    %53 = vector.shape_cast %52 : vector<16x16x3xf32> to vector<256x3xf32>
    %c8 = arith.constant 8 : index
    %c0_28 = arith.constant 0 : index
    %c0_29 = arith.constant 0 : index
    %54 = vector.load %arg2[%c8, %c0_28, %c0_29] : memref<9x3x16xf32, #tpu.memory_space<vmem>>, vector<1x3x16xf32>
    %55 = vector.shape_cast %54 : vector<1x3x16xf32> to vector<3x16xf32>
    %cst_30 = arith.constant dense<0.000000e+00> : vector<256x16xf32>
    %56 = tpu.matmul %53, %55, %cst_30 {dimension_numbers = #tpu.dot_dimension_numbers<[1], [0], [0], [1], [0, 0, 1, 1], [], []>} : vector<256x3xf32>, vector<3x16xf32>, vector<256x16xf32> -> vector<256x16xf32>
    %57 = arith.addf %51, %56 : vector<256x16xf32>
    %c0_31 = arith.constant 0 : index
    %c0_32 = arith.constant 0 : index
    %58 = vector.load %arg3[%c0_31, %c0_32] : memref<1x16xf32, #tpu.memory_space<vmem>>, vector<1x16xf32>
    %59 = vector.broadcast %58 : vector<1x16xf32> to vector<256x16xf32>
    %60 = arith.addf %57, %59 : vector<256x16xf32>
    %cst_33 = arith.constant 0.000000e+00 : f32
    %61 = vector.broadcast %cst_33 : f32 to vector<256x16xf32>
    %62 = arith.maximumf %60, %61 : vector<256x16xf32>
    %63 = arith.truncf %62 : vector<256x16xf32> to vector<256x16xbf16>
    %c0_34 = arith.constant 0 : index
    %c0_35 = arith.constant 0 : index
    %c0_36 = arith.constant 0 : index
    %64 = vector.load %arg4[%c0_34, %c0_35, %c0_36] : memref<1x256x16xbf16, #tpu.memory_space<vmem>>, vector<1x256x16xbf16>
    %65 = vector.shape_cast %64 : vector<1x256x16xbf16> to vector<256x16xbf16>
    %66 = vector.shape_cast %63 : vector<256x16xbf16> to vector<1x256x16xbf16>
    tpu.vector_store %arg4[%c0_34, %c0_35, %c0_36], %66 {strides = array<i32>} : memref<1x256x16xbf16, #tpu.memory_space<vmem>>, vector<1x256x16xbf16>,
    return
  }
  func.func @transform_0(%arg0: i32) -> (i32, i32, i32, i32) {
    %c0_i32 = arith.constant 0 : i32
    %c0_i32_0 = arith.constant 0 : i32
    %c0_i32_1 = arith.constant 0 : i32
    %c0_i32_2 = arith.constant 0 : i32
    return %arg0, %c0_i32, %c0_i32_0, %c0_i32_1 : i32, i32, i32, i32
  }
  func.func @transform_1(%arg0: i32) -> (i32, i32, i32) {
    %c0_i32 = arith.constant 0 : i32
    %c0_i32_0 = arith.constant 0 : i32
    %c0_i32_1 = arith.constant 0 : i32
    %c0_i32_2 = arith.constant 0 : i32
    return %c0_i32, %c0_i32_0, %c0_i32_1 : i32, i32, i32
  }
  func.func @transform_2(%arg0: i32) -> (i32, i32) {
    %c0_i32 = arith.constant 0 : i32
    %c0_i32_0 = arith.constant 0 : i32
    %c0_i32_1 = arith.constant 0 : i32
    return %c0_i32, %c0_i32_0 : i32, i32
  }
  func.func @transform_3(%arg0: i32) -> (i32, i32, i32) {
    %c0_i32 = arith.constant 0 : i32
    %c0_i32_0 = arith.constant 0 : i32
    %c0_i32_1 = arith.constant 0 : i32
    return %arg0, %c0_i32, %c0_i32_0 : i32, i32, i32
  }
}

module attributes {stable_mosaic.version = 11 : i64} {
  func.func @_conv3x3_kernel(%arg0: i32, %arg1: memref<1x10x10x16xbf16, #tpu.memory_space<vmem>>, %arg2: memref<9x16x32xf32, #tpu.memory_space<vmem>>, %arg3: memref<1x32xf32, #tpu.memory_space<vmem>>, %arg4: memref<1x64x32xbf16, #tpu.memory_space<vmem>>) attributes {dimension_semantics = [#tpu.dimension_semantics<parallel>], iteration_bounds = array<i64: 8>, scalar_prefetch = 0 : i64, scratch_operands = 0 : i64, tpu.core_type = #tpu.core_type<tc>, window_params = [{transform_indices = @transform_0, window_bounds = array<i64: 1, 10, 10, 16>}, {pipeline_mode = #tpu.pipeline_mode<synchronous>, transform_indices = @transform_1, window_bounds = array<i64: 9, 16, 32>}, {pipeline_mode = #tpu.pipeline_mode<synchronous>, transform_indices = @transform_2, window_bounds = array<i64: 1, 32>}, {transform_indices = @transform_3, window_bounds = array<i64: 1, 64, 32>}]} {
    %c0 = arith.constant 0 : index
    %c0_0 = arith.constant 0 : index
    %c0_1 = arith.constant 0 : index
    %c0_2 = arith.constant 0 : index
    %0 = vector.load %arg1[%c0, %c0_0, %c0_1, %c0_2] : memref<1x10x10x16xbf16, #tpu.memory_space<vmem>>, vector<1x10x10x16xbf16>
    %1 = vector.shape_cast %0 : vector<1x10x10x16xbf16> to vector<10x10x16xbf16>
    %2 = arith.extf %1 : vector<10x10x16xbf16> to vector<10x10x16xf32>
    %cst = arith.constant 0.000000e+00 : f32
    %3 = vector.broadcast %cst : f32 to vector<64x32xf32>
    %4 = vector.extract_strided_slice %2 {offsets = [0, 0, 0], sizes = [8, 8, 16], strides = [1, 1, 1]} : vector<10x10x16xf32> to vector<8x8x16xf32>
    %5 = vector.shape_cast %4 : vector<8x8x16xf32> to vector<64x16xf32>
    %c0_3 = arith.constant 0 : index
    %c0_4 = arith.constant 0 : index
    %c0_5 = arith.constant 0 : index
    %6 = vector.load %arg2[%c0_3, %c0_4, %c0_5] : memref<9x16x32xf32, #tpu.memory_space<vmem>>, vector<1x16x32xf32>
    %7 = vector.shape_cast %6 : vector<1x16x32xf32> to vector<16x32xf32>
    %cst_6 = arith.constant dense<0.000000e+00> : vector<64x32xf32>
    %8 = tpu.matmul %5, %7, %cst_6 {dimension_numbers = #tpu.dot_dimension_numbers<[1], [0], [0], [1], [0, 0, 1, 1], [], []>} : vector<64x16xf32>, vector<16x32xf32>, vector<64x32xf32> -> vector<64x32xf32>
    %9 = arith.addf %3, %8 : vector<64x32xf32>
    %10 = vector.extract_strided_slice %2 {offsets = [0, 1, 0], sizes = [8, 8, 16], strides = [1, 1, 1]} : vector<10x10x16xf32> to vector<8x8x16xf32>
    %11 = vector.shape_cast %10 : vector<8x8x16xf32> to vector<64x16xf32>
    %c1 = arith.constant 1 : index
    %c0_7 = arith.constant 0 : index
    %c0_8 = arith.constant 0 : index
    %12 = vector.load %arg2[%c1, %c0_7, %c0_8] : memref<9x16x32xf32, #tpu.memory_space<vmem>>, vector<1x16x32xf32>
    %13 = vector.shape_cast %12 : vector<1x16x32xf32> to vector<16x32xf32>
    %cst_9 = arith.constant dense<0.000000e+00> : vector<64x32xf32>
    %14 = tpu.matmul %11, %13, %cst_9 {dimension_numbers = #tpu.dot_dimension_numbers<[1], [0], [0], [1], [0, 0, 1, 1], [], []>} : vector<64x16xf32>, vector<16x32xf32>, vector<64x32xf32> -> vector<64x32xf32>
    %15 = arith.addf %9, %14 : vector<64x32xf32>
    %16 = vector.extract_strided_slice %2 {offsets = [0, 2, 0], sizes = [8, 8, 16], strides = [1, 1, 1]} : vector<10x10x16xf32> to vector<8x8x16xf32>
    %17 = vector.shape_cast %16 : vector<8x8x16xf32> to vector<64x16xf32>
    %c2 = arith.constant 2 : index
    %c0_10 = arith.constant 0 : index
    %c0_11 = arith.constant 0 : index
    %18 = vector.load %arg2[%c2, %c0_10, %c0_11] : memref<9x16x32xf32, #tpu.memory_space<vmem>>, vector<1x16x32xf32>
    %19 = vector.shape_cast %18 : vector<1x16x32xf32> to vector<16x32xf32>
    %cst_12 = arith.constant dense<0.000000e+00> : vector<64x32xf32>
    %20 = tpu.matmul %17, %19, %cst_12 {dimension_numbers = #tpu.dot_dimension_numbers<[1], [0], [0], [1], [0, 0, 1, 1], [], []>} : vector<64x16xf32>, vector<16x32xf32>, vector<64x32xf32> -> vector<64x32xf32>
    %21 = arith.addf %15, %20 : vector<64x32xf32>
    %22 = vector.extract_strided_slice %2 {offsets = [1, 0, 0], sizes = [8, 8, 16], strides = [1, 1, 1]} : vector<10x10x16xf32> to vector<8x8x16xf32>
    %23 = vector.shape_cast %22 : vector<8x8x16xf32> to vector<64x16xf32>
    %c3 = arith.constant 3 : index
    %c0_13 = arith.constant 0 : index
    %c0_14 = arith.constant 0 : index
    %24 = vector.load %arg2[%c3, %c0_13, %c0_14] : memref<9x16x32xf32, #tpu.memory_space<vmem>>, vector<1x16x32xf32>
    %25 = vector.shape_cast %24 : vector<1x16x32xf32> to vector<16x32xf32>
    %cst_15 = arith.constant dense<0.000000e+00> : vector<64x32xf32>
    %26 = tpu.matmul %23, %25, %cst_15 {dimension_numbers = #tpu.dot_dimension_numbers<[1], [0], [0], [1], [0, 0, 1, 1], [], []>} : vector<64x16xf32>, vector<16x32xf32>, vector<64x32xf32> -> vector<64x32xf32>
    %27 = arith.addf %21, %26 : vector<64x32xf32>
    %28 = vector.extract_strided_slice %2 {offsets = [1, 1, 0], sizes = [8, 8, 16], strides = [1, 1, 1]} : vector<10x10x16xf32> to vector<8x8x16xf32>
    %29 = vector.shape_cast %28 : vector<8x8x16xf32> to vector<64x16xf32>
    %c4 = arith.constant 4 : index
    %c0_16 = arith.constant 0 : index
    %c0_17 = arith.constant 0 : index
    %30 = vector.load %arg2[%c4, %c0_16, %c0_17] : memref<9x16x32xf32, #tpu.memory_space<vmem>>, vector<1x16x32xf32>
    %31 = vector.shape_cast %30 : vector<1x16x32xf32> to vector<16x32xf32>
    %cst_18 = arith.constant dense<0.000000e+00> : vector<64x32xf32>
    %32 = tpu.matmul %29, %31, %cst_18 {dimension_numbers = #tpu.dot_dimension_numbers<[1], [0], [0], [1], [0, 0, 1, 1], [], []>} : vector<64x16xf32>, vector<16x32xf32>, vector<64x32xf32> -> vector<64x32xf32>
    %33 = arith.addf %27, %32 : vector<64x32xf32>
    %34 = vector.extract_strided_slice %2 {offsets = [1, 2, 0], sizes = [8, 8, 16], strides = [1, 1, 1]} : vector<10x10x16xf32> to vector<8x8x16xf32>
    %35 = vector.shape_cast %34 : vector<8x8x16xf32> to vector<64x16xf32>
    %c5 = arith.constant 5 : index
    %c0_19 = arith.constant 0 : index
    %c0_20 = arith.constant 0 : index
    %36 = vector.load %arg2[%c5, %c0_19, %c0_20] : memref<9x16x32xf32, #tpu.memory_space<vmem>>, vector<1x16x32xf32>
    %37 = vector.shape_cast %36 : vector<1x16x32xf32> to vector<16x32xf32>
    %cst_21 = arith.constant dense<0.000000e+00> : vector<64x32xf32>
    %38 = tpu.matmul %35, %37, %cst_21 {dimension_numbers = #tpu.dot_dimension_numbers<[1], [0], [0], [1], [0, 0, 1, 1], [], []>} : vector<64x16xf32>, vector<16x32xf32>, vector<64x32xf32> -> vector<64x32xf32>
    %39 = arith.addf %33, %38 : vector<64x32xf32>
    %40 = vector.extract_strided_slice %2 {offsets = [2, 0, 0], sizes = [8, 8, 16], strides = [1, 1, 1]} : vector<10x10x16xf32> to vector<8x8x16xf32>
    %41 = vector.shape_cast %40 : vector<8x8x16xf32> to vector<64x16xf32>
    %c6 = arith.constant 6 : index
    %c0_22 = arith.constant 0 : index
    %c0_23 = arith.constant 0 : index
    %42 = vector.load %arg2[%c6, %c0_22, %c0_23] : memref<9x16x32xf32, #tpu.memory_space<vmem>>, vector<1x16x32xf32>
    %43 = vector.shape_cast %42 : vector<1x16x32xf32> to vector<16x32xf32>
    %cst_24 = arith.constant dense<0.000000e+00> : vector<64x32xf32>
    %44 = tpu.matmul %41, %43, %cst_24 {dimension_numbers = #tpu.dot_dimension_numbers<[1], [0], [0], [1], [0, 0, 1, 1], [], []>} : vector<64x16xf32>, vector<16x32xf32>, vector<64x32xf32> -> vector<64x32xf32>
    %45 = arith.addf %39, %44 : vector<64x32xf32>
    %46 = vector.extract_strided_slice %2 {offsets = [2, 1, 0], sizes = [8, 8, 16], strides = [1, 1, 1]} : vector<10x10x16xf32> to vector<8x8x16xf32>
    %47 = vector.shape_cast %46 : vector<8x8x16xf32> to vector<64x16xf32>
    %c7 = arith.constant 7 : index
    %c0_25 = arith.constant 0 : index
    %c0_26 = arith.constant 0 : index
    %48 = vector.load %arg2[%c7, %c0_25, %c0_26] : memref<9x16x32xf32, #tpu.memory_space<vmem>>, vector<1x16x32xf32>
    %49 = vector.shape_cast %48 : vector<1x16x32xf32> to vector<16x32xf32>
    %cst_27 = arith.constant dense<0.000000e+00> : vector<64x32xf32>
    %50 = tpu.matmul %47, %49, %cst_27 {dimension_numbers = #tpu.dot_dimension_numbers<[1], [0], [0], [1], [0, 0, 1, 1], [], []>} : vector<64x16xf32>, vector<16x32xf32>, vector<64x32xf32> -> vector<64x32xf32>
    %51 = arith.addf %45, %50 : vector<64x32xf32>
    %52 = vector.extract_strided_slice %2 {offsets = [2, 2, 0], sizes = [8, 8, 16], strides = [1, 1, 1]} : vector<10x10x16xf32> to vector<8x8x16xf32>
    %53 = vector.shape_cast %52 : vector<8x8x16xf32> to vector<64x16xf32>
    %c8 = arith.constant 8 : index
    %c0_28 = arith.constant 0 : index
    %c0_29 = arith.constant 0 : index
    %54 = vector.load %arg2[%c8, %c0_28, %c0_29] : memref<9x16x32xf32, #tpu.memory_space<vmem>>, vector<1x16x32xf32>
    %55 = vector.shape_cast %54 : vector<1x16x32xf32> to vector<16x32xf32>
    %cst_30 = arith.constant dense<0.000000e+00> : vector<64x32xf32>
    %56 = tpu.matmul %53, %55, %cst_30 {dimension_numbers = #tpu.dot_dimension_numbers<[1], [0], [0], [1], [0, 0, 1, 1], [], []>} : vector<64x16xf32>, vector<16x32xf32>, vector<64x32xf32> -> vector<64x32xf32>
    %57 = arith.addf %51, %56 : vector<64x32xf32>
    %c0_31 = arith.constant 0 : index
    %c0_32 = arith.constant 0 : index
    %58 = vector.load %arg3[%c0_31, %c0_32] : memref<1x32xf32, #tpu.memory_space<vmem>>, vector<1x32xf32>
    %59 = vector.broadcast %58 : vector<1x32xf32> to vector<64x32xf32>
    %60 = arith.addf %57, %59 : vector<64x32xf32>
    %cst_33 = arith.constant 0.000000e+00 : f32
    %61 = vector.broadcast %cst_33 : f32 to vector<64x32xf32>
    %62 = arith.maximumf %60, %61 : vector<64x32xf32>
    %63 = arith.truncf %62 : vector<64x32xf32> to vector<64x32xbf16>
    %c0_34 = arith.constant 0 : index
    %c0_35 = arith.constant 0 : index
    %c0_36 = arith.constant 0 : index
    %64 = vector.load %arg4[%c0_34, %c0_35, %c0_36] : memref<1x64x32xbf16, #tpu.memory_space<vmem>>, vector<1x64x32xbf16>
    %65 = vector.shape_cast %64 : vector<1x64x32xbf16> to vector<64x32xbf16>
    %66 = vector.shape_cast %63 : vector<64x32xbf16> to vector<1x64x32xbf16>
    tpu.vector_store %arg4[%c0_34, %c0_35, %c0_36], %66 {strides = array<i32>} : memref<1x64x32xbf16, #tpu.memory_space<vmem>>, vector<1x64x32xbf16>,
    return
  }
  func.func @transform_0(%arg0: i32) -> (i32, i32, i32, i32) {
    %c0_i32 = arith.constant 0 : i32
    %c0_i32_0 = arith.constant 0 : i32
    %c0_i32_1 = arith.constant 0 : i32
    %c0_i32_2 = arith.constant 0 : i32
    return %arg0, %c0_i32, %c0_i32_0, %c0_i32_1 : i32, i32, i32, i32
  }
  func.func @transform_1(%arg0: i32) -> (i32, i32, i32) {
    %c0_i32 = arith.constant 0 : i32
    %c0_i32_0 = arith.constant 0 : i32
    %c0_i32_1 = arith.constant 0 : i32
    %c0_i32_2 = arith.constant 0 : i32
    return %c0_i32, %c0_i32_0, %c0_i32_1 : i32, i32, i32
  }
  func.func @transform_2(%arg0: i32) -> (i32, i32) {
    %c0_i32 = arith.constant 0 : i32
    %c0_i32_0 = arith.constant 0 : i32
    %c0_i32_1 = arith.constant 0 : i32
    return %c0_i32, %c0_i32_0 : i32, i32
  }
  func.func @transform_3(%arg0: i32) -> (i32, i32, i32) {
    %c0_i32 = arith.constant 0 : i32
    %c0_i32_0 = arith.constant 0 : i32
    %c0_i32_1 = arith.constant 0 : i32
    return %arg0, %c0_i32, %c0_i32_0 : i32, i32, i32
  }
}

module attributes {stable_mosaic.version = 11 : i64} {
  func.func @_matmul_bias_kernel(%arg0: i32, %arg1: i32, %arg2: memref<8x512xbf16, #tpu.memory_space<vmem>>, %arg3: memref<512x128xbf16, #tpu.memory_space<vmem>>, %arg4: memref<1x128xf32, #tpu.memory_space<vmem>>, %arg5: memref<8x128xf32, #tpu.memory_space<vmem>>, %arg6: memref<8x128xf32, #tpu.memory_space<vmem>>) attributes {dimension_semantics = [#tpu.dimension_semantics<parallel>, #tpu.dimension_semantics<arbitrary>], iteration_bounds = array<i64: 1, 1>, scalar_prefetch = 0 : i64, scratch_operands = 1 : i64, tpu.core_type = #tpu.core_type<tc>, window_params = [{transform_indices = @transform_0, window_bounds = array<i64: 8, 512>}, {transform_indices = @transform_1, window_bounds = array<i64: 512, 128>}, {pipeline_mode = #tpu.pipeline_mode<synchronous>, transform_indices = @transform_2, window_bounds = array<i64: 1, 128>}, {transform_indices = @transform_3, window_bounds = array<i64: 8, 128>}]} {
    %c0_i32 = arith.constant 0 : i32
    %0 = arith.cmpi eq, %arg1, %c0_i32 : i32
    %1 = arith.extui %0 : i1 to i32
    %c0_i32_0 = arith.constant 0 : i32
    %2 = arith.cmpi ne, %1, %c0_i32_0 : i32
    scf.if %2 {
      %cst_10 = arith.constant 0.000000e+00 : f32
      %12 = vector.broadcast %cst_10 : f32 to vector<8x128xf32>
      %c0_11 = arith.constant 0 : index
      %c0_12 = arith.constant 0 : index
      %13 = vector.load %arg6[%c0_11, %c0_12] : memref<8x128xf32, #tpu.memory_space<vmem>>, vector<8x128xf32>
      tpu.vector_store %arg6[%c0_11, %c0_12], %12 {strides = array<i32>} : memref<8x128xf32, #tpu.memory_space<vmem>>, vector<8x128xf32>,
    } else {
    }
    %c0 = arith.constant 0 : index
    %c0_1 = arith.constant 0 : index
    %3 = vector.load %arg6[%c0, %c0_1] : memref<8x128xf32, #tpu.memory_space<vmem>>, vector<8x128xf32>
    %c0_2 = arith.constant 0 : index
    %c0_3 = arith.constant 0 : index
    %4 = vector.load %arg2[%c0_2, %c0_3] : memref<8x512xbf16, #tpu.memory_space<vmem>>, vector<8x512xbf16>
    %c0_4 = arith.constant 0 : index
    %c0_5 = arith.constant 0 : index
    %5 = vector.load %arg3[%c0_4, %c0_5] : memref<512x128xbf16, #tpu.memory_space<vmem>>, vector<512x128xbf16>
    %cst = arith.constant dense<0.000000e+00> : vector<8x128xf32>
    %6 = tpu.matmul %4, %5, %cst {dimension_numbers = #tpu.dot_dimension_numbers<[1], [0], [0], [1], [0, 0, 1, 1], [], []>} : vector<8x512xbf16>, vector<512x128xbf16>, vector<8x128xf32> -> vector<8x128xf32>
    %7 = arith.addf %3, %6 : vector<8x128xf32>
    %c0_6 = arith.constant 0 : index
    %c0_7 = arith.constant 0 : index
    %8 = vector.load %arg6[%c0_6, %c0_7] : memref<8x128xf32, #tpu.memory_space<vmem>>, vector<8x128xf32>
    tpu.vector_store %arg6[%c0_6, %c0_7], %7 {strides = array<i32>} : memref<8x128xf32, #tpu.memory_space<vmem>>, vector<8x128xf32>,
    %c0_i32_8 = arith.constant 0 : i32
    %9 = arith.cmpi eq, %arg1, %c0_i32_8 : i32
    %10 = arith.extui %9 : i1 to i32
    %c0_i32_9 = arith.constant 0 : i32
    %11 = arith.cmpi ne, %10, %c0_i32_9 : i32
    scf.if %11 {
      %c0_10 = arith.constant 0 : index
      %c0_11 = arith.constant 0 : index
      %12 = vector.load %arg6[%c0_10, %c0_11] : memref<8x128xf32, #tpu.memory_space<vmem>>, vector<8x128xf32>
      %c0_12 = arith.constant 0 : index
      %c0_13 = arith.constant 0 : index
      %13 = vector.load %arg4[%c0_12, %c0_13] : memref<1x128xf32, #tpu.memory_space<vmem>>, vector<1x128xf32>
      %14 = vector.broadcast %13 : vector<1x128xf32> to vector<8x128xf32>
      %15 = arith.addf %12, %14 : vector<8x128xf32>
      %cst_14 = arith.constant 0.000000e+00 : f32
      %16 = vector.broadcast %cst_14 : f32 to vector<8x128xf32>
      %17 = arith.maximumf %15, %16 : vector<8x128xf32>
      %c0_15 = arith.constant 0 : index
      %c0_16 = arith.constant 0 : index
      %18 = vector.load %arg5[%c0_15, %c0_16] : memref<8x128xf32, #tpu.memory_space<vmem>>, vector<8x128xf32>
      tpu.vector_store %arg5[%c0_15, %c0_16], %17 {strides = array<i32>} : memref<8x128xf32, #tpu.memory_space<vmem>>, vector<8x128xf32>,
    } else {
    }
    return
  }
  func.func @transform_0(%arg0: i32, %arg1: i32) -> (i32, i32) {
    %c0_i32 = arith.constant 0 : i32
    return %arg0, %arg1 : i32, i32
  }
  func.func @transform_1(%arg0: i32, %arg1: i32) -> (i32, i32) {
    %c0_i32 = arith.constant 0 : i32
    %c0_i32_0 = arith.constant 0 : i32
    return %arg1, %c0_i32 : i32, i32
  }
  func.func @transform_2(%arg0: i32, %arg1: i32) -> (i32, i32) {
    %c0_i32 = arith.constant 0 : i32
    %c0_i32_0 = arith.constant 0 : i32
    %c0_i32_1 = arith.constant 0 : i32
    return %c0_i32, %c0_i32_0 : i32, i32
  }
  func.func @transform_3(%arg0: i32, %arg1: i32) -> (i32, i32) {
    %c0_i32 = arith.constant 0 : i32
    %c0_i32_0 = arith.constant 0 : i32
    return %arg0, %c0_i32 : i32, i32
  }
}

module attributes {stable_mosaic.version = 11 : i64} {
  func.func @_matmul_bias_kernel(%arg0: i32, %arg1: i32, %arg2: memref<8x128xbf16, #tpu.memory_space<vmem>>, %arg3: memref<128x512xbf16, #tpu.memory_space<vmem>>, %arg4: memref<1x512xf32, #tpu.memory_space<vmem>>, %arg5: memref<8x512xf32, #tpu.memory_space<vmem>>, %arg6: memref<8x512xf32, #tpu.memory_space<vmem>>) attributes {dimension_semantics = [#tpu.dimension_semantics<parallel>, #tpu.dimension_semantics<arbitrary>], iteration_bounds = array<i64: 1, 1>, scalar_prefetch = 0 : i64, scratch_operands = 1 : i64, tpu.core_type = #tpu.core_type<tc>, window_params = [{transform_indices = @transform_0, window_bounds = array<i64: 8, 128>}, {transform_indices = @transform_1, window_bounds = array<i64: 128, 512>}, {pipeline_mode = #tpu.pipeline_mode<synchronous>, transform_indices = @transform_2, window_bounds = array<i64: 1, 512>}, {transform_indices = @transform_3, window_bounds = array<i64: 8, 512>}]} {
    %c0_i32 = arith.constant 0 : i32
    %0 = arith.cmpi eq, %arg1, %c0_i32 : i32
    %1 = arith.extui %0 : i1 to i32
    %c0_i32_0 = arith.constant 0 : i32
    %2 = arith.cmpi ne, %1, %c0_i32_0 : i32
    scf.if %2 {
      %cst_10 = arith.constant 0.000000e+00 : f32
      %12 = vector.broadcast %cst_10 : f32 to vector<8x512xf32>
      %c0_11 = arith.constant 0 : index
      %c0_12 = arith.constant 0 : index
      %13 = vector.load %arg6[%c0_11, %c0_12] : memref<8x512xf32, #tpu.memory_space<vmem>>, vector<8x512xf32>
      tpu.vector_store %arg6[%c0_11, %c0_12], %12 {strides = array<i32>} : memref<8x512xf32, #tpu.memory_space<vmem>>, vector<8x512xf32>,
    } else {
    }
    %c0 = arith.constant 0 : index
    %c0_1 = arith.constant 0 : index
    %3 = vector.load %arg6[%c0, %c0_1] : memref<8x512xf32, #tpu.memory_space<vmem>>, vector<8x512xf32>
    %c0_2 = arith.constant 0 : index
    %c0_3 = arith.constant 0 : index
    %4 = vector.load %arg2[%c0_2, %c0_3] : memref<8x128xbf16, #tpu.memory_space<vmem>>, vector<8x128xbf16>
    %c0_4 = arith.constant 0 : index
    %c0_5 = arith.constant 0 : index
    %5 = vector.load %arg3[%c0_4, %c0_5] : memref<128x512xbf16, #tpu.memory_space<vmem>>, vector<128x512xbf16>
    %cst = arith.constant dense<0.000000e+00> : vector<8x512xf32>
    %6 = tpu.matmul %4, %5, %cst {dimension_numbers = #tpu.dot_dimension_numbers<[1], [0], [0], [1], [0, 0, 1, 1], [], []>} : vector<8x128xbf16>, vector<128x512xbf16>, vector<8x512xf32> -> vector<8x512xf32>
    %7 = arith.addf %3, %6 : vector<8x512xf32>
    %c0_6 = arith.constant 0 : index
    %c0_7 = arith.constant 0 : index
    %8 = vector.load %arg6[%c0_6, %c0_7] : memref<8x512xf32, #tpu.memory_space<vmem>>, vector<8x512xf32>
    tpu.vector_store %arg6[%c0_6, %c0_7], %7 {strides = array<i32>} : memref<8x512xf32, #tpu.memory_space<vmem>>, vector<8x512xf32>,
    %c0_i32_8 = arith.constant 0 : i32
    %9 = arith.cmpi eq, %arg1, %c0_i32_8 : i32
    %10 = arith.extui %9 : i1 to i32
    %c0_i32_9 = arith.constant 0 : i32
    %11 = arith.cmpi ne, %10, %c0_i32_9 : i32
    scf.if %11 {
      %c0_10 = arith.constant 0 : index
      %c0_11 = arith.constant 0 : index
      %12 = vector.load %arg6[%c0_10, %c0_11] : memref<8x512xf32, #tpu.memory_space<vmem>>, vector<8x512xf32>
      %c0_12 = arith.constant 0 : index
      %c0_13 = arith.constant 0 : index
      %13 = vector.load %arg4[%c0_12, %c0_13] : memref<1x512xf32, #tpu.memory_space<vmem>>, vector<1x512xf32>
      %14 = vector.broadcast %13 : vector<1x512xf32> to vector<8x512xf32>
      %15 = arith.addf %12, %14 : vector<8x512xf32>
      %c0_14 = arith.constant 0 : index
      %c0_15 = arith.constant 0 : index
      %16 = vector.load %arg5[%c0_14, %c0_15] : memref<8x512xf32, #tpu.memory_space<vmem>>, vector<8x512xf32>
      tpu.vector_store %arg5[%c0_14, %c0_15], %15 {strides = array<i32>} : memref<8x512xf32, #tpu.memory_space<vmem>>, vector<8x512xf32>,
    } else {
    }
    return
  }
  func.func @transform_0(%arg0: i32, %arg1: i32) -> (i32, i32) {
    %c0_i32 = arith.constant 0 : i32
    return %arg0, %arg1 : i32, i32
  }
  func.func @transform_1(%arg0: i32, %arg1: i32) -> (i32, i32) {
    %c0_i32 = arith.constant 0 : i32
    %c0_i32_0 = arith.constant 0 : i32
    return %arg1, %c0_i32 : i32, i32
  }
  func.func @transform_2(%arg0: i32, %arg1: i32) -> (i32, i32) {
    %c0_i32 = arith.constant 0 : i32
    %c0_i32_0 = arith.constant 0 : i32
    %c0_i32_1 = arith.constant 0 : i32
    return %c0_i32, %c0_i32_0 : i32, i32
  }
  func.func @transform_3(%arg0: i32, %arg1: i32) -> (i32, i32) {
    %c0_i32 = arith.constant 0 : i32
    %c0_i32_0 = arith.constant 0 : i32
    return %arg0, %c0_i32 : i32, i32
  }
}

module attributes {stable_mosaic.version = 11 : i64} {
  func.func @_lstm_kernel(%arg0: i32, %arg1: memref<4x2x512xf32, #tpu.memory_space<vmem>>, %arg2: memref<128x512xf32, #tpu.memory_space<vmem>>, %arg3: memref<4x2x128xf32, #tpu.memory_space<vmem>>) attributes {dimension_semantics = [#tpu.dimension_semantics<arbitrary>], iteration_bounds = array<i64: 1>, scalar_prefetch = 0 : i64, scratch_operands = 0 : i64, tpu.core_type = #tpu.core_type<tc>, window_params = [{pipeline_mode = #tpu.pipeline_mode<synchronous>, transform_indices = @transform_0, window_bounds = array<i64: 4, 2, 512>}, {pipeline_mode = #tpu.pipeline_mode<synchronous>, transform_indices = @transform_1, window_bounds = array<i64: 128, 512>}, {pipeline_mode = #tpu.pipeline_mode<synchronous>, transform_indices = @transform_2, window_bounds = array<i64: 4, 2, 128>}]} {
    %c0 = arith.constant 0 : index
    %c0_0 = arith.constant 0 : index
    %0 = vector.load %arg2[%c0, %c0_0] : memref<128x512xf32, #tpu.memory_space<vmem>>, vector<128x512xf32>
    %cst = arith.constant 0.000000e+00 : f32
    %1 = vector.broadcast %cst : f32 to vector<2x128xf32>
    %cst_1 = arith.constant 0.000000e+00 : f32
    %2 = vector.broadcast %cst_1 : f32 to vector<2x128xf32>
    %c0_i32 = arith.constant 0 : i32
    %3 = arith.index_cast %c0_i32 : i32 to index
    %c0_2 = arith.constant 0 : index
    %c0_3 = arith.constant 0 : index
    %4 = vector.load %arg1[%3, %c0_2, %c0_3] : memref<4x2x512xf32, #tpu.memory_space<vmem>>, vector<1x2x512xf32>
    %5 = vector.shape_cast %4 : vector<1x2x512xf32> to vector<2x512xf32>
    %cst_4 = arith.constant dense<0.000000e+00> : vector<2x512xf32>
    %6 = tpu.matmul %1, %0, %cst_4 {dimension_numbers = #tpu.dot_dimension_numbers<[1], [0], [0], [1], [0, 0, 1, 1], [], []>} : vector<2x128xf32>, vector<128x512xf32>, vector<2x512xf32> -> vector<2x512xf32>
    %7 = arith.addf %5, %6 : vector<2x512xf32>
    %8 = vector.extract_strided_slice %7 {offsets = [0, 0], sizes = [2, 128], strides = [1, 1]} : vector<2x512xf32> to vector<2x128xf32>
    %9 = arith.negf %8 : vector<2x128xf32>
    %10 = math.exp %9 : vector<2x128xf32>
    %cst_5 = arith.constant 1.000000e+00 : f32
    %11 = vector.broadcast %cst_5 : f32 to vector<2x128xf32>
    %12 = arith.addf %11, %10 : vector<2x128xf32>
    %13 = arith.divf %11, %12 : vector<2x128xf32>
    %14 = vector.extract_strided_slice %7 {offsets = [0, 128], sizes = [2, 128], strides = [1, 1]} : vector<2x512xf32> to vector<2x128xf32>
    %15 = arith.negf %14 : vector<2x128xf32>
    %16 = math.exp %15 : vector<2x128xf32>
    %cst_6 = arith.constant 1.000000e+00 : f32
    %17 = vector.broadcast %cst_6 : f32 to vector<2x128xf32>
    %18 = arith.addf %17, %16 : vector<2x128xf32>
    %19 = arith.divf %17, %18 : vector<2x128xf32>
    %20 = vector.extract_strided_slice %7 {offsets = [0, 256], sizes = [2, 128], strides = [1, 1]} : vector<2x512xf32> to vector<2x128xf32>
    %21 = math.tanh %20 : vector<2x128xf32>
    %22 = vector.extract_strided_slice %7 {offsets = [0, 384], sizes = [2, 128], strides = [1, 1]} : vector<2x512xf32> to vector<2x128xf32>
    %23 = arith.negf %22 : vector<2x128xf32>
    %24 = math.exp %23 : vector<2x128xf32>
    %cst_7 = arith.constant 1.000000e+00 : f32
    %25 = vector.broadcast %cst_7 : f32 to vector<2x128xf32>
    %26 = arith.addf %25, %24 : vector<2x128xf32>
    %27 = arith.divf %25, %26 : vector<2x128xf32>
    %28 = arith.mulf %19, %2 : vector<2x128xf32>
    %29 = arith.mulf %13, %21 : vector<2x128xf32>
    %30 = arith.addf %28, %29 : vector<2x128xf32>
    %31 = math.tanh %30 : vector<2x128xf32>
    %32 = arith.mulf %27, %31 : vector<2x128xf32>
    %33 = arith.index_cast %c0_i32 : i32 to index
    %c0_8 = arith.constant 0 : index
    %c0_9 = arith.constant 0 : index
    %34 = vector.load %arg3[%33, %c0_8, %c0_9] : memref<4x2x128xf32, #tpu.memory_space<vmem>>, vector<1x2x128xf32>
    %35 = vector.shape_cast %34 : vector<1x2x128xf32> to vector<2x128xf32>
    %36 = vector.shape_cast %32 : vector<2x128xf32> to vector<1x2x128xf32>
    tpu.vector_store %arg3[%33, %c0_8, %c0_9], %36 {strides = array<i32>} : memref<4x2x128xf32, #tpu.memory_space<vmem>>, vector<1x2x128xf32>,
    %c1_i32 = arith.constant 1 : i32
    %37 = arith.index_cast %c1_i32 : i32 to index
    %c0_10 = arith.constant 0 : index
    %c0_11 = arith.constant 0 : index
    %38 = vector.load %arg1[%37, %c0_10, %c0_11] : memref<4x2x512xf32, #tpu.memory_space<vmem>>, vector<1x2x512xf32>
    %39 = vector.shape_cast %38 : vector<1x2x512xf32> to vector<2x512xf32>
    %cst_12 = arith.constant dense<0.000000e+00> : vector<2x512xf32>
    %40 = tpu.matmul %32, %0, %cst_12 {dimension_numbers = #tpu.dot_dimension_numbers<[1], [0], [0], [1], [0, 0, 1, 1], [], []>} : vector<2x128xf32>, vector<128x512xf32>, vector<2x512xf32> -> vector<2x512xf32>
    %41 = arith.addf %39, %40 : vector<2x512xf32>
    %42 = vector.extract_strided_slice %41 {offsets = [0, 0], sizes = [2, 128], strides = [1, 1]} : vector<2x512xf32> to vector<2x128xf32>
    %43 = arith.negf %42 : vector<2x128xf32>
    %44 = math.exp %43 : vector<2x128xf32>
    %cst_13 = arith.constant 1.000000e+00 : f32
    %45 = vector.broadcast %cst_13 : f32 to vector<2x128xf32>
    %46 = arith.addf %45, %44 : vector<2x128xf32>
    %47 = arith.divf %45, %46 : vector<2x128xf32>
    %48 = vector.extract_strided_slice %41 {offsets = [0, 128], sizes = [2, 128], strides = [1, 1]} : vector<2x512xf32> to vector<2x128xf32>
    %49 = arith.negf %48 : vector<2x128xf32>
    %50 = math.exp %49 : vector<2x128xf32>
    %cst_14 = arith.constant 1.000000e+00 : f32
    %51 = vector.broadcast %cst_14 : f32 to vector<2x128xf32>
    %52 = arith.addf %51, %50 : vector<2x128xf32>
    %53 = arith.divf %51, %52 : vector<2x128xf32>
    %54 = vector.extract_strided_slice %41 {offsets = [0, 256], sizes = [2, 128], strides = [1, 1]} : vector<2x512xf32> to vector<2x128xf32>
    %55 = math.tanh %54 : vector<2x128xf32>
    %56 = vector.extract_strided_slice %41 {offsets = [0, 384], sizes = [2, 128], strides = [1, 1]} : vector<2x512xf32> to vector<2x128xf32>
    %57 = arith.negf %56 : vector<2x128xf32>
    %58 = math.exp %57 : vector<2x128xf32>
    %cst_15 = arith.constant 1.000000e+00 : f32
    %59 = vector.broadcast %cst_15 : f32 to vector<2x128xf32>
    %60 = arith.addf %59, %58 : vector<2x128xf32>
    %61 = arith.divf %59, %60 : vector<2x128xf32>
    %62 = arith.mulf %53, %30 : vector<2x128xf32>
    %63 = arith.mulf %47, %55 : vector<2x128xf32>
    %64 = arith.addf %62, %63 : vector<2x128xf32>
    %65 = math.tanh %64 : vector<2x128xf32>
    %66 = arith.mulf %61, %65 : vector<2x128xf32>
    %67 = arith.index_cast %c1_i32 : i32 to index
    %c0_16 = arith.constant 0 : index
    %c0_17 = arith.constant 0 : index
    %68 = vector.load %arg3[%67, %c0_16, %c0_17] : memref<4x2x128xf32, #tpu.memory_space<vmem>>, vector<1x2x128xf32>
    %69 = vector.shape_cast %68 : vector<1x2x128xf32> to vector<2x128xf32>
    %70 = vector.shape_cast %66 : vector<2x128xf32> to vector<1x2x128xf32>
    tpu.vector_store %arg3[%67, %c0_16, %c0_17], %70 {strides = array<i32>} : memref<4x2x128xf32, #tpu.memory_space<vmem>>, vector<1x2x128xf32>,
    %c2_i32 = arith.constant 2 : i32
    %71 = arith.index_cast %c2_i32 : i32 to index
    %c0_18 = arith.constant 0 : index
    %c0_19 = arith.constant 0 : index
    %72 = vector.load %arg1[%71, %c0_18, %c0_19] : memref<4x2x512xf32, #tpu.memory_space<vmem>>, vector<1x2x512xf32>
    %73 = vector.shape_cast %72 : vector<1x2x512xf32> to vector<2x512xf32>
    %cst_20 = arith.constant dense<0.000000e+00> : vector<2x512xf32>
    %74 = tpu.matmul %66, %0, %cst_20 {dimension_numbers = #tpu.dot_dimension_numbers<[1], [0], [0], [1], [0, 0, 1, 1], [], []>} : vector<2x128xf32>, vector<128x512xf32>, vector<2x512xf32> -> vector<2x512xf32>
    %75 = arith.addf %73, %74 : vector<2x512xf32>
    %76 = vector.extract_strided_slice %75 {offsets = [0, 0], sizes = [2, 128], strides = [1, 1]} : vector<2x512xf32> to vector<2x128xf32>
    %77 = arith.negf %76 : vector<2x128xf32>
    %78 = math.exp %77 : vector<2x128xf32>
    %cst_21 = arith.constant 1.000000e+00 : f32
    %79 = vector.broadcast %cst_21 : f32 to vector<2x128xf32>
    %80 = arith.addf %79, %78 : vector<2x128xf32>
    %81 = arith.divf %79, %80 : vector<2x128xf32>
    %82 = vector.extract_strided_slice %75 {offsets = [0, 128], sizes = [2, 128], strides = [1, 1]} : vector<2x512xf32> to vector<2x128xf32>
    %83 = arith.negf %82 : vector<2x128xf32>
    %84 = math.exp %83 : vector<2x128xf32>
    %cst_22 = arith.constant 1.000000e+00 : f32
    %85 = vector.broadcast %cst_22 : f32 to vector<2x128xf32>
    %86 = arith.addf %85, %84 : vector<2x128xf32>
    %87 = arith.divf %85, %86 : vector<2x128xf32>
    %88 = vector.extract_strided_slice %75 {offsets = [0, 256], sizes = [2, 128], strides = [1, 1]} : vector<2x512xf32> to vector<2x128xf32>
    %89 = math.tanh %88 : vector<2x128xf32>
    %90 = vector.extract_strided_slice %75 {offsets = [0, 384], sizes = [2, 128], strides = [1, 1]} : vector<2x512xf32> to vector<2x128xf32>
    %91 = arith.negf %90 : vector<2x128xf32>
    %92 = math.exp %91 : vector<2x128xf32>
    %cst_23 = arith.constant 1.000000e+00 : f32
    %93 = vector.broadcast %cst_23 : f32 to vector<2x128xf32>
    %94 = arith.addf %93, %92 : vector<2x128xf32>
    %95 = arith.divf %93, %94 : vector<2x128xf32>
    %96 = arith.mulf %87, %64 : vector<2x128xf32>
    %97 = arith.mulf %81, %89 : vector<2x128xf32>
    %98 = arith.addf %96, %97 : vector<2x128xf32>
    %99 = math.tanh %98 : vector<2x128xf32>
    %100 = arith.mulf %95, %99 : vector<2x128xf32>
    %101 = arith.index_cast %c2_i32 : i32 to index
    %c0_24 = arith.constant 0 : index
    %c0_25 = arith.constant 0 : index
    %102 = vector.load %arg3[%101, %c0_24, %c0_25] : memref<4x2x128xf32, #tpu.memory_space<vmem>>, vector<1x2x128xf32>
    %103 = vector.shape_cast %102 : vector<1x2x128xf32> to vector<2x128xf32>
    %104 = vector.shape_cast %100 : vector<2x128xf32> to vector<1x2x128xf32>
    tpu.vector_store %arg3[%101, %c0_24, %c0_25], %104 {strides = array<i32>} : memref<4x2x128xf32, #tpu.memory_space<vmem>>, vector<1x2x128xf32>,
    %c3_i32 = arith.constant 3 : i32
    %105 = arith.index_cast %c3_i32 : i32 to index
    %c0_26 = arith.constant 0 : index
    %c0_27 = arith.constant 0 : index
    %106 = vector.load %arg1[%105, %c0_26, %c0_27] : memref<4x2x512xf32, #tpu.memory_space<vmem>>, vector<1x2x512xf32>
    %107 = vector.shape_cast %106 : vector<1x2x512xf32> to vector<2x512xf32>
    %cst_28 = arith.constant dense<0.000000e+00> : vector<2x512xf32>
    %108 = tpu.matmul %100, %0, %cst_28 {dimension_numbers = #tpu.dot_dimension_numbers<[1], [0], [0], [1], [0, 0, 1, 1], [], []>} : vector<2x128xf32>, vector<128x512xf32>, vector<2x512xf32> -> vector<2x512xf32>
    %109 = arith.addf %107, %108 : vector<2x512xf32>
    %110 = vector.extract_strided_slice %109 {offsets = [0, 0], sizes = [2, 128], strides = [1, 1]} : vector<2x512xf32> to vector<2x128xf32>
    %111 = arith.negf %110 : vector<2x128xf32>
    %112 = math.exp %111 : vector<2x128xf32>
    %cst_29 = arith.constant 1.000000e+00 : f32
    %113 = vector.broadcast %cst_29 : f32 to vector<2x128xf32>
    %114 = arith.addf %113, %112 : vector<2x128xf32>
    %115 = arith.divf %113, %114 : vector<2x128xf32>
    %116 = vector.extract_strided_slice %109 {offsets = [0, 128], sizes = [2, 128], strides = [1, 1]} : vector<2x512xf32> to vector<2x128xf32>
    %117 = arith.negf %116 : vector<2x128xf32>
    %118 = math.exp %117 : vector<2x128xf32>
    %cst_30 = arith.constant 1.000000e+00 : f32
    %119 = vector.broadcast %cst_30 : f32 to vector<2x128xf32>
    %120 = arith.addf %119, %118 : vector<2x128xf32>
    %121 = arith.divf %119, %120 : vector<2x128xf32>
    %122 = vector.extract_strided_slice %109 {offsets = [0, 256], sizes = [2, 128], strides = [1, 1]} : vector<2x512xf32> to vector<2x128xf32>
    %123 = math.tanh %122 : vector<2x128xf32>
    %124 = vector.extract_strided_slice %109 {offsets = [0, 384], sizes = [2, 128], strides = [1, 1]} : vector<2x512xf32> to vector<2x128xf32>
    %125 = arith.negf %124 : vector<2x128xf32>
    %126 = math.exp %125 : vector<2x128xf32>
    %cst_31 = arith.constant 1.000000e+00 : f32
    %127 = vector.broadcast %cst_31 : f32 to vector<2x128xf32>
    %128 = arith.addf %127, %126 : vector<2x128xf32>
    %129 = arith.divf %127, %128 : vector<2x128xf32>
    %130 = arith.mulf %121, %98 : vector<2x128xf32>
    %131 = arith.mulf %115, %123 : vector<2x128xf32>
    %132 = arith.addf %130, %131 : vector<2x128xf32>
    %133 = math.tanh %132 : vector<2x128xf32>
    %134 = arith.mulf %129, %133 : vector<2x128xf32>
    %135 = arith.index_cast %c3_i32 : i32 to index
    %c0_32 = arith.constant 0 : index
    %c0_33 = arith.constant 0 : index
    %136 = vector.load %arg3[%135, %c0_32, %c0_33] : memref<4x2x128xf32, #tpu.memory_space<vmem>>, vector<1x2x128xf32>
    %137 = vector.shape_cast %136 : vector<1x2x128xf32> to vector<2x128xf32>
    %138 = vector.shape_cast %134 : vector<2x128xf32> to vector<1x2x128xf32>
    tpu.vector_store %arg3[%135, %c0_32, %c0_33], %138 {strides = array<i32>} : memref<4x2x128xf32, #tpu.memory_space<vmem>>, vector<1x2x128xf32>,
    %c4_i32 = arith.constant 4 : i32
    return
  }
  func.func @transform_0(%arg0: i32) -> (i32, i32, i32) {
    %c0_i32 = arith.constant 0 : i32
    %c0_i32_0 = arith.constant 0 : i32
    %c0_i32_1 = arith.constant 0 : i32
    %c0_i32_2 = arith.constant 0 : i32
    return %c0_i32, %c0_i32_0, %c0_i32_1 : i32, i32, i32
  }
  func.func @transform_1(%arg0: i32) -> (i32, i32) {
    %c0_i32 = arith.constant 0 : i32
    %c0_i32_0 = arith.constant 0 : i32
    %c0_i32_1 = arith.constant 0 : i32
    return %c0_i32, %c0_i32_0 : i32, i32
  }
  func.func @transform_2(%arg0: i32) -> (i32, i32, i32) {
    %c0_i32 = arith.constant 0 : i32
    %c0_i32_0 = arith.constant 0 : i32
    %c0_i32_1 = arith.constant 0 : i32
    %c0_i32_2 = arith.constant 0 : i32
    return %c0_i32, %c0_i32_0, %c0_i32_1 : i32, i32, i32
  }
}

module attributes {stable_mosaic.version = 11 : i64} {
  func.func @_attention_kernel(%arg0: i32, %arg1: memref<2x4x128xf32, #tpu.memory_space<vmem>>, %arg2: memref<1x128xf32, #tpu.memory_space<vmem>>, %arg3: memref<1x1xf32, #tpu.memory_space<vmem>>, %arg4: memref<2x128xf32, #tpu.memory_space<vmem>>) attributes {dimension_semantics = [#tpu.dimension_semantics<arbitrary>], iteration_bounds = array<i64: 1>, scalar_prefetch = 0 : i64, scratch_operands = 0 : i64, tpu.core_type = #tpu.core_type<tc>, window_params = [{pipeline_mode = #tpu.pipeline_mode<synchronous>, transform_indices = @transform_0, window_bounds = array<i64: 2, 4, 128>}, {pipeline_mode = #tpu.pipeline_mode<synchronous>, transform_indices = @transform_1, window_bounds = array<i64: 1, 128>}, {pipeline_mode = #tpu.pipeline_mode<synchronous>, transform_indices = @transform_2, window_bounds = array<i64: 1, 1>}, {pipeline_mode = #tpu.pipeline_mode<synchronous>, transform_indices = @transform_3, window_bounds = array<i64: 2, 128>}]} {
    %c0 = arith.constant 0 : index
    %c0_0 = arith.constant 0 : index
    %c0_1 = arith.constant 0 : index
    %0 = vector.load %arg1[%c0, %c0_0, %c0_1] : memref<2x4x128xf32, #tpu.memory_space<vmem>>, vector<2x4x128xf32>
    %c0_2 = arith.constant 0 : index
    %c0_3 = arith.constant 0 : index
    %1 = vector.load %arg2[%c0_2, %c0_3] : memref<1x128xf32, #tpu.memory_space<vmem>>, vector<1x128xf32>
    %2 = vector.shape_cast %1 : vector<1x128xf32> to vector<1x1x128xf32>
    %3 = vector.broadcast %2 : vector<1x1x128xf32> to vector<2x4x128xf32>
    %4 = arith.mulf %0, %3 : vector<2x4x128xf32>
    %cst = arith.constant dense<0.000000e+00> : vector<2x4xf32>
    %5 = vector.multi_reduction <add>, %4, %cst [2] : vector<2x4x128xf32> to vector<2x4xf32>
    %6 = vector.shape_cast %5 : vector<2x4xf32> to vector<2x4x1xf32>
    %c0_4 = arith.constant 0 : index
    %c0_5 = arith.constant 0 : index
    %7 = vector.load %arg3[%c0_4, %c0_5] : memref<1x1xf32, #tpu.memory_space<vmem>>, vector<1x1xf32>
    %8 = vector.extract %7[0, 0] : f32 from vector<1x1xf32>
    %9 = vector.broadcast %8 : f32 to vector<2x4x1xf32>
    %10 = arith.addf %6, %9 : vector<2x4x1xf32>
    %cst_6 = arith.constant dense<0xFF800000> : vector<2x1xf32>
    %11 = vector.multi_reduction <maximumf>, %10, %cst_6 [1] : vector<2x4x1xf32> to vector<2x1xf32>
    %12 = vector.shape_cast %11 : vector<2x1xf32> to vector<2x1x1xf32>
    %13 = vector.broadcast %12 : vector<2x1x1xf32> to vector<2x4x1xf32>
    %14 = arith.subf %10, %13 : vector<2x4x1xf32>
    %15 = math.exp %14 : vector<2x4x1xf32>
    %cst_7 = arith.constant dense<0.000000e+00> : vector<2x1xf32>
    %16 = vector.multi_reduction <add>, %15, %cst_7 [1] : vector<2x4x1xf32> to vector<2x1xf32>
    %17 = vector.shape_cast %16 : vector<2x1xf32> to vector<2x1x1xf32>
    %18 = tpu.reciprocal %17 {approx = true} : vector<2x1x1xf32> -> vector<2x1x1xf32>
    %19 = vector.broadcast %18 : vector<2x1x1xf32> to vector<2x4x1xf32>
    %20 = arith.mulf %15, %19 : vector<2x4x1xf32>
    %21 = vector.broadcast %20 : vector<2x4x1xf32> to vector<2x4x128xf32>
    %22 = arith.mulf %21, %0 : vector<2x4x128xf32>
    %cst_8 = arith.constant dense<0.000000e+00> : vector<2x128xf32>
    %23 = vector.multi_reduction <add>, %22, %cst_8 [1] : vector<2x4x128xf32> to vector<2x128xf32>
    %c0_9 = arith.constant 0 : index
    %c0_10 = arith.constant 0 : index
    %24 = vector.load %arg4[%c0_9, %c0_10] : memref<2x128xf32, #tpu.memory_space<vmem>>, vector<2x128xf32>
    tpu.vector_store %arg4[%c0_9, %c0_10], %23 {strides = array<i32>} : memref<2x128xf32, #tpu.memory_space<vmem>>, vector<2x128xf32>,
    return
  }
  func.func @transform_0(%arg0: i32) -> (i32, i32, i32) {
    %c0_i32 = arith.constant 0 : i32
    %c0_i32_0 = arith.constant 0 : i32
    %c0_i32_1 = arith.constant 0 : i32
    %c0_i32_2 = arith.constant 0 : i32
    return %c0_i32, %c0_i32_0, %c0_i32_1 : i32, i32, i32
  }
  func.func @transform_1(%arg0: i32) -> (i32, i32) {
    %c0_i32 = arith.constant 0 : i32
    %c0_i32_0 = arith.constant 0 : i32
    %c0_i32_1 = arith.constant 0 : i32
    return %c0_i32, %c0_i32_0 : i32, i32
  }
  func.func @transform_2(%arg0: i32) -> (i32, i32) {
    %c0_i32 = arith.constant 0 : i32
    %c0_i32_0 = arith.constant 0 : i32
    %c0_i32_1 = arith.constant 0 : i32
    return %c0_i32, %c0_i32_0 : i32, i32
  }
  func.func @transform_3(%arg0: i32) -> (i32, i32) {
    %c0_i32 = arith.constant 0 : i32
    %c0_i32_0 = arith.constant 0 : i32
    %c0_i32_1 = arith.constant 0 : i32
    return %c0_i32, %c0_i32_0 : i32, i32
  }
}

</mosaic_0001>

<bundles_post_ra>
// kernel: cnn_lstm_attention_forward.6
= control target key start
LH: loop header
LB: loop body
LE: loop exit
PB: predicated region body
PF: predicated region fallthrough
CT: control target
= control target key end

     0   :  { %s2607_s12 = smov 0   ;;  %s4009_s0 = inlined_call_operand.vmem [shape: bf16[8,18,18,3], index: 0, kind: input, shape index: {}]   ;;  %s4010_s1 = inlined_call_operand.vmem [shape: f32[9,3,16], index: 1, kind: input, shape index: {}]   ;;  %s4011_s2 = inlined_call_operand.vmem [shape: f32[1,16], index: 2, kind: input, shape index: {}]   ;;  %s4012_s3 = inlined_call_operand.vmem [shape: bf16[8,256,16], index: 3, kind: output, shape index: {}]  }
   0x1 LB: > { %s2206_s13 = sadd.s32 4294967295, %s2585_s12   ;;  %p2210_p0 = scmp.ge.s32.totalorder %s2585_s12, 1  ;;  %s2585_s12 = sphi %s2607_s12, %s13_s12  }
   0x2   : > { %p137_p1 = scmp.lt.s32.totalorder %s2585_s12, 9 }
   0x4   : > { %p138_p2 = pnand %p2210_p0, %p137_p1 }
   0x6   : > { %141 = sbr.rel (%p138_p2) target bundleno = 736 (0x2e0), region = 32 }
   0xb   : > { %v2214_v0 = vld [vmem:[%s4010_s1 + $0x4] sm:$0x7]  ;;  %vm476_vm0 = vcmask 1042432   ;;  %p161_p3 = scmp.lt.s32.totalorder %s2206_s13, 7  ;;  %v2281_v1 = vld [vmem:[%s4010_s1 + $0x8] sm:$0x7] }
   0xc   : > { %2566 = vmatpush.msk.msra.mxu1 %vm476_vm0, %v2214_v0  ;;  %2567 = vmatpush.msk.msra.mxu2 %vm476_vm0, %v2214_v0  ;;  %v2315_v2 = vld [vmem:[%s4010_s1 + $0xc] sm:$0x7]  ;;  %v279_v3 = vld [vmem:[%s4010_s1] sm:$0x7]  ;;  %v2349_v4 = vld [vmem:[%s4010_s1 + $0x10] sm:$0x7] }
   0xd   : > { %s4327_s13 = smov (!%p161_p3, %s2206_s13), 7  ;;  %2568 = vmatpush.msk.msra.mxu3 %vm476_vm0, %v2214_v0  ;;  %2215 = vmatpush.msk.msra.mxu0 %vm476_vm0, %v2214_v0  ;;  %vm328_vm1 = vcmask 1046528   ;;  %vm411_vm2 = vcmask 23552   ;;  %vm773_vm3 = vcmask 1045504   ;;  %vm2118_vm4 = vcmask 125952  }
   0xe   : > { %2282 = vmatpush.msk.msrb.mxu2 %vm476_vm0, %v2281_v1  ;;  %2248 = vmatpush.msk.msrb.mxu1 %vm476_vm0, %v279_v3  ;;  %s2569_s24 = smul.u32 216, %s4327_s13  ;;  %s2521_s11 = sshll.u32 %s4327_s13, 7 }
   0xf   : > { %2316 = vmatpush.msk.msrb.mxu3 %vm476_vm0, %v2315_v2  ;;  %2350 = vmatpush.msk.msrb.mxu0 %vm476_vm0, %v2349_v4  ;;  %s3765_s16 = scalar_lea.vmem %s4012_s3, %s2521_s11 }
  0x10   : > { %s2644_s27 = scalar_lea.vmem %s4009_s0, %s2569_s24 }
  0x11   : > { %v2559_v5 = vld [vmem:[%s2644_s27 + $0x30] sm:$0xff]   ;;  %v2561_v6 = vld [vmem:[%s2644_s27 + $0x60] sm:$0xff]   ;;  %v2658_v12 = vld [vmem:[%s2644_s27 + $0x38] sm:$0x1] }
  0x12   : > { %v2563_v7 = vld [vmem:[%s2644_s27 + $0x90] sm:$0xff]   ;;  %v2649_v8 = vunpack.c.l.bf16 %v2559_v5  ;;  %v2651_v9 = vunpack.c.h.bf16 %v2559_v5  ;;  %v2653_v10 = vunpack.c.l.bf16 %v2561_v6  ;;  %v2655_v11 = vunpack.c.h.bf16 %v2561_v6  ;;  %v2661_v13 = vld [vmem:[%s2644_s27 + $0x68] sm:$0x1]  ;;  %v2523_v18 = vld [vmem:[%s2644_s27] sm:$0xff]  }
  0x13   : > { %v2663_v14 = vunpack.c.l.bf16 %v2563_v7  ;;  %v2665_v15 = vunpack.c.h.bf16 %v2563_v7  ;;  %v4018_v16 = vunpack.c.l.bf16 %v2658_v12  ;;  %v4016_v17 = vunpack.c.l.bf16 %v2661_v13  ;;  %v2675_v23 = vld [vmem:[%s2644_s27 + $0x98] sm:$0x1]  ;;  %v2690_v30 = vld [vmem:[%s2644_s27 + $0x8] sm:$0x1]  ;;  %v186_v37 = vld [vmem:[%s2644_s27 + $0x3c] sm:$0xff]  }
  0x14   : > { %4125 = vst [vmem:[#allocation2_spill] sm:$0xff] %v2651_v9  ;;  %v349_v19 = vrot.slane %v2649_v8, 1  ;;  %v350_v20 = vrot.slane %v2651_v9, 1  ;;  %v369_v21 = vrot.slane %v2653_v10, 1  ;;  %v370_v22 = vrot.slane %v2655_v11, 1  ;;  %v198_v38 = vld [vmem:[%s2644_s27 + $0x6c] sm:$0xff]  }
  0x15   : > { %4126 = vst [vmem:[#allocation3_spill] sm:$0xff] %v2653_v10  ;;  %v389_v24 = vrot.slane %v2663_v14, 1  ;;  %v390_v25 = vrot.slane %v2665_v15, 1  ;;  %v2685_v28 = vunpack.c.l.bf16 %v2523_v18  ;;  %v2687_v29 = vunpack.c.h.bf16 %v2523_v18  ;;  %v210_v42 = vld [vmem:[%s2644_s27 + $0x9c] sm:$0xff]   ;;  %v174_v53 = vld [vmem:[%s2644_s27 + $0xc] sm:$0xff]  }
  0x16   : > { %4127 = vst [vmem:[#allocation4_spill] sm:$0xff] %v2663_v14  ;;  %v2680_v26 = vsel %vm328_vm1, %v349_v19, %v350_v20  ;;  %v2683_v27 = vsel %vm328_vm1, %v369_v21, %v370_v22  ;;  %v4014_v32 = vunpack.c.l.bf16 %v2675_v23  ;;  %v352_v33 = vrot.slane %v4018_v16, 1  ;;  %v2752_v59 = vld [vmem:[%s2644_s27 + $0x44] sm:$0x1]  ;;  %v2761_v0 = vld [vmem:[%s2644_s27 + $0x74] sm:$0x1] }
  0x17   : > { %4128 = vst [vmem:[#allocation5_spill] sm:$0xff] %v2665_v15  ;;  %2224 = vmatmul.msk.f32.vlgmr.msra.gmra.mxu1 %vm411_vm2, %v2680_v26  ;;  %2232 = vmatmul.msk.f32.vlgmr.msra.gmra.mxu2 %vm411_vm2, %v2683_v27  ;;  %v2697_v31 = vsel %vm328_vm1, %v389_v24, %v390_v25  ;;  %v372_v34 = vrot.slane %v4016_v17, 1  ;;  %v329_v35 = vrot.slane %v2685_v28, 1  ;;  %v330_v36 = vrot.slane %v2687_v29, 1  ;;  %v2764_v1 = vld [vmem:[%s2644_s27 + $0xa4] sm:$0x1] }
  0x18   : > { %4129 = vst [vmem:[#allocation6_spill] sm:$0xff] %v2675_v23  ;;  %2240 = vmatmul.msk.f32.vlgmr.msra.gmra.mxu3 %vm411_vm2, %v2697_v31  ;;  %v392_v39 = vrot.slane %v4014_v32, 1  ;;  %v4020_v40 = vunpack.c.l.bf16 %v2690_v30  ;;  %v2716_v43 = vunpack.c.l.bf16 %v186_v37  ;;  %v2718_v44 = vunpack.c.h.bf16 %v186_v37  ;;  %v2855_v32 = vld [vmem:[%s2644_s27 + $0xb0] sm:$0x1] }
  0x19   : > { %4130 = vst [vmem:[#allocation7_spill] sm:$0xff] %v2683_v27  ;;  %v331_v41 = vsel %vm328_vm1, %v329_v35, %v330_v36  ;;  %v2720_v45 = vunpack.c.l.bf16 %v198_v38  ;;  %v2723_v46 = vsel %vm328_vm1, %v350_v20, %v352_v33  ;;  %v2726_v47 = vsel %vm328_vm1, %v370_v22, %v372_v34  ;;  %v2782_v20 = vld [vmem:[%s2644_s27 + $0x14] sm:$0x1]  ;;  %v2562_v33 = vld [vmem:[%s2644_s27 + $0x78] sm:$0xff]  }
  0x1a   : > { %4131 = vst [vmem:[#allocation8_spill] sm:$0xff] %v2697_v31  ;;  %2216 = vmatmul.msk.f32.vlgmr.msra.gmra.mxu0 %vm411_vm2, %v331_v41  ;;  %v2728_v48 = vunpack.c.h.bf16 %v198_v38  ;;  %v332_v49 = vrot.slane %v4020_v40, 1  ;;  %v2733_v50 = vsel %vm328_vm1, %v390_v25, %v392_v39  ;;  %v2735_v51 = vunpack.c.l.bf16 %v210_v42  ;;  %v2560_v25 = vld [vmem:[%s2644_s27 + $0x48] sm:$0xff]  }
  0x1b   : > { %4132 = vst [vmem:[#allocation9_spill] sm:$0xff] %v2716_v43  ;;  %v2737_v52 = vunpack.c.h.bf16 %v210_v42  ;;  %v354_v54 = vrot.slane %v2716_v43, 1  ;;  %v355_v55 = vrot.slane %v2718_v44, 1  ;;  %v374_v56 = vrot.slane %v2720_v45, 1  ;;  %v204_v40 = vld [vmem:[%s2644_s27 + $0x84] sm:$0xff]  }
  0x1c   : > { %4133 = vst [vmem:[#allocation10_spill] sm:$0xff] %v2718_v44  ;;  %v375_v57 = vrot.slane %v2728_v48, 1  ;;  %v333_v58 = vsel %vm328_vm1, %v330_v36, %v332_v49  ;;  %v2754_v60 = vunpack.c.l.bf16 %v174_v53  ;;  %v2756_v61 = vunpack.c.h.bf16 %v174_v53  ;;  %v2564_v36 = vld [vmem:[%s2644_s27 + $0xa8] sm:$0xff]  }
  0x1d   : > { %4134 = vst [vmem:[#allocation11_spill] sm:$0xff] %v2723_v46  ;;  %v394_v62 = vrot.slane %v2735_v51, 1  ;;  %v395_v63 = vrot.slane %v2737_v52, 1  ;;  %v2767_v2 = vsel %vm328_vm1, %v354_v54, %v355_v55  ;;  %v4017_v3 = vunpack.c.l.bf16 %v2752_v59  ;;  %v2959_v31 = vld [vmem:[%s2644_s27 + $0x8c] sm:$0x1] }
  0x1e   : > { %4135 = vst [vmem:[#allocation12_spill] sm:$0xff] %v2726_v47  ;;  %v2772_v4 = vsel %vm328_vm1, %v374_v56, %v375_v57  ;;  %v4015_v5 = vunpack.c.l.bf16 %v2761_v0  ;;  %v334_v6 = vrot.slane %v2754_v60, 1  ;;  %v335_v7 = vrot.slane %v2756_v61, 1 }
  0x1f   : > { %4136 = vst [vmem:[#allocation13_spill] sm:$0xff] %v2733_v50  ;;  %2225 = vmatmul.msk.f32.gmra.mxu1 %vm411_vm2, %v2723_v46  ;;  %2233 = vmatmul.msk.f32.gmra.mxu2 %vm411_vm2, %v2726_v47  ;;  %v2778_v18 = vsel %vm328_vm1, %v394_v62, %v395_v63  ;;  %v4013_v19 = vunpack.c.l.bf16 %v2764_v1  ;;  %v357_v21 = vrot.slane %v4017_v3, 1  ;;  %v4019_v34 = vunpack.c.l.bf16 %v2782_v20 }
  0x20   : > { %4137 = vst [vmem:[#allocation14_spill] sm:$0xff] %v2735_v51  ;;  %2241 = vmatmul.msk.f32.gmra.mxu3 %vm411_vm2, %v2733_v50  ;;  %v377_v22 = vrot.slane %v4015_v5, 1  ;;  %v2795_v24 = vsel %vm328_vm1, %v334_v6, %v335_v7  ;;  %v2805_v37 = vunpack.c.l.bf16 %v2560_v25  ;;  %v2807_v38 = vunpack.c.h.bf16 %v2560_v25  ;;  %v2417_v5 = vld [vmem:[%s4010_s1 + $0x18] sm:$0x7]  ;;  %v180_v50 = vld [vmem:[%s2644_s27 + $0x24] sm:$0xff]  }
  0x21   : > { %4138 = vst [vmem:[#allocation15_spill] sm:$0xff] %v2737_v52  ;;  %v397_v35 = vrot.slane %v4013_v19, 1  ;;  %v2809_v39 = vunpack.c.l.bf16 %v2562_v33  ;;  %v2812_v41 = vsel %vm328_vm1, %v355_v55, %v357_v21  ;;  %v2817_v49 = vunpack.c.h.bf16 %v2562_v33  ;;  %v2558_v55 = vld [vmem:[%s2644_s27 + $0x18] sm:$0xff]   ;;  %v2852_v19 = vld [vmem:[%s2644_s27 + $0x80] sm:$0x1]  ;;  %2418 = vmatpush.msk.msra.mxu2 %vm476_vm0, %v2417_v5 }
  0x22   : > { %4139 = vst [vmem:[#allocation16_spill] sm:$0xff] %v2764_v1  ;;  %2217 = vmatmul.msk.f32.gmra.mxu0 %vm411_vm2, %v333_v58  ;;  %v2815_v42 = vsel %vm328_vm1, %v375_v57, %v377_v22  ;;  %v337_v53 = vrot.slane %v4019_v34, 1  ;;  %v2824_v56 = vunpack.c.l.bf16 %v2564_v36  ;;  %v2826_v58 = vunpack.c.h.bf16 %v2564_v36  ;;  %v2843_v22 = vld [vmem:[%s2644_s27 + $0x50] sm:$0x1]  ;;  %v2874_v34 = vld [vmem:[%s2644_s27 + $0x20] sm:$0x1] }
  0x23   : > { %4140 = vst [vmem:[#allocation17_spill] sm:$0xff] %v2767_v2  ;;  %v2822_v54 = vsel %vm328_vm1, %v395_v63, %v397_v35  ;;  %v359_v57 = vrot.slane %v2805_v37, 1  ;;  %v360_v62 = vrot.slane %v2807_v38, 1  ;;  %v379_v63 = vrot.slane %v2809_v39, 1 }
  0x24   : > { %4141 = vst [vmem:[#allocation18_spill] sm:$0xff] %v2778_v18  ;;  %v380_v6 = vrot.slane %v2817_v49, 1  ;;  %v2840_v21 = vsel %vm328_vm1, %v335_v7, %v337_v53  ;;  %v2845_v25 = vunpack.c.l.bf16 %v2558_v55  ;;  %v2847_v33 = vunpack.c.h.bf16 %v2558_v55 }
  0x25   : > { %4142 = vst [vmem:[#allocation19_spill] sm:$0xff] %v2805_v37  ;;  %v399_v35 = vrot.slane %v2824_v56, 1  ;;  %v400_v36 = vrot.slane %v2826_v58, 1  ;;  %v2858_v7 = vsel %vm328_vm1, %v359_v57, %v360_v62  ;;  %v4030_v53 = vunpack.c.l.bf16 %v2843_v22 }
  0x26   : > { %4143 = vst [vmem:[#allocation20_spill] sm:$0xff] %v2807_v38  ;;  %v2864_v55 = vsel %vm328_vm1, %v379_v63, %v380_v6  ;;  %v339_v17 = vrot.slane %v2845_v25, 1  ;;  %v340_v3 = vrot.slane %v2847_v33, 1  ;;  %v192_v63 = vld [vmem:[%s2644_s27 + $0x54] sm:$0xff]   ;;  %v4154_v57 = vunpack.c.l.bf16 %v2852_v19 }
  0x27   : > { %2226 = vmatmul.msk.f32.gmra.mxu1 %vm411_vm2, %v2767_v2  ;;  %2234 = vmatmul.msk.f32.gmra.mxu2 %vm411_vm2, %v2772_v4  ;;  %4144 = vst [vmem:[#allocation21_spill] sm:$0xff] %v2812_v41  ;;  %v2870_v16 = vsel %vm328_vm1, %v399_v35, %v400_v36  ;;  %v362_v35 = vrot.slane %v4030_v53, 1  ;;  %v4155_v53 = vunpack.c.l.bf16 %v2855_v32  ;;  %v2909_v5 = vunpack.c.l.bf16 %v192_v63 }
  0x28   : > { %2242 = vmatmul.msk.f32.gmra.mxu3 %vm411_vm2, %v2778_v18  ;;  %4145 = vst [vmem:[#allocation22_spill] sm:$0xff] %v2817_v49  ;;  %v2892_v1 = vsel %vm328_vm1, %v339_v17, %v340_v3  ;;  %v216_v17 = vld [vmem:[%s2644_s27 + $0xb4] sm:$0xff]  }
  0x29   : > { %4146 = vst [vmem:[#allocation23_spill] sm:$0xff] %v2822_v54  ;;  %v402_v52 = vrot.slane %v4155_v53, 1  ;;  %v2916_v18 = vsel %vm328_vm1, %v360_v62, %v362_v35  ;;  %v2928_v51 = vunpack.c.l.bf16 %v216_v17  ;;  %v2949_v35 = vunpack.c.l.bf16 %v180_v50 }
  0x2a   : > { %2218 = vmatmul.msk.f32.gmra.mxu0 %vm411_vm2, %v2795_v24  ;;  %4147 = vst [vmem:[#allocation24_spill] sm:$0xff] %v2824_v56  ;;  %v2913_v56 = vunpack.c.l.bf16 %v204_v40 }
  0x2b   : > { %4148 = vst [vmem:[#allocation25_spill] sm:$0xff] %v2826_v58  ;;  %v382_v58 = vrot.slane %v4154_v57, 1  ;;  %v2911_v57 = vunpack.c.h.bf16 %v192_v63  ;;  %v2926_v23 = vsel %vm328_vm1, %v400_v36, %v402_v52  ;;  %v2930_v63 = vunpack.c.h.bf16 %v216_v17  ;;  %v2947_v36 = vld [vmem:[%s2644_s27 + $0x5c] sm:$0x1] }
  0x2c   : > { %4149 = vst [vmem:[#allocation26_spill] sm:$0xff] %v2852_v19  ;;  %v384_v52 = vrot.slane %v2913_v56, 1  ;;  %v2951_v17 = vunpack.c.h.bf16 %v180_v50  ;;  %v404_v15 = vrot.slane %v2928_v51, 1  ;;  %v4066_v50 = vunpack.c.l.bf16 %v2947_v36  ;;  %v2982_v19 = vld [vmem:[%s2644_s27 + $0x2c] sm:$0x1] }
  0x2d   : > { %4150 = vst [vmem:[#allocation27_spill] sm:$0xff] %v2855_v32  ;;  %v2919_v53 = vsel %vm328_vm1, %v380_v6, %v382_v58  ;;  %v365_v58 = vrot.slane %v2911_v57, 1 }
  0x2e   : > { %4151 = vst [vmem:[#allocation28_spill] sm:$0xff] %v2858_v7 }
  0x2f   : > { %2227 = vmatmul.msk.f32.gmra.mxu1 %vm411_vm2, %v2812_v41  ;;  %2235 = vmatmul.msk.f32.gmra.mxu2 %vm411_vm2, %v2815_v42  ;;  %4152 = vst [vmem:[#allocation29_spill] sm:$0xff] %v2864_v55 }
  0x30   : > { %2243 = vmatmul.msk.f32.gmra.mxu3 %vm411_vm2, %v2822_v54  ;;  %4153 = vst [vmem:[#allocation30_spill] sm:$0xff] %v2870_v16  ;;  %v2451_v54 = vld [vmem:[%s4010_s1 + $0x1c] sm:$0x7] }
  0x31   : > { %2452 = vmatpush.msk.msra.mxu3 %vm476_vm0, %v2451_v54  ;;  %4156 = vst [vmem:[#allocation31_spill] sm:$0xff] %v2909_v5  ;;  %v2921_v54 = vunpack.c.h.bf16 %v204_v40  ;;  %v364_v40 = vrot.slane %v2909_v5, 1 }
  0x32   : > { %2219 = vmatmul.msk.f32.gmra.mxu0 %vm411_vm2, %v2840_v21  ;;  %4157 = vst [vmem:[#allocation32_spill] sm:$0xff] %v2911_v57 }
  0x33   : > { %4158 = vst [vmem:[#allocation33_spill] sm:$0xff] %v2913_v56  ;;  %v385_v62 = vrot.slane %v2921_v54, 1 }
  0x34   : > { %4159 = vst [vmem:[#allocation34_spill] sm:$0xff] %v2916_v18 }
  0x35   : > { %4160 = vst [vmem:[#allocation35_spill] sm:$0xff] %v2919_v53  ;;  %v2972_v14 = vsel %vm328_vm1, %v384_v52, %v385_v62  ;;  %v367_v52 = vrot.slane %v4066_v50, 1 }
  0x36   : > { %4161 = vst [vmem:[#allocation36_spill] sm:$0xff] %v2921_v54  ;;  %v345_v54 = vrot.slane %v2951_v17, 1 }
  0x37   : > { %2228 = vmatmul.msk.f32.gmra.mxu1 %vm411_vm2, %v2858_v7  ;;  %2236 = vmatmul.msk.f32.gmra.mxu2 %vm411_vm2, %v2864_v55  ;;  %4163 = vst [vmem:[#allocation37_spill] sm:$0xff] %v2926_v23 }
  0x38   : > { %2244 = vmatmul.msk.f32.gmra.mxu3 %vm411_vm2, %v2870_v16  ;;  %v2383_v16 = vld [vmem:[%s4010_s1 + $0x14] sm:$0x7]  ;;  %4164 = vst [vmem:[#allocation38_spill] sm:$0xff] %v2928_v51  ;;  %v4067_v51 = vunpack.c.l.bf16 %v2959_v31 }
  0x39   : > { %2384 = vmatpush.msk.msra.mxu1 %vm476_vm0, %v2383_v16  ;;  %v4162_v16 = vunpack.c.l.bf16 %v2874_v34  ;;  %4165 = vst [vmem:[#allocation39_spill] sm:$0xff] %v2930_v63 }
  0x3a   : > { %2220 = vmatmul.msk.f32.gmra.mxu0 %vm411_vm2, %v2892_v1  ;;  %4167 = vst [vmem:[#allocation41_spill] sm:$0xff] %v2972_v14 }
  0x3b   : > { %v342_v32 = vrot.slane %v4162_v16, 1  ;;  %v2485_v16 = vld [vmem:[%s4010_s1 + $0x20] sm:$0x7] }
  0x3c   : > { %2486 = vmatpush.msk.msra.mxu0 %vm476_vm0, %v2485_v16 }
  0x3d   : > { %v2944_v6 = vsel %vm328_vm1, %v340_v3, %v342_v32  ;;  %v2963_v32 = vld [vmem:[%s2644_s27 + $0xbc] sm:$0x1]  ;;  %v2966_v3 = vsel %vm328_vm1, %v364_v40, %v365_v58  ;;  %v236_v40 = vunpack.c.l.bf16 %v2982_v19  ;;  %v774_v19 = vrot.slane %v2685_v28, 2 }
  0x3e   : > { %4166 = vst [vmem:[#allocation40_spill] sm:$0xff] %v2966_v3 }
  0x3f   : > { %2229 = vmatmul.msk.f32.gmra.mxu1 %vm411_vm2, %v2916_v18  ;;  %2237 = vmatmul.msk.f32.gmra.mxu2 %vm411_vm2, %v2919_v53  ;;  %v4169_v53 = vunpack.c.l.bf16 %v2963_v32  ;;  %v347_v50 = vrot.slane %v236_v40, 1 }
  0x40   : > { %2245 = vmatmul.msk.f32.gmra.mxu3 %vm411_vm2, %v2926_v23  ;;  %v405_v23 = vrot.slane %v2930_v63, 1  ;;  %v344_v63 = vrot.slane %v2949_v35, 1 }
  0x41   : > { %v407_v49 = vrot.slane %v4169_v53, 1  ;;  %v775_v53 = vrot.slane %v2687_v29, 2 }
  0x42   : > { %2221 = vmatmul.msk.f32.gmra.mxu0 %vm411_vm2, %v2944_v6  ;;  %v2978_v16 = vsel %vm328_vm1, %v404_v15, %v405_v23  ;;  %v387_v15 = vrot.slane %v4067_v51, 1  ;;  %v2995_v56 = vsel %vm328_vm1, %v344_v63, %v345_v54  ;;  %v3020_v63 = vsel %vm328_vm1, %v345_v54, %v347_v50 }
  0x43   : > { %4168 = vst [vmem:[#allocation42_spill] sm:$0xff] %v2978_v16  ;;  %v3009_v51 = vsel %vm328_vm1, %v405_v23, %v407_v49  ;;  %v776_v23 = vsel %vm773_vm3, %v774_v19, %v775_v53  ;;  %v4172_v49 = vunpack.c.l.bf16 %v2690_v30  ;;  %v789_v19 = vrot.slane %v2949_v35, 2 }
  0x47   : > { %2230 = vmatmul.msk.f32.gmra.mxu1 %vm411_vm2, %v2966_v3  ;;  %2238 = vmatmul.msk.f32.gmra.mxu2 %vm411_vm2, %v2972_v14  ;;  %v3003_v14 = vsel %vm328_vm1, %v365_v58, %v367_v52  ;;  %v777_v58 = vrot.slane %v4172_v49, 2 }
  0x48   : > { %2246 = vmatmul.msk.f32.gmra.mxu3 %vm411_vm2, %v2978_v16  ;;  %4170 = vst [vmem:[#allocation43_spill] sm:$0xff] %v3003_v14  ;;  %v3006_v16 = vsel %vm328_vm1, %v385_v62, %v387_v15  ;;  %v780_v62 = vrot.slane %v2756_v61, 2 }
  0x49   : > { %4171 = vst [vmem:[#allocation44_spill] sm:$0xff] %v3006_v16  ;;  %v778_v54 = vsel %vm773_vm3, %v775_v53, %v777_v58  ;;  %v794_v58 = vrot.slane %v2649_v8, 2 }
  0x4a   : > { %2222 = vmatmul.msk.f32.gmra.mxu0 %vm411_vm2, %v2995_v56 }
  0x4f   : > { %2231 = vmatmul.msk.f32.gmra.mxu1 %vm411_vm2, %v3003_v14  ;;  %2239 = vmatmul.msk.f32.gmra.mxu2 %vm411_vm2, %v3006_v16 }
  0x50   : > { %2247 = vmatmul.msk.f32.gmra.mxu3 %vm411_vm2, %v3009_v51 }
  0x52   : > { %2223 = vmatmul.msk.f32.gmra.mxu0 %vm411_vm2, %v3020_v63 }
  0x57   : > { %2249 = vmatmul.msk.f32.vlgmr.msrb.gmra.mxu1 %vm411_vm2, %v2685_v28  ;;  %2283 = vmatmul.msk.f32.vlgmr.msrb.gmra.mxu2 %vm411_vm2, %v776_v23  ;;  %v779_v28 = vrot.slane %v2754_v60, 2  ;;  %v792_v23 = vrot.slane %v236_v40, 2 }
  0x58   : > { %2317 = vmatmul.msk.f32.vlgmr.msrb.gmra.mxu3 %vm411_vm2, %v2754_v60 }
  0x59   : > { %v3045_v30 = vsel %vm773_vm3, %v779_v28, %v780_v62 }
  0x5a   : > { %2351 = vmatmul.msk.f32.vlgmr.msrb.gmra.mxu0 %vm411_vm2, %v2795_v24 }
  0x5f   : > { %2250 = vmatmul.msk.f32.gmra.mxu1 %vm411_vm2, %v2687_v29  ;;  %2284 = vmatmul.msk.f32.gmra.mxu2 %vm411_vm2, %v778_v54  ;;  %v4173_v29 = vunpack.c.l.bf16 %v2782_v20  ;;  %v785_v20 = vrot.slane %v2847_v33, 2  ;;  %v795_v54 = vrot.slane %v2651_v9, 2 }
  0x60   : > { %2318 = vmatmul.msk.f32.gmra.mxu3 %vm411_vm2, %v2756_v61 }
  0x61   : > { %v782_v24 = vrot.slane %v4173_v29, 2  ;;  %v3123_v28 = vsel %vm773_vm3, %v794_v58, %v795_v54  ;;  %v4175_v29 = vunpack.c.l.bf16 %v2658_v12 }
  0x62   : > { %2352 = vmatmul.msk.f32.gmra.mxu0 %vm411_vm2, %v2840_v21 }
  0x63   : > { %v3058_v21 = vsel %vm773_vm3, %v780_v62, %v782_v24  ;;  %v797_v24 = vrot.slane %v4175_v29, 2 }
  0x67   : > { %2251 = vmatmul.msk.f32.gmra.mxu1 %vm411_vm2, %v2754_v60  ;;  %2285 = vmatmul.msk.f32.gmra.mxu2 %vm411_vm2, %v3045_v30  ;;  %v784_v60 = vrot.slane %v2845_v25, 2 }
  0x68   : > { %2319 = vmatmul.msk.f32.gmra.mxu3 %vm411_vm2, %v2845_v25 }
  0x69   : > { %v3071_v50 = vsel %vm773_vm3, %v784_v60, %v785_v20 }
  0x6a   : > { %2353 = vmatmul.msk.f32.gmra.mxu0 %vm411_vm2, %v2892_v1 }
  0x6f   : > { %2252 = vmatmul.msk.f32.gmra.mxu1 %vm411_vm2, %v2756_v61  ;;  %2286 = vmatmul.msk.f32.gmra.mxu2 %vm411_vm2, %v3058_v21  ;;  %v4174_v61 = vunpack.c.l.bf16 %v2874_v34  ;;  %v790_v34 = vrot.slane %v2951_v17, 2 }
  0x70   : > { %2320 = vmatmul.msk.f32.gmra.mxu3 %vm411_vm2, %v2847_v33 }
  0x71   : > { %v787_v52 = vrot.slane %v4174_v61, 2  ;;  %v3097_v53 = vsel %vm773_vm3, %v789_v19, %v790_v34  ;;  %v3108_v49 = vsel %vm773_vm3, %v790_v34, %v792_v23  ;;  %v799_v19 = vrot.slane %v2716_v43, 2 }
  0x72   : > { %2354 = vmatmul.msk.f32.gmra.mxu0 %vm411_vm2, %v2944_v6  ;;  %v800_v34 = vrot.slane %v2718_v44, 2 }
  0x73   : > { %v3084_v15 = vsel %vm773_vm3, %v785_v20, %v787_v52  ;;  %v3144_v52 = vsel %vm773_vm3, %v795_v54, %v797_v24 }
  0x74   : > { %4177 = vst [vmem:[#allocation46_spill] sm:$0xff] %v3144_v52  ;;  %v3165_v29 = vsel %vm773_vm3, %v799_v19, %v800_v34 }
  0x75   : > { %4179 = vst [vmem:[#allocation48_spill] sm:$0xff] %v3165_v29 }
  0x77   : > { %2253 = vmatmul.msk.f32.gmra.mxu1 %vm411_vm2, %v2845_v25  ;;  %2287 = vmatmul.msk.f32.gmra.mxu2 %vm411_vm2, %v3071_v50 }
  0x78   : > { %2321 = vmatmul.msk.f32.gmra.mxu3 %vm411_vm2, %v2949_v35 }
  0x7a   : > { %2355 = vmatmul.msk.f32.gmra.mxu0 %vm411_vm2, %v2995_v56 }
  0x7f   : > { %2254 = vmatmul.msk.f32.gmra.mxu1 %vm411_vm2, %v2847_v33  ;;  %2288 = vmatmul.msk.f32.gmra.mxu2 %vm411_vm2, %v3084_v15 }
  0x80   : > { %2322 = vmatmul.msk.f32.gmra.mxu3 %vm411_vm2, %v2951_v17 }
  0x82   : > { %2356 = vmatmul.msk.f32.gmra.mxu0 %vm411_vm2, %v3020_v63 }
  0x87   : > { %2255 = vmatmul.msk.f32.gmra.mxu1 %vm411_vm2, %v2949_v35  ;;  %2289 = vmatmul.msk.f32.gmra.mxu2 %vm411_vm2, %v3097_v53 }
  0x88   : > { %2323 = vmatmul.msk.f32.gmra.mxu3 %vm411_vm2, %v2649_v8 }
  0x8a   : > { %2357 = vmatmul.msk.f32.gmra.mxu0 %vm411_vm2, %v2680_v26 }
  0x8f   : > { %2256 = vmatmul.msk.f32.gmra.mxu1 %vm411_vm2, %v2951_v17  ;;  %2290 = vmatmul.msk.f32.gmra.mxu2 %vm411_vm2, %v3108_v49 }
  0x90   : > { %2324 = vmatmul.msk.f32.gmra.mxu3 %vm411_vm2, %v2651_v9 }
  0x92   : > { %2358 = vmatmul.msk.f32.gmra.mxu0 %vm411_vm2, %v2723_v46 }
  0x94   : > { %v3120_v40 = vpop.f32.mrf.mxu1 }
  0x97   : > { %2257 = vmatmul.msk.f32.gmra.mxu1 %vm411_vm2, %v2649_v8  ;;  %2291 = vmatmul.msk.f32.gmra.mxu2 %vm411_vm2, %v3123_v28  ;;  %v3131_v62 = vpop.f32.mrf.mxu0 }
  0x98   : > { %2325 = vmatmul.msk.f32.gmra.mxu3 %vm411_vm2, %v2716_v43 }
  0x9a   : > { %v3135_v60 = vpop.f32.mrf.mxu2  ;;  %2359 = vmatmul.msk.f32.gmra.mxu0 %vm411_vm2, %v2767_v2 }
  0x9b   : > { %v3137_v20 = vpop.f32.mrf.mxu3 }
  0x9c   : > { %4176 = vst [vmem:[#allocation45_spill] sm:$0xff] %v3137_v20  ;;  %v3141_v61 = vpop.f32.mrf.mxu1 }
  0x9f   : > { %2258 = vmatmul.msk.f32.gmra.mxu1 %vm411_vm2, %v2651_v9  ;;  %2292 = vmatmul.msk.f32.gmra.mxu2 %vm411_vm2, %v3144_v52  ;;  %v3152_v12 = vpop.f32.mrf.mxu0 }
  0xa0   : > { %2326 = vmatmul.msk.f32.gmra.mxu3 %vm411_vm2, %v2718_v44 }
  0xa2   : > { %v3156_v23 = vpop.f32.mrf.mxu2  ;;  %2360 = vmatmul.msk.f32.gmra.mxu0 %vm411_vm2, %v2812_v41 }
  0xa3   : > { %v3158_v58 = vpop.f32.mrf.mxu3 }
  0xa4   : > { %4178 = vst [vmem:[#allocation47_spill] sm:$0xff] %v3158_v58  ;;  %v3162_v54 = vpop.f32.mrf.mxu1  ;;  %v4180_v58 = vunpack.c.l.bf16 %v2752_v59 }
  0xa6   : > { %v802_v20 = vrot.slane %v4180_v58, 2  ;;  %v804_v58 = vrot.slane %v2805_v37, 2 }
  0xa7   : > { %2259 = vmatmul.msk.f32.gmra.mxu1 %vm411_vm2, %v2716_v43  ;;  %2293 = vmatmul.msk.f32.gmra.mxu2 %vm411_vm2, %v3165_v29  ;;  %v3173_v24 = vpop.f32.mrf.mxu0 }
  0xa8   : > { %2327 = vmatmul.msk.f32.gmra.mxu3 %vm411_vm2, %v2805_v37  ;;  %v3186_v43 = vsel %vm773_vm3, %v800_v34, %v802_v20 }
  0xa9   : > { %4182 = vst [vmem:[#allocation50_spill] sm:$0xff] %v3186_v43 }
  0xaa   : > { %v3177_v41 = vpop.f32.mrf.mxu2  ;;  %2361 = vmatmul.msk.f32.gmra.mxu0 %vm411_vm2, %v2858_v7 }
  0xab   : > { %v3179_v2 = vpop.f32.mrf.mxu3 }
  0xac   : > { %4181 = vst [vmem:[#allocation49_spill] sm:$0xff] %v3179_v2  ;;  %v3183_v19 = vpop.f32.mrf.mxu1  ;;  %v805_v2 = vrot.slane %v2807_v38, 2 }
  0xae   : > { %v3207_v34 = vsel %vm773_vm3, %v804_v58, %v805_v2 }
  0xaf   : > { %2260 = vmatmul.msk.f32.gmra.mxu1 %vm411_vm2, %v2718_v44  ;;  %2294 = vmatmul.msk.f32.gmra.mxu2 %vm411_vm2, %v3186_v43  ;;  %v3194_v59 = vpop.f32.mrf.mxu0  ;;  %4184 = vst [vmem:[#allocation52_spill] sm:$0xff] %v3207_v34 }
  0xb0   : > { %2328 = vmatmul.msk.f32.gmra.mxu3 %vm411_vm2, %v2807_v38 }
  0xb2   : > { %v3198_v7 = vpop.f32.mrf.mxu2  ;;  %2362 = vmatmul.msk.f32.gmra.mxu0 %vm411_vm2, %v2916_v18 }
  0xb3   : > { %v3200_v29 = vpop.f32.mrf.mxu3 }
  0xb4   : > { %4183 = vst [vmem:[#allocation51_spill] sm:$0xff] %v3200_v29  ;;  %v3204_v20 = vpop.f32.mrf.mxu1  ;;  %v4185_v29 = vunpack.c.l.bf16 %v2843_v22 }
  0xb6   : > { %v807_v44 = vrot.slane %v4185_v29, 2  ;;  %v809_v29 = vrot.slane %v2909_v5, 2 }
  0xb7   : > { %2261 = vmatmul.msk.f32.gmra.mxu1 %vm411_vm2, %v2805_v37  ;;  %2295 = vmatmul.msk.f32.gmra.mxu2 %vm411_vm2, %v3207_v34  ;;  %v3215_v43 = vpop.f32.mrf.mxu0 }
  0xb8   : > { %2329 = vmatmul.msk.f32.gmra.mxu3 %vm411_vm2, %v2909_v5  ;;  %v3228_v37 = vsel %vm773_vm3, %v805_v2, %v807_v44 }
  0xb9   : > { %4187 = vst [vmem:[#allocation54_spill] sm:$0xff] %v3228_v37 }
  0xba   : > { %v3219_v18 = vpop.f32.mrf.mxu2  ;;  %2363 = vmatmul.msk.f32.gmra.mxu0 %vm411_vm2, %v2966_v3 }
  0xbb   : > { %v3221_v52 = vpop.f32.mrf.mxu3 }
  0xbc   : > { %4186 = vst [vmem:[#allocation53_spill] sm:$0xff] %v3221_v52  ;;  %v3225_v58 = vpop.f32.mrf.mxu1  ;;  %v810_v52 = vrot.slane %v2911_v57, 2 }
  0xbe   : > { %v3249_v2 = vsel %vm773_vm3, %v809_v29, %v810_v52 }
  0xbf   : > { %2262 = vmatmul.msk.f32.gmra.mxu1 %vm411_vm2, %v2807_v38  ;;  %2296 = vmatmul.msk.f32.gmra.mxu2 %vm411_vm2, %v3228_v37  ;;  %v3236_v22 = vpop.f32.mrf.mxu0  ;;  %4190 = vst [vmem:[#allocation57_spill] sm:$0xff] %v3249_v2 }
  0xc0   : > { %2330 = vmatmul.msk.f32.gmra.mxu3 %vm411_vm2, %v2911_v57 }
  0xc2   : > { %v3240_v3 = vpop.f32.mrf.mxu2  ;;  %2364 = vmatmul.msk.f32.gmra.mxu0 %vm411_vm2, %v3003_v14 }
  0xc3   : > { %4188 = vst [vmem:[#allocation55_spill] sm:$0xff] %v3240_v3  ;;  %v3242_v34 = vpop.f32.mrf.mxu3 }
  0xc4   : > { %4189 = vst [vmem:[#allocation56_spill] sm:$0xff] %v3242_v34  ;;  %v3246_v44 = vpop.f32.mrf.mxu1  ;;  %v4191_v34 = vunpack.c.l.bf16 %v2947_v36 }
  0xc6   : > { %v812_v38 = vrot.slane %v4191_v34, 2  ;;  %v814_v34 = vrot.slane %v2653_v10, 2 }
  0xc7   : > { %2263 = vmatmul.msk.f32.gmra.mxu1 %vm411_vm2, %v2909_v5  ;;  %2297 = vmatmul.msk.f32.gmra.mxu2 %vm411_vm2, %v3249_v2  ;;  %v3257_v37 = vpop.f32.mrf.mxu0 }
  0xc8   : > { %2331 = vmatmul.msk.f32.gmra.mxu3 %vm411_vm2, %v2653_v10  ;;  %v3270_v5 = vsel %vm773_vm3, %v810_v52, %v812_v38 }
  0xc9   : > { %4194 = vst [vmem:[#allocation60_spill] sm:$0xff] %v3270_v5 }
  0xca   : > { %v3261_v14 = vpop.f32.mrf.mxu2  ;;  %2365 = vmatmul.msk.f32.gmra.mxu0 %vm411_vm2, %v2683_v27 }
  0xcb   : > { %4192 = vst [vmem:[#allocation58_spill] sm:$0xff] %v3261_v14  ;;  %v3263_v3 = vpop.f32.mrf.mxu3 }
  0xcc   : > { %4193 = vst [vmem:[#allocation59_spill] sm:$0xff] %v3263_v3  ;;  %v3267_v29 = vpop.f32.mrf.mxu1  ;;  %v815_v3 = vrot.slane %v2655_v11, 2 }
  0xce   : > { %v3289_v52 = vsel %vm773_vm3, %v814_v34, %v815_v3 }
  0xcf   : > { %2264 = vmatmul.msk.f32.gmra.mxu1 %vm411_vm2, %v2911_v57  ;;  %2298 = vmatmul.msk.f32.gmra.mxu2 %vm411_vm2, %v3270_v5  ;;  %v3278_v36 = vpop.f32.mrf.mxu0  ;;  %4197 = vst [vmem:[#allocation63_spill] sm:$0xff] %v3289_v52  ;;  %v4198_v57 = vunpack.c.l.bf16 %v2661_v13 }
  0xd0   : > { %2332 = vmatmul.msk.f32.gmra.mxu3 %vm411_vm2, %v2655_v11 }
  0xd2   : > { %v3282_v27 = vpop.f32.mrf.mxu2  ;;  %2366 = vmatmul.msk.f32.gmra.mxu0 %vm411_vm2, %v2726_v47 }
  0xd3   : > { %4195 = vst [vmem:[#allocation61_spill] sm:$0xff] %v3282_v27  ;;  %v3284_v2 = vpop.f32.mrf.mxu3 }
  0xd4   : > { %4196 = vst [vmem:[#allocation62_spill] sm:$0xff] %v3284_v2  ;;  %v677_v38 = vpop.f32.mrf.mxu1  ;;  %v817_v2 = vrot.slane %v4198_v57, 2 }
  0xd5   : > { %v678_v27 = vadd.f32 %v677_v38, %v3131_v62 }
  0xd7   : > { %2265 = vmatmul.msk.f32.gmra.mxu1 %vm411_vm2, %v2653_v10  ;;  %2299 = vmatmul.msk.f32.gmra.mxu2 %vm411_vm2, %v3289_v52  ;;  %v1256_v5 = vpop.f32.mrf.mxu0  ;;  %v3303_v10 = vsel %vm773_vm3, %v815_v3, %v817_v2 }
  0xd8   : > { %2333 = vmatmul.msk.f32.gmra.mxu3 %vm411_vm2, %v2720_v45 }
  0xda   : > { %v940_v47 = vpop.f32.mrf.mxu2  ;;  %2367 = vmatmul.msk.f32.gmra.mxu0 %vm411_vm2, %v2772_v4 }
  0xdb   : > { %v1036_v14 = vadd.f32 %v940_v47, %v678_v27  ;;  %v1096_v46 = vpop.f32.mrf.mxu3  ;;  %v819_v27 = vrot.slane %v2720_v45, 2  ;;  %v820_v47 = vrot.slane %v2728_v48, 2 }
  0xdc   : > { %v680_v34 = vpop.f32.mrf.mxu1 }
  0xdd   : > { %v1192_v52 = vadd.f32 %v1096_v46, %v1036_v14  ;;  %v681_v57 = vadd.f32 %v680_v34, %v3152_v12  ;;  %v3319_v62 = vsel %vm773_vm3, %v819_v27, %v820_v47 }
  0xdf   : > { %v3305_v9 = vadd.f32 %v1256_v5, %v1192_v52  ;;  %2266 = vmatmul.msk.f32.gmra.mxu1 %vm411_vm2, %v2655_v11  ;;  %2300 = vmatmul.msk.f32.gmra.mxu2 %vm411_vm2, %v3303_v10  ;;  %v1259_v13 = vpop.f32.mrf.mxu0  ;;  %v4201_v52 = vunpack.c.l.bf16 %v2761_v0  ;;  %v4203_v0 = vld [vmem:[#allocation22_spill] sm:$0xff] }
  0xe0   : > { %2334 = vmatmul.msk.f32.gmra.mxu3 %vm411_vm2, %v2728_v48 }
  0xe1   : > { %4199 = vst [vmem:[#allocation64_spill] sm:$0xff] %v3305_v9  ;;  %v822_v34 = vrot.slane %v4201_v52, 2  ;;  %v825_v52 = vrot.slane %v4203_v0, 2 }
  0xe2   : > { %v943_v3 = vpop.f32.mrf.mxu2  ;;  %2368 = vmatmul.msk.f32.gmra.mxu0 %vm411_vm2, %v2815_v42 }
  0xe3   : > { %v1037_v14 = vadd.f32 %v943_v3, %v681_v57  ;;  %v1099_v46 = vpop.f32.mrf.mxu3 }
  0xe4   : > { %v683_v5 = vpop.f32.mrf.mxu1 }
  0xe5   : > { %v1193_v2 = vadd.f32 %v1099_v46, %v1037_v14  ;;  %v684_v57 = vadd.f32 %v683_v5, %v3173_v24  ;;  %v3335_v46 = vsel %vm773_vm3, %v820_v47, %v822_v34  ;;  %v824_v5 = vrot.slane %v2809_v39, 2 }
  0xe7   : > { %v3321_v38 = vadd.f32 %v1259_v13, %v1193_v2  ;;  %2267 = vmatmul.msk.f32.gmra.mxu1 %vm411_vm2, %v2720_v45  ;;  %2301 = vmatmul.msk.f32.gmra.mxu2 %vm411_vm2, %v3319_v62  ;;  %v1262_v12 = vpop.f32.mrf.mxu0 }
  0xe8   : > { %2335 = vmatmul.msk.f32.gmra.mxu3 %vm411_vm2, %v2809_v39 }
  0xe9   : > { %4200 = vst [vmem:[#allocation65_spill] sm:$0xff] %v3321_v38 }
  0xea   : > { %v946_v27 = vpop.f32.mrf.mxu2  ;;  %2369 = vmatmul.msk.f32.gmra.mxu0 %vm411_vm2, %v2864_v55 }
  0xeb   : > { %v1038_v3 = vadd.f32 %v946_v27, %v684_v57  ;;  %v1102_v14 = vpop.f32.mrf.mxu3  ;;  %v4204_v27 = vld [vmem:[#allocation35_spill] sm:$0xff] }
  0xec   : > { %v686_v13 = vpop.f32.mrf.mxu1 }
  0xed   : > { %v1194_v2 = vadd.f32 %v1102_v14, %v1038_v3  ;;  %v687_v47 = vadd.f32 %v686_v13, %v3194_v59  ;;  %v3351_v14 = vsel %vm773_vm3, %v824_v5, %v825_v52  ;;  %v4207_v59 = vld [vmem:[#allocation33_spill] sm:$0xff] }
  0xee   : > { %4205 = vst [vmem:[#allocation22_spill] sm:$0xff] %v3351_v14 }
  0xef   : > { %v3337_v38 = vadd.f32 %v1262_v12, %v1194_v2  ;;  %2268 = vmatmul.msk.f32.gmra.mxu1 %vm411_vm2, %v2728_v48  ;;  %2302 = vmatmul.msk.f32.gmra.mxu2 %vm411_vm2, %v3335_v46  ;;  %v1265_v24 = vpop.f32.mrf.mxu0 }
  0xf0   : > { %2336 = vmatmul.msk.f32.gmra.mxu3 %vm411_vm2, %v4203_v0 }
  0xf1   : > { %4202 = vst [vmem:[#allocation66_spill] sm:$0xff] %v3337_v38 }
  0xf2   : > { %v949_v34 = vpop.f32.mrf.mxu2  ;;  %2370 = vmatmul.msk.f32.gmra.mxu0 %vm411_vm2, %v4204_v27 }
  0xf3   : > { %v1039_v57 = vadd.f32 %v949_v34, %v687_v47  ;;  %v1105_v12 = vpop.f32.mrf.mxu3  ;;  %v4208_v47 = vld [vmem:[#allocation26_spill] sm:$0xff] }
  0xf4   : > { %v689_v3 = vpop.f32.mrf.mxu1  ;;  %v4209_v34 = vunpack.c.l.bf16 %v4208_v47 }
  0xf5   : > { %v1195_v2 = vadd.f32 %v1105_v12, %v1039_v57  ;;  %v690_v9 = vadd.f32 %v689_v3, %v3215_v43  ;;  %v4212_v43 = vld [vmem:[#allocation36_spill] sm:$0xff]  ;;  %v829_v3 = vrot.slane %v4207_v59, 2 }
  0xf6   : > { %v827_v27 = vrot.slane %v4209_v34, 2  ;;  %v830_v47 = vrot.slane %v4212_v43, 2 }
  0xf7   : > { %v3353_v38 = vadd.f32 %v1265_v24, %v1195_v2  ;;  %2269 = vmatmul.msk.f32.gmra.mxu1 %vm411_vm2, %v2809_v39  ;;  %2303 = vmatmul.msk.f32.gmra.mxu2 %vm411_vm2, %v3351_v14  ;;  %v1268_v13 = vpop.f32.mrf.mxu0  ;;  %v4210_v24 = vld [vmem:[#allocation41_spill] sm:$0xff] }
  0xf8   : > { %2337 = vmatmul.msk.f32.gmra.mxu3 %vm411_vm2, %v4207_v59  ;;  %v3367_v2 = vsel %vm773_vm3, %v825_v52, %v827_v27  ;;  %v3383_v34 = vsel %vm773_vm3, %v829_v3, %v830_v47 }
  0xf9   : > { %4206 = vst [vmem:[#allocation67_spill] sm:$0xff] %v3353_v38 }
  0xfa   : > { %v952_v5 = vpop.f32.mrf.mxu2  ;;  %2371 = vmatmul.msk.f32.gmra.mxu0 %vm411_vm2, %v4210_v24  ;;  %4213 = vst [vmem:[#allocation26_spill] sm:$0xff] %v3383_v34 }
  0xfb   : > { %v1040_v55 = vadd.f32 %v952_v5, %v690_v9  ;;  %v1108_v57 = vpop.f32.mrf.mxu3 }
  0xfc   : > { %v692_v12 = vpop.f32.mrf.mxu1 }
  0xfd   : > { %v1196_v38 = vadd.f32 %v1108_v57, %v1040_v55  ;;  %v693_v52 = vadd.f32 %v692_v12, %v3236_v22  ;;  %v4215_v22 = vld [vmem:[#allocation4_spill] sm:$0xff] }
  0xff   : > { %v3369_v14 = vadd.f32 %v1268_v13, %v1196_v38  ;;  %2270 = vmatmul.msk.f32.gmra.mxu1 %vm411_vm2, %v4203_v0  ;;  %2304 = vmatmul.msk.f32.gmra.mxu2 %vm411_vm2, %v3367_v2  ;;  %v1271_v9 = vpop.f32.mrf.mxu0 }
 0x100   : > { %2338 = vmatmul.msk.f32.gmra.mxu3 %vm411_vm2, %v4212_v43 }
 0x101   : > { %4211 = vst [vmem:[#allocation33_spill] sm:$0xff] %v3369_v14 }
 0x102   : > { %v955_v27 = vpop.f32.mrf.mxu2  ;;  %2372 = vmatmul.msk.f32.gmra.mxu0 %vm411_vm2, %v3006_v16 }
 0x103   : > { %v1041_v55 = vadd.f32 %v955_v27, %v693_v52  ;;  %v1111_v38 = vpop.f32.mrf.mxu3  ;;  %v4216_v52 = vunpack.c.l.bf16 %v2959_v31  ;;  %v4220_v31 = vld [vmem:[#allocation5_spill] sm:$0xff] }
 0x104   : > { %v695_v13 = vpop.f32.mrf.mxu1 }
 0x105   : > { %v1197_v5 = vadd.f32 %v1111_v38, %v1041_v55  ;;  %v832_v27 = vrot.slane %v4216_v52, 2  ;;  %v696_v14 = vadd.f32 %v695_v13, %v3257_v37  ;;  %v835_v13 = vrot.slane %v4220_v31, 2 }
 0x107   : > { %v3385_v57 = vadd.f32 %v1271_v9, %v1197_v5  ;;  %2271 = vmatmul.msk.f32.gmra.mxu1 %vm411_vm2, %v4207_v59  ;;  %2305 = vmatmul.msk.f32.gmra.mxu2 %vm411_vm2, %v3383_v34  ;;  %v1274_v12 = vpop.f32.mrf.mxu0  ;;  %v4217_v9 = vld [vmem:[#allocation8_spill] sm:$0xff]  ;;  %v3399_v5 = vsel %vm773_vm3, %v830_v47, %v832_v27 }
 0x108   : > { %2339 = vmatmul.msk.f32.gmra.mxu3 %vm411_vm2, %v4215_v22  ;;  %4218 = vst [vmem:[#allocation36_spill] sm:$0xff] %v3399_v5 }
 0x109   : > { %4214 = vst [vmem:[#allocation41_spill] sm:$0xff] %v3385_v57 }
 0x10a   : > { %v958_v3 = vpop.f32.mrf.mxu2  ;;  %2373 = vmatmul.msk.f32.gmra.mxu0 %vm411_vm2, %v4217_v9 }
 0x10b   : > { %v1042_v16 = vadd.f32 %v958_v3, %v696_v14  ;;  %v1114_v55 = vpop.f32.mrf.mxu3  ;;  %v834_v14 = vrot.slane %v4215_v22, 2 }
 0x10c   : > { %v698_v38 = vpop.f32.mrf.mxu1 }
 0x10d   : > { %v1198_v57 = vadd.f32 %v1114_v55, %v1042_v16  ;;  %v699_v47 = vadd.f32 %v698_v38, %v3278_v36  ;;  %v3415_v3 = vsel %vm773_vm3, %v834_v14, %v835_v13  ;;  %v4224_v36 = vld [vmem:[#allocation14_spill] sm:$0xff] }
 0x10e   : > { %4222 = vst [vmem:[#allocation5_spill] sm:$0xff] %v3415_v3 }
 0x10f   : > { %v3401_v34 = vadd.f32 %v1274_v12, %v1198_v57  ;;  %2272 = vmatmul.msk.f32.gmra.mxu1 %vm411_vm2, %v4212_v43  ;;  %2306 = vmatmul.msk.f32.gmra.mxu2 %vm411_vm2, %v3399_v5  ;;  %v1277_v37 = vpop.f32.mrf.mxu0  ;;  %v4221_v12 = vld [vmem:[#allocation13_spill] sm:$0xff] }
 0x110   : > { %2340 = vmatmul.msk.f32.gmra.mxu3 %vm411_vm2, %v4220_v31 }
 0x111   : > { %4219 = vst [vmem:[#allocation4_spill] sm:$0xff] %v3401_v34 }
 0x112   : > { %v961_v52 = vpop.f32.mrf.mxu2  ;;  %2374 = vmatmul.msk.f32.gmra.mxu0 %vm411_vm2, %v4221_v12 }
 0x113   : > { %v1043_v16 = vadd.f32 %v961_v52, %v699_v47  ;;  %v1117_v57 = vpop.f32.mrf.mxu3  ;;  %v4225_v47 = vld [vmem:[#allocation6_spill] sm:$0xff] }
 0x114   : > { %v701_v27 = vpop.f32.mrf.mxu1  ;;  %v4226_v52 = vunpack.c.l.bf16 %v4225_v47 }
 0x115   : > { %v1199_v55 = vadd.f32 %v1117_v57, %v1043_v16  ;;  %v702_v9 = vadd.f32 %v701_v27, %v3120_v40  ;;  %v4230_v40 = vld [vmem:[#allocation15_spill] sm:$0xff]  ;;  %v839_v27 = vrot.slane %v4224_v36, 2 }
 0x116   : > { %v837_v12 = vrot.slane %v4226_v52, 2  ;;  %v840_v47 = vrot.slane %v4230_v40, 2 }
 0x117   : > { %v3417_v34 = vadd.f32 %v1277_v37, %v1199_v55  ;;  %2273 = vmatmul.msk.f32.gmra.mxu1 %vm411_vm2, %v4215_v22  ;;  %2307 = vmatmul.msk.f32.gmra.mxu2 %vm411_vm2, %v3415_v3  ;;  %v1280_v38 = vpop.f32.mrf.mxu0  ;;  %v4227_v37 = vld [vmem:[#allocation18_spill] sm:$0xff] }
 0x118   : > { %2341 = vmatmul.msk.f32.gmra.mxu3 %vm411_vm2, %v4224_v36  ;;  %v3431_v55 = vsel %vm773_vm3, %v835_v13, %v837_v12 }
 0x119   : > { %4223 = vst [vmem:[#allocation68_spill] sm:$0xff] %v3417_v34 }
 0x11a   : > { %v964_v14 = vpop.f32.mrf.mxu2  ;;  %2375 = vmatmul.msk.f32.gmra.mxu0 %vm411_vm2, %v4227_v37  ;;  %4228 = vst [vmem:[#allocation14_spill] sm:$0xff] %v3431_v55 }
 0x11b   : > { %v1044_v5 = vadd.f32 %v964_v14, %v702_v9  ;;  %v1120_v16 = vpop.f32.mrf.mxu3  ;;  %v3447_v14 = vsel %vm773_vm3, %v839_v27, %v840_v47 }
 0x11c   : > { %v704_v57 = vpop.f32.mrf.mxu1  ;;  %4232 = vst [vmem:[#allocation15_spill] sm:$0xff] %v3447_v14 }
 0x11d   : > { %v1200_v34 = vadd.f32 %v1120_v16, %v1044_v5  ;;  %v705_v13 = vadd.f32 %v704_v57, %v3141_v61  ;;  %v4234_v61 = vld [vmem:[#allocation24_spill] sm:$0xff] }
 0x11f   : > { %v3433_v3 = vadd.f32 %v1280_v38, %v1200_v34  ;;  %2274 = vmatmul.msk.f32.gmra.mxu1 %vm411_vm2, %v4220_v31  ;;  %2308 = vmatmul.msk.f32.gmra.mxu2 %vm411_vm2, %v3431_v55  ;;  %v1283_v9 = vpop.f32.mrf.mxu0  ;;  %v4231_v38 = vld [vmem:[#allocation23_spill] sm:$0xff] }
 0x120   : > { %2342 = vmatmul.msk.f32.gmra.mxu3 %vm411_vm2, %v4230_v40 }
 0x121   : > { %4229 = vst [vmem:[#allocation6_spill] sm:$0xff] %v3433_v3 }
 0x122   : > { %v967_v12 = vpop.f32.mrf.mxu2  ;;  %2376 = vmatmul.msk.f32.gmra.mxu0 %vm411_vm2, %v4231_v38 }
 0x123   : > { %v1045_v5 = vadd.f32 %v967_v12, %v705_v13  ;;  %v1123_v34 = vpop.f32.mrf.mxu3  ;;  %v4235_v13 = vld [vmem:[#allocation16_spill] sm:$0xff] }
 0x124   : > { %v707_v52 = vpop.f32.mrf.mxu1  ;;  %v4236_v12 = vunpack.c.l.bf16 %v4235_v13 }
 0x125   : > { %v1201_v16 = vadd.f32 %v1123_v34, %v1045_v5  ;;  %v708_v37 = vadd.f32 %v707_v52, %v3162_v54  ;;  %v4240_v54 = vld [vmem:[#allocation25_spill] sm:$0xff]  ;;  %v844_v52 = vrot.slane %v4234_v61, 2 }
 0x126   : > { %v842_v38 = vrot.slane %v4236_v12, 2  ;;  %v845_v13 = vrot.slane %v4240_v54, 2 }
 0x127   : > { %v3449_v3 = vadd.f32 %v1283_v9, %v1201_v16  ;;  %2275 = vmatmul.msk.f32.gmra.mxu1 %vm411_vm2, %v4224_v36  ;;  %2309 = vmatmul.msk.f32.gmra.mxu2 %vm411_vm2, %v3447_v14  ;;  %v1286_v57 = vpop.f32.mrf.mxu0  ;;  %v4237_v9 = vld [vmem:[#allocation30_spill] sm:$0xff] }
 0x128   : > { %2343 = vmatmul.msk.f32.gmra.mxu3 %vm411_vm2, %v4234_v61  ;;  %v3463_v16 = vsel %vm773_vm3, %v840_v47, %v842_v38 }
 0x129   : > { %4233 = vst [vmem:[#allocation69_spill] sm:$0xff] %v3449_v3 }
 0x12a   : > { %v970_v27 = vpop.f32.mrf.mxu2  ;;  %2377 = vmatmul.msk.f32.gmra.mxu0 %vm411_vm2, %v4237_v9  ;;  %4238 = vst [vmem:[#allocation16_spill] sm:$0xff] %v3463_v16 }
 0x12b   : > { %v1046_v55 = vadd.f32 %v970_v27, %v708_v37  ;;  %v1126_v5 = vpop.f32.mrf.mxu3  ;;  %v3479_v27 = vsel %vm773_vm3, %v844_v52, %v845_v13 }
 0x12c   : > { %v710_v34 = vpop.f32.mrf.mxu1  ;;  %4242 = vst [vmem:[#allocation71_spill] sm:$0xff] %v3479_v27 }
 0x12d   : > { %v1202_v3 = vadd.f32 %v1126_v5, %v1046_v55  ;;  %v711_v47 = vadd.f32 %v710_v34, %v3183_v19  ;;  %v4244_v19 = vld [vmem:[#allocation38_spill] sm:$0xff] }
 0x12f   : > { %v3465_v14 = vadd.f32 %v1286_v57, %v1202_v3  ;;  %2276 = vmatmul.msk.f32.gmra.mxu1 %vm411_vm2, %v4230_v40  ;;  %2310 = vmatmul.msk.f32.gmra.mxu2 %vm411_vm2, %v3463_v16  ;;  %v1289_v37 = vpop.f32.mrf.mxu0  ;;  %v4241_v57 = vld [vmem:[#allocation37_spill] sm:$0xff]  ;;  %v3521_v16 = vld [vmem:[%s2644_s27 + $0xc8] sm:$0x1] }
 0x130   : > { %2344 = vmatmul.msk.f32.gmra.mxu3 %vm411_vm2, %v4240_v54 }
 0x131   : > { %4239 = vst [vmem:[#allocation70_spill] sm:$0xff] %v3465_v14 }
 0x132   : > { %v973_v38 = vpop.f32.mrf.mxu2  ;;  %2378 = vmatmul.msk.f32.gmra.mxu0 %vm411_vm2, %v4241_v57 }
 0x133   : > { %v1047_v55 = vadd.f32 %v973_v38, %v711_v47  ;;  %v1129_v3 = vpop.f32.mrf.mxu3  ;;  %v4245_v47 = vld [vmem:[#allocation27_spill] sm:$0xff] }
 0x134   : > { %v713_v12 = vpop.f32.mrf.mxu1  ;;  %v4246_v38 = vunpack.c.l.bf16 %v4245_v47  ;;  %v849_v47 = vrot.slane %v4244_v19, 2 }
 0x135   : > { %v1203_v5 = vadd.f32 %v1129_v3, %v1047_v55  ;;  %v714_v52 = vadd.f32 %v713_v12, %v3204_v20  ;;  %v4247_v3 = vld [vmem:[#allocation42_spill] sm:$0xff]  ;;  %v4250_v12 = vld [vmem:[#allocation39_spill] sm:$0xff] }
 0x136   : > { %v847_v57 = vrot.slane %v4246_v38, 2  ;;  %v2565_v20 = vld [vmem:[%s2644_s27 + $0xc0] sm:$0xff]  }
 0x137   : > { %v3481_v14 = vadd.f32 %v1289_v37, %v1203_v5  ;;  %2277 = vmatmul.msk.f32.gmra.mxu1 %vm411_vm2, %v4234_v61  ;;  %2311 = vmatmul.msk.f32.gmra.mxu2 %vm411_vm2, %v3479_v27  ;;  %v1292_v34 = vpop.f32.mrf.mxu0  ;;  %v3511_v38 = vunpack.c.l.bf16 %v2565_v20 }
 0x138   : > { %2345 = vmatmul.msk.f32.gmra.mxu3 %vm411_vm2, %v4244_v19 }
 0x139   : > { %4243 = vst [vmem:[#allocation72_spill] sm:$0xff] %v3481_v14  ;;  %v3495_v14 = vsel %vm773_vm3, %v845_v13, %v847_v57  ;;  %v850_v13 = vrot.slane %v4250_v12, 2  ;;  %v3508_v57 = vunpack.c.h.bf16 %v2565_v20  ;;  %v4253_v20 = vunpack.c.l.bf16 %v2963_v32 }
 0x13a   : > { %v976_v9 = vpop.f32.mrf.mxu2  ;;  %2379 = vmatmul.msk.f32.gmra.mxu0 %vm411_vm2, %v4247_v3  ;;  %4248 = vst [vmem:[#allocation38_spill] sm:$0xff] %v3495_v14  ;;  %v1225_v3 = vrot.slane %v3511_v38, 1 }
 0x13b   : > { %v1048_v55 = vadd.f32 %v976_v9, %v714_v52  ;;  %v1132_v37 = vpop.f32.mrf.mxu3  ;;  %4251 = vst [vmem:[#allocation39_spill] sm:$0xff] %v3511_v38 }
 0x13c   : > { %v716_v5 = vpop.f32.mrf.mxu1 }
 0x13d   : > { %v1204_v27 = vadd.f32 %v1132_v37, %v1048_v55 }
 0x13f   : > { %v3497_v61 = vadd.f32 %v1292_v34, %v1204_v27  ;;  %2278 = vmatmul.msk.f32.gmra.mxu1 %vm411_vm2, %v4240_v54  ;;  %2312 = vmatmul.msk.f32.gmra.mxu2 %vm411_vm2, %v3495_v14  ;;  %v1295_v9 = vpop.f32.mrf.mxu0  ;;  %v717_v27 = vadd.f32 %v716_v5, %v3225_v58  ;;  %v1226_v14 = vrot.slane %v3508_v57, 1 }
 0x140   : > { %2346 = vmatmul.msk.f32.gmra.mxu3 %vm411_vm2, %v4250_v12 }
 0x141   : > { %4249 = vst [vmem:[#allocation27_spill] sm:$0xff] %v3497_v61  ;;  %v3516_v61 = vsel %vm773_vm3, %v849_v47, %v850_v13  ;;  %v852_v47 = vrot.slane %v4253_v20, 2 }
 0x142   : > { %v979_v34 = vpop.f32.mrf.mxu2  ;;  %2380 = vmatmul.msk.f32.gmra.mxu0 %vm411_vm2, %v3009_v51 }
 0x143   : > { %v1049_v52 = vadd.f32 %v979_v34, %v717_v27  ;;  %v1135_v55 = vpop.f32.mrf.mxu3  ;;  %v3534_v27 = vsel %vm328_vm1, %v1225_v3, %v1226_v14  ;;  %v275_v34 = vunpack.c.l.bf16 %v3521_v16 }
 0x144   : > { %v719_v37 = vpop.f32.mrf.mxu1 }
 0x145   : > { %v1205_v54 = vadd.f32 %v1135_v55, %v1049_v52  ;;  %v1228_v32 = vrot.slane %v275_v34, 1 }
 0x147   : > { %v3523_v58 = vadd.f32 %v1295_v9, %v1205_v54  ;;  %2279 = vmatmul.msk.f32.gmra.mxu1 %vm411_vm2, %v4244_v19  ;;  %2313 = vmatmul.msk.f32.gmra.mxu2 %vm411_vm2, %v3516_v61  ;;  %v1298_v5 = vpop.f32.mrf.mxu0  ;;  %v720_v54 = vadd.f32 %v719_v37, %v3246_v44  ;;  %v3554_v37 = vsel %vm328_vm1, %v1226_v14, %v1228_v32 }
 0x148   : > { %2347 = vmatmul.msk.f32.gmra.mxu3 %vm411_vm2, %v3511_v38  ;;  %v3541_v38 = vsel %vm773_vm3, %v850_v13, %v852_v47 }
 0x149   : > { %4252 = vst [vmem:[#allocation73_spill] sm:$0xff] %v3523_v58 }
 0x14a   : > { %v982_v9 = vpop.f32.mrf.mxu2  ;;  %2381 = vmatmul.msk.f32.gmra.mxu0 %vm411_vm2, %v3534_v27 }
 0x14b   : > { %v1050_v52 = vadd.f32 %v982_v9, %v720_v54  ;;  %v1138_v55 = vpop.f32.mrf.mxu3 }
 0x14c   : > { %v722_v58 = vpop.f32.mrf.mxu1 }
 0x14d   : > { %v1206_v20 = vadd.f32 %v1138_v55, %v1050_v52  ;;  %v723_v13 = vadd.f32 %v722_v58, %v3267_v29 }
 0x14f   : > { %v3545_v3 = vadd.f32 %v1298_v5, %v1206_v20  ;;  %2280 = vmatmul.msk.f32.gmra.mxu1 %vm411_vm2, %v4250_v12  ;;  %2314 = vmatmul.msk.f32.gmra.mxu2 %vm411_vm2, %v3541_v38  ;;  %v1301_v44 = vpop.f32.mrf.mxu0 }
 0x150   : > { %2348 = vmatmul.msk.f32.gmra.mxu3 %vm411_vm2, %v3508_v57 }
 0x152   : > { %v985_v47 = vpop.f32.mrf.mxu2  ;;  %2382 = vmatmul.msk.f32.gmra.mxu0 %vm411_vm2, %v3554_v37 }
 0x153   : > { %v1051_v54 = vadd.f32 %v985_v47, %v723_v13  ;;  %v1141_v9 = vpop.f32.mrf.mxu3 }
 0x154   : > { %v725_v5 = vpop.f32.mrf.mxu1 }
 0x155   : > { %v1207_v52 = vadd.f32 %v1141_v9, %v1051_v54  ;;  %v726_v14 = vadd.f32 %v725_v5, %v3135_v60 }
 0x157   : > { %v3559_v55 = vadd.f32 %v1301_v44, %v1207_v52  ;;  %2385 = vmatmul.msk.f32.vlgmr.msra.gmra.mxu1 %vm411_vm2, %v3045_v30  ;;  %2419 = vmatmul.msk.f32.vlgmr.msra.gmra.mxu2 %vm411_vm2, %v2845_v25  ;;  %v1304_v29 = vpop.f32.mrf.mxu0 }
 0x158   : > { %2453 = vmatmul.msk.f32.vlgmr.msra.gmra.mxu3 %vm411_vm2, %v2892_v1 }
 0x15a   : > { %v988_v58 = vpop.f32.mrf.mxu2  ;;  %2487 = vmatmul.msk.f32.vlgmr.msra.gmra.mxu0 %vm411_vm2, %v3071_v50 }
 0x15b   : > { %v1052_v32 = vadd.f32 %v988_v58, %v726_v14  ;;  %v1144_v20 = vpop.f32.mrf.mxu3 }
 0x15c   : > { %v728_v44 = vpop.f32.mrf.mxu1 }
 0x15d   : > { %v1208_v13 = vadd.f32 %v1144_v20, %v1052_v32  ;;  %v729_v25 = vadd.f32 %v728_v44, %v3156_v23 }
 0x15f   : > { %v3570_v47 = vadd.f32 %v1304_v29, %v1208_v13  ;;  %2386 = vmatmul.msk.f32.gmra.mxu1 %vm411_vm2, %v3058_v21  ;;  %2420 = vmatmul.msk.f32.gmra.mxu2 %vm411_vm2, %v2847_v33  ;;  %v1307_v1 = vpop.f32.mrf.mxu0 }
 0x160   : > { %2454 = vmatmul.msk.f32.gmra.mxu3 %vm411_vm2, %v2944_v6 }
 0x162   : > { %v991_v30 = vpop.f32.mrf.mxu2  ;;  %2488 = vmatmul.msk.f32.gmra.mxu0 %vm411_vm2, %v3084_v15 }
 0x163   : > { %v1053_v60 = vadd.f32 %v991_v30, %v729_v25  ;;  %v1147_v54 = vpop.f32.mrf.mxu3 }
 0x164   : > { %v731_v9 = vpop.f32.mrf.mxu1 }
 0x165   : > { %v1209_v5 = vadd.f32 %v1147_v54, %v1053_v60  ;;  %v732_v6 = vadd.f32 %v731_v9, %v3177_v41 }
 0x167   : > { %v3581_v52 = vadd.f32 %v1307_v1, %v1209_v5  ;;  %2387 = vmatmul.msk.f32.gmra.mxu1 %vm411_vm2, %v3071_v50  ;;  %2421 = vmatmul.msk.f32.gmra.mxu2 %vm411_vm2, %v2949_v35  ;;  %v1310_v33 = vpop.f32.mrf.mxu0 }
 0x168   : > { %2455 = vmatmul.msk.f32.gmra.mxu3 %vm411_vm2, %v2995_v56 }
 0x16a   : > { %v994_v21 = vpop.f32.mrf.mxu2  ;;  %2489 = vmatmul.msk.f32.gmra.mxu0 %vm411_vm2, %v3097_v53 }
 0x16b   : > { %v1054_v23 = vadd.f32 %v994_v21, %v732_v6  ;;  %v1150_v29 = vpop.f32.mrf.mxu3  ;;  %v4257_v21 = vld [vmem:[#allocation46_spill] sm:$0xff] }
 0x16c   : > { %v734_v14 = vpop.f32.mrf.mxu1 }
 0x16d   : > { %v1210_v58 = vadd.f32 %v1150_v29, %v1054_v23  ;;  %v735_v56 = vadd.f32 %v734_v14, %v3198_v7 }
 0x16f   : > { %v3592_v32 = vadd.f32 %v1310_v33, %v1210_v58  ;;  %2388 = vmatmul.msk.f32.gmra.mxu1 %vm411_vm2, %v3084_v15  ;;  %2422 = vmatmul.msk.f32.gmra.mxu2 %vm411_vm2, %v2951_v17  ;;  %v1313_v41 = vpop.f32.mrf.mxu0  ;;  %v4259_v58 = vld [vmem:[#allocation17_spill] sm:$0xff] }
 0x170   : > { %2456 = vmatmul.msk.f32.gmra.mxu3 %vm411_vm2, %v3020_v63 }
 0x172   : > { %v997_v35 = vpop.f32.mrf.mxu2  ;;  %2490 = vmatmul.msk.f32.gmra.mxu0 %vm411_vm2, %v3108_v49 }
 0x173   : > { %v1055_v50 = vadd.f32 %v997_v35, %v735_v56  ;;  %v1153_v20 = vpop.f32.mrf.mxu3  ;;  %v4260_v56 = vld [vmem:[#allocation58_spill] sm:$0xff] }
 0x174   : > { %v737_v44 = vpop.f32.mrf.mxu1 }
 0x175   : > { %v1211_v13 = vadd.f32 %v1153_v20, %v1055_v50  ;;  %v738_v17 = vadd.f32 %v737_v44, %v3219_v18 }
 0x177   : > { %v3603_v1 = vadd.f32 %v1313_v41, %v1211_v13  ;;  %2389 = vmatmul.msk.f32.gmra.mxu1 %vm411_vm2, %v3097_v53  ;;  %2423 = vmatmul.msk.f32.gmra.mxu2 %vm411_vm2, %v2649_v8  ;;  %v1316_v7 = vpop.f32.mrf.mxu0  ;;  %v4254_v8 = vld [vmem:[#allocation2_spill] sm:$0xff]  ;;  %v4256_v53 = vld [vmem:[#allocation55_spill] sm:$0xff]  ;;  %v4261_v13 = vld [vmem:[#allocation48_spill] sm:$0xff] }
 0x178   : > { %2457 = vmatmul.msk.f32.gmra.mxu3 %vm411_vm2, %v2680_v26  ;;  %v4255_v26 = vld [vmem:[#allocation11_spill] sm:$0xff] }
 0x17a   : > { %v1000_v63 = vpop.f32.mrf.mxu2  ;;  %2491 = vmatmul.msk.f32.gmra.mxu0 %vm411_vm2, %v3123_v28 }
 0x17b   : > { %v1056_v15 = vadd.f32 %v1000_v63, %v738_v17  ;;  %v1156_v25 = vpop.f32.mrf.mxu3 }
 0x17c   : > { %v740_v30 = vpop.f32.mrf.mxu1 }
 0x17d   : > { %v1212_v60 = vadd.f32 %v1156_v25, %v1056_v15  ;;  %v741_v9 = vadd.f32 %v740_v30, %v4256_v53  ;;  %v4263_v15 = vld [vmem:[#allocation21_spill] sm:$0xff]  ;;  %v4265_v53 = vld [vmem:[#allocation50_spill] sm:$0xff] }
 0x17e   : > { %v4264_v30 = vld [vmem:[#allocation61_spill] sm:$0xff] }
 0x17f   : > { %v3614_v54 = vadd.f32 %v1316_v7, %v1212_v60  ;;  %2390 = vmatmul.msk.f32.gmra.mxu1 %vm411_vm2, %v3108_v49  ;;  %2424 = vmatmul.msk.f32.gmra.mxu2 %vm411_vm2, %v4254_v8  ;;  %v1319_v18 = vpop.f32.mrf.mxu0  ;;  %v4258_v49 = vld [vmem:[#allocation9_spill] sm:$0xff] }
 0x180   : > { %2458 = vmatmul.msk.f32.gmra.mxu3 %vm411_vm2, %v4255_v26 }
 0x182   : > { %v1003_v5 = vpop.f32.mrf.mxu2  ;;  %2492 = vmatmul.msk.f32.gmra.mxu0 %vm411_vm2, %v4257_v21 }
 0x183   : > { %v1057_v33 = vadd.f32 %v1003_v5, %v741_v9  ;;  %v1159_v6 = vpop.f32.mrf.mxu3 }
 0x184   : > { %v743_v23 = vpop.f32.mrf.mxu1 }
 0x185   : > { %v1213_v29 = vadd.f32 %v1159_v6, %v1057_v33  ;;  %v744_v35 = vadd.f32 %v743_v23, %v4260_v56  ;;  %v4266_v6 = vld [vmem:[#allocation19_spill] sm:$0xff] }
 0x187   : > { %v3625_v14 = vadd.f32 %v1319_v18, %v1213_v29  ;;  %2391 = vmatmul.msk.f32.gmra.mxu1 %vm411_vm2, %v3123_v28  ;;  %2425 = vmatmul.msk.f32.gmra.mxu2 %vm411_vm2, %v4258_v49  ;;  %v1322_v41 = vpop.f32.mrf.mxu0  ;;  %v4262_v28 = vld [vmem:[#allocation10_spill] sm:$0xff]  ;;  %v4268_v29 = vld [vmem:[#allocation45_spill] sm:$0xff] }
 0x188   : > { %2459 = vmatmul.msk.f32.gmra.mxu3 %vm411_vm2, %v4259_v58 }
 0x18a   : > { %v1006_v50 = vpop.f32.mrf.mxu2  ;;  %2493 = vmatmul.msk.f32.gmra.mxu0 %vm411_vm2, %v4261_v13 }
 0x18b   : > { %v1058_v20 = vadd.f32 %v1006_v50, %v744_v35  ;;  %v1162_v44 = vpop.f32.mrf.mxu3  ;;  %v4269_v35 = vld [vmem:[#allocation52_spill] sm:$0xff] }
 0x18c   : > { %v746_v7 = vpop.f32.mrf.mxu1 }
 0x18d   : > { %v1214_v17 = vadd.f32 %v1162_v44, %v1058_v20  ;;  %v747_v60 = vadd.f32 %v746_v7, %v4264_v30  ;;  %v4271_v7 = vld [vmem:[#allocation34_spill] sm:$0xff] }
 0x18f   : > { %v3636_v63 = vadd.f32 %v1322_v41, %v1214_v17  ;;  %2392 = vmatmul.msk.f32.gmra.mxu1 %vm411_vm2, %v4257_v21  ;;  %2426 = vmatmul.msk.f32.gmra.mxu2 %vm411_vm2, %v4262_v28  ;;  %v1325_v25 = vpop.f32.mrf.mxu0  ;;  %v4267_v21 = vld [vmem:[#allocation28_spill] sm:$0xff]  ;;  %v4272_v28 = vld [vmem:[#allocation47_spill] sm:$0xff] }
 0x190   : > { %2460 = vmatmul.msk.f32.gmra.mxu3 %vm411_vm2, %v4263_v15 }
 0x192   : > { %v1009_v8 = vpop.f32.mrf.mxu2  ;;  %2494 = vmatmul.msk.f32.gmra.mxu0 %vm411_vm2, %v4265_v53 }
 0x193   : > { %v1059_v26 = vadd.f32 %v1009_v8, %v747_v60  ;;  %v1165_v18 = vpop.f32.mrf.mxu3  ;;  %v4273_v8 = vld [vmem:[#allocation54_spill] sm:$0xff] }
 0x194   : > { %v749_v9 = vpop.f32.mrf.mxu1 }
 0x195   : > { %v1215_v5 = vadd.f32 %v1165_v18, %v1059_v26  ;;  %v750_v49 = vadd.f32 %v749_v9, %v4268_v29 }
 0x197   : > { %v3647_v33 = vadd.f32 %v1325_v25, %v1215_v5  ;;  %2393 = vmatmul.msk.f32.gmra.mxu1 %vm411_vm2, %v4261_v13  ;;  %2427 = vmatmul.msk.f32.gmra.mxu2 %vm411_vm2, %v4266_v6  ;;  %v1328_v23 = vpop.f32.mrf.mxu0  ;;  %v4270_v13 = vld [vmem:[#allocation20_spill] sm:$0xff] }
 0x198   : > { %2461 = vmatmul.msk.f32.gmra.mxu3 %vm411_vm2, %v4267_v21  ;;  %v4275_v5 = vld [vmem:[#allocation40_spill] sm:$0xff]  ;;  %v4276_v21 = vld [vmem:[#allocation49_spill] sm:$0xff] }
 0x19a   : > { %v1012_v58 = vpop.f32.mrf.mxu2  ;;  %2495 = vmatmul.msk.f32.gmra.mxu0 %vm411_vm2, %v4269_v35 }
 0x19b   : > { %v1060_v41 = vadd.f32 %v1012_v58, %v750_v49  ;;  %v1168_v56 = vpop.f32.mrf.mxu3 }
 0x19c   : > { %v752_v50 = vpop.f32.mrf.mxu1 }
 0x19d   : > { %v1216_v20 = vadd.f32 %v1168_v56, %v1060_v41  ;;  %v753_v15 = vadd.f32 %v752_v50, %v4272_v28  ;;  %v4277_v41 = vld [vmem:[#allocation57_spill] sm:$0xff] }
 0x19f   : > { %v3658_v44 = vadd.f32 %v1328_v23, %v1216_v20  ;;  %2394 = vmatmul.msk.f32.gmra.mxu1 %vm411_vm2, %v4265_v53  ;;  %2428 = vmatmul.msk.f32.gmra.mxu2 %vm411_vm2, %v4270_v13  ;;  %v1331_v17 = vpop.f32.mrf.mxu0  ;;  %v4274_v53 = vld [vmem:[#allocation31_spill] sm:$0xff] }
 0x1a0   : > { %2462 = vmatmul.msk.f32.gmra.mxu3 %vm411_vm2, %v4271_v7  ;;  %v4279_v13 = vld [vmem:[#allocation43_spill] sm:$0xff] }
 0x1a2   : > { %v1015_v25 = vpop.f32.mrf.mxu2  ;;  %2496 = vmatmul.msk.f32.gmra.mxu0 %vm411_vm2, %v4273_v8 }
 0x1a3   : > { %v1061_v30 = vadd.f32 %v1015_v25, %v753_v15  ;;  %v1171_v60 = vpop.f32.mrf.mxu3 }
 0x1a4   : > { %v755_v26 = vpop.f32.mrf.mxu1 }
 0x1a5   : > { %v1217_v18 = vadd.f32 %v1171_v60, %v1061_v30  ;;  %v756_v23 = vadd.f32 %v755_v26, %v4276_v21  ;;  %v4281_v60 = vld [vmem:[#allocation60_spill] sm:$0xff]  ;;  %v4284_v21 = vld [vmem:[#allocation53_spill] sm:$0xff] }
 0x1a7   : > { %v3669_v9 = vadd.f32 %v1331_v17, %v1217_v18  ;;  %2395 = vmatmul.msk.f32.gmra.mxu1 %vm411_vm2, %v4269_v35  ;;  %2429 = vmatmul.msk.f32.gmra.mxu2 %vm411_vm2, %v4274_v53  ;;  %v1334_v6 = vpop.f32.mrf.mxu0  ;;  %v4278_v35 = vld [vmem:[#allocation32_spill] sm:$0xff]  ;;  %v4280_v17 = vld [vmem:[#allocation51_spill] sm:$0xff] }
 0x1a8   : > { %2463 = vmatmul.msk.f32.gmra.mxu3 %vm411_vm2, %v4275_v5  ;;  %v4283_v5 = vld [vmem:[#allocation7_spill] sm:$0xff] }
 0x1aa   : > { %v1018_v29 = vpop.f32.mrf.mxu2  ;;  %2497 = vmatmul.msk.f32.gmra.mxu0 %vm411_vm2, %v4277_v41 }
 0x1ab   : > { %v1062_v49 = vadd.f32 %v1018_v29, %v756_v23  ;;  %v1174_v58 = vpop.f32.mrf.mxu3 }
 0x1ac   : > { %v758_v56 = vpop.f32.mrf.mxu1 }
 0x1ad   : > { %v1218_v50 = vadd.f32 %v1174_v58, %v1062_v49  ;;  %v759_v28 = vadd.f32 %v758_v56, %v4280_v17  ;;  %v4285_v56 = vld [vmem:[#allocation63_spill] sm:$0xff]  ;;  %v4287_v17 = vld [vmem:[#allocation56_spill] sm:$0xff] }
 0x1af   : > { %v3680_v20 = vadd.f32 %v1334_v6, %v1218_v50  ;;  %2396 = vmatmul.msk.f32.gmra.mxu1 %vm411_vm2, %v4273_v8  ;;  %2430 = vmatmul.msk.f32.gmra.mxu2 %vm411_vm2, %v4278_v35  ;;  %v1337_v7 = vpop.f32.mrf.mxu0  ;;  %v4282_v8 = vld [vmem:[#allocation3_spill] sm:$0xff] }
 0x1b0   : > { %2464 = vmatmul.msk.f32.gmra.mxu3 %vm411_vm2, %v4279_v13 }
 0x1b2   : > { %v1021_v15 = vpop.f32.mrf.mxu2  ;;  %2498 = vmatmul.msk.f32.gmra.mxu0 %vm411_vm2, %v4281_v60 }
 0x1b3   : > { %v1063_v25 = vadd.f32 %v1021_v15, %v759_v28  ;;  %v1177_v30 = vpop.f32.mrf.mxu3 }
 0x1b4   : > { %v761_v26 = vpop.f32.mrf.mxu1 }
 0x1b5   : > { %v1219_v18 = vadd.f32 %v1177_v30, %v1063_v25  ;;  %v762_v23 = vadd.f32 %v761_v26, %v4284_v21 }
 0x1b7   : > { %v3691_v53 = vadd.f32 %v1337_v7, %v1219_v18  ;;  %2397 = vmatmul.msk.f32.gmra.mxu1 %vm411_vm2, %v4277_v41  ;;  %2431 = vmatmul.msk.f32.gmra.mxu2 %vm411_vm2, %v4282_v8  ;;  %v1340_v6 = vpop.f32.mrf.mxu0  ;;  %v4286_v41 = vld [vmem:[#allocation12_spill] sm:$0xff] }
 0x1b8   : > { %2465 = vmatmul.msk.f32.gmra.mxu3 %vm411_vm2, %v4283_v5 }
 0x1ba   : > { %v1024_v29 = vpop.f32.mrf.mxu2  ;;  %2499 = vmatmul.msk.f32.gmra.mxu0 %vm411_vm2, %v4285_v56 }
 0x1bb   : > { %v1064_v49 = vadd.f32 %v1024_v29, %v762_v23  ;;  %v1180_v58 = vpop.f32.mrf.mxu3 }
 0x1bc   : > { %v764_v50 = vpop.f32.mrf.mxu1 }
 0x1bd   : > { %v1220_v35 = vadd.f32 %v1180_v58, %v1064_v49  ;;  %v765_v28 = vadd.f32 %v764_v50, %v4287_v17 }
 0x1bf   : > { %v3702_v13 = vadd.f32 %v1340_v6, %v1220_v35  ;;  %2398 = vmatmul.msk.f32.gmra.mxu1 %vm411_vm2, %v4281_v60  ;;  %2432 = vmatmul.msk.f32.gmra.mxu2 %vm411_vm2, %v2655_v11  ;;  %v1343_v7 = vpop.f32.mrf.mxu0  ;;  %v4288_v60 = vld [vmem:[#allocation59_spill] sm:$0xff] }
 0x1c0   : > { %2466 = vmatmul.msk.f32.gmra.mxu3 %vm411_vm2, %v4286_v41 }
 0x1c2   : > { %v1027_v15 = vpop.f32.mrf.mxu2  ;;  %2500 = vmatmul.msk.f32.gmra.mxu0 %vm411_vm2, %v3303_v10 }
 0x1c3   : > { %v1065_v25 = vadd.f32 %v1027_v15, %v765_v28  ;;  %v1183_v30 = vpop.f32.mrf.mxu3 }
 0x1c4   : > { %v767_v26 = vpop.f32.mrf.mxu1 }
 0x1c5   : > { %v1221_v18 = vadd.f32 %v1183_v30, %v1065_v25  ;;  %v768_v5 = vadd.f32 %v767_v26, %v4288_v60 }
 0x1c7   : > { %v3713_v8 = vadd.f32 %v1343_v7, %v1221_v18  ;;  %2399 = vmatmul.msk.f32.gmra.mxu1 %vm411_vm2, %v4285_v56  ;;  %2433 = vmatmul.msk.f32.gmra.mxu2 %vm411_vm2, %v2720_v45  ;;  %v1346_v11 = vpop.f32.mrf.mxu0  ;;  %v4292_v18 = vld [vmem:[#allocation22_spill] sm:$0xff] }
 0x1c8   : > { %2467 = vmatmul.msk.f32.gmra.mxu3 %vm411_vm2, %v2772_v4  ;;  %v4289_v4 = vld [vmem:[#allocation62_spill] sm:$0xff] }
 0x1ca   : > { %v1030_v6 = vpop.f32.mrf.mxu2  ;;  %2501 = vmatmul.msk.f32.gmra.mxu0 %vm411_vm2, %v3319_v62 }
 0x1cb   : > { %v1066_v21 = vadd.f32 %v1030_v6, %v768_v5  ;;  %v1186_v23 = vpop.f32.mrf.mxu3  ;;  %v4293_v5 = vld [vmem:[#allocation35_spill] sm:$0xff] }
 0x1cc   : > { %v770_v29 = vpop.f32.mrf.mxu1 }
 0x1cd   : > { %v1222_v49 = vadd.f32 %v1186_v23, %v1066_v21  ;;  %v771_v56 = vadd.f32 %v770_v29, %v4289_v4  ;;  %v4294_v21 = vld [vmem:[#allocation65_spill] sm:$0xff] }
 0x1cf   : > { %v3724_v58 = vadd.f32 %v1346_v11, %v1222_v49  ;;  %2400 = vmatmul.msk.f32.gmra.mxu1 %vm411_vm2, %v3303_v10  ;;  %2434 = vmatmul.msk.f32.gmra.mxu2 %vm411_vm2, %v2728_v48  ;;  %v1349_v45 = vpop.f32.mrf.mxu0  ;;  %v4290_v10 = vld [vmem:[#allocation29_spill] sm:$0xff] }
 0x1d0   : > { %2468 = vmatmul.msk.f32.gmra.mxu3 %vm411_vm2, %v2815_v42  ;;  %v4291_v42 = vld [vmem:[#allocation64_spill] sm:$0xff] }
 0x1d2   : > { %v1033_v50 = vpop.f32.mrf.mxu2  ;;  %2502 = vmatmul.msk.f32.gmra.mxu0 %vm411_vm2, %v3335_v46 }
 0x1d3   : > { %v1067_v35 = vadd.f32 %v1033_v50, %v771_v56  ;;  %v1189_v41 = vpop.f32.mrf.mxu3 }
 0x1d4   : > { %v1415_v7 = vpop.f32.mrf.mxu1 }
 0x1d5   : > { %v1223_v17 = vadd.f32 %v1189_v41, %v1067_v35  ;;  %v1511_v15 = vadd.f32 %v1415_v7, %v4291_v42  ;;  %v4295_v7 = vld [vmem:[#allocation66_spill] sm:$0xff] }
 0x1d7   : > { %v3735_v28 = vadd.f32 %v1349_v45, %v1223_v17  ;;  %2401 = vmatmul.msk.f32.gmra.mxu1 %vm411_vm2, %v3319_v62  ;;  %2435 = vmatmul.msk.f32.gmra.mxu2 %vm411_vm2, %v2809_v39  ;;  %v1890_v48 = vpop.f32.mrf.mxu0  ;;  %v3749_v62 = vld [vmem:[%s4011_s2] ss:$0 sm:$0xff] }
 0x1d8   : > { %2469 = vmatmul.msk.f32.gmra.mxu3 %vm411_vm2, %v4290_v10 }
 0x1da   : > { %v1571_v25 = vpop.f32.mrf.mxu2  ;;  %2503 = vmatmul.msk.f32.gmra.mxu0 %vm411_vm2, %v4292_v18 }
 0x1db   : > { %v1667_v30 = vadd.f32 %v1571_v25, %v1511_v15  ;;  %v1731_v26 = vpop.f32.mrf.mxu3 }
 0x1dc   : > { %v1418_v11 = vpop.f32.mrf.mxu1 }
 0x1dd   : > { %v1827_v60 = vadd.f32 %v1731_v26, %v1667_v30  ;;  %v1512_v23 = vadd.f32 %v1418_v11, %v4294_v21  ;;  %v4296_v30 = vld [vmem:[#allocation26_spill] sm:$0xff] }
 0x1df   : > { %v1986_v39 = vadd.f32 %v1890_v48, %v1827_v60  ;;  %2402 = vmatmul.msk.f32.gmra.mxu1 %vm411_vm2, %v3335_v46  ;;  %2436 = vmatmul.msk.f32.gmra.mxu2 %vm411_vm2, %v4203_v0  ;;  %v1893_v6 = vpop.f32.mrf.mxu0 }
 0x1e0   : > { %2470 = vmatmul.msk.f32.gmra.mxu3 %vm411_vm2, %v4293_v5 }
 0x1e1   : > { %v2022_v29 = vadd.f32 %v3749_v62, %v1986_v39  ;;  %v4298_v39 = vld [vmem:[#allocation67_spill] sm:$0xff] }
 0x1e2   : > { %v1574_v49 = vpop.f32.mrf.mxu2  ;;  %2504 = vmatmul.msk.f32.gmra.mxu0 %vm411_vm2, %v3367_v2 }
 0x1e3   : > { %v2054_v45 = vmax.f32 %v2022_v29, 0.0  ;;  %v1668_v4 = vadd.f32 %v1574_v49, %v1512_v23  ;;  %v1734_v56 = vpop.f32.mrf.mxu3 }
 0x1e4   : > { %v1421_v46 = vpop.f32.mrf.mxu1 }
 0x1e5   : > { %v2086_v0 = vpack.c.bf16 %v2054_v45, %v2054_v45  ;;  %v1828_v50 = vadd.f32 %v1734_v56, %v1668_v4  ;;  %v1513_v17 = vadd.f32 %v1421_v46, %v4295_v7  ;;  %v4299_v45 = vld [vmem:[#allocation36_spill] sm:$0xff] }
 0x1e6   : > { %v4300_v46 = vld [vmem:[#allocation8_spill] sm:$0xff] }
 0x1e7   : > { %2119 = vst.msk [vmem:[%s3765_s16] sm:$0xf] %vm2118_vm4, %v2086_v0  ;;  %v1987_v35 = vadd.f32 %v1893_v6, %v1828_v50  ;;  %2403 = vmatmul.msk.f32.gmra.mxu1 %vm411_vm2, %v4292_v18  ;;  %2437 = vmatmul.msk.f32.gmra.mxu2 %vm411_vm2, %v4207_v59  ;;  %v1896_v41 = vpop.f32.mrf.mxu0  ;;  %v4301_v50 = vld [vmem:[#allocation33_spill] sm:$0xff] }
 0x1e8   : > { %2471 = vmatmul.msk.f32.gmra.mxu3 %vm411_vm2, %v4210_v24  ;;  %v4297_v24 = vld [vmem:[#allocation44_spill] sm:$0xff] }
 0x1e9   : > { %v2023_v10 = vadd.f32 %v3749_v62, %v1987_v35 }
 0x1ea   : > { %v1577_v48 = vpop.f32.mrf.mxu2  ;;  %2505 = vmatmul.msk.f32.gmra.mxu0 %vm411_vm2, %v4296_v30 }
 0x1eb   : > { %v2055_v42 = vmax.f32 %v2023_v10, 0.0  ;;  %v1669_v15 = vadd.f32 %v1577_v48, %v1513_v17  ;;  %v1737_v25 = vpop.f32.mrf.mxu3 }
 0x1ec   : > { %v1424_v26 = vpop.f32.mrf.mxu1 }
 0x1ed   : > { %v2087_v18 = vpack.c.bf16 %v2055_v42, %v2055_v42  ;;  %v1829_v11 = vadd.f32 %v1737_v25, %v1669_v15  ;;  %v1514_v5 = vadd.f32 %v1424_v26, %v4298_v39  ;;  %v4302_v42 = vld [vmem:[#allocation5_spill] sm:$0xff] }
 0x1ee   : > { %v4303_v26 = vld [vmem:[#allocation13_spill] sm:$0xff] }
 0x1ef   : > { %2120 = vst.msk [vmem:[%s3765_s16 + $0x4] sm:$0xf] %vm2118_vm4, %v2087_v18  ;;  %v1988_v59 = vadd.f32 %v1896_v41, %v1829_v11  ;;  %2404 = vmatmul.msk.f32.gmra.mxu1 %vm411_vm2, %v3367_v2  ;;  %2438 = vmatmul.msk.f32.gmra.mxu2 %vm411_vm2, %v4212_v43  ;;  %v1899_v60 = vpop.f32.mrf.mxu0  ;;  %v4304_v11 = vld [vmem:[#allocation41_spill] sm:$0xff] }
 0x1f0   : > { %2472 = vmatmul.msk.f32.gmra.mxu3 %vm411_vm2, %v4297_v24 }
 0x1f1   : > { %v2024_v6 = vadd.f32 %v3749_v62, %v1988_v59 }
 0x1f2   : > { %v1580_v21 = vpop.f32.mrf.mxu2  ;;  %2506 = vmatmul.msk.f32.gmra.mxu0 %vm411_vm2, %v4299_v45 }
 0x1f3   : > { %v2056_v23 = vmax.f32 %v2024_v6, 0.0  ;;  %v1670_v29 = vadd.f32 %v1580_v21, %v1514_v5  ;;  %v1740_v49 = vpop.f32.mrf.mxu3  ;;  %v4305_v21 = vld [vmem:[#allocation14_spill] sm:$0xff] }
 0x1f4   : > { %v1427_v4 = vpop.f32.mrf.mxu1 }
 0x1f5   : > { %v2088_v2 = vpack.c.bf16 %v2056_v23, %v2056_v23  ;;  %v1830_v56 = vadd.f32 %v1740_v49, %v1670_v29  ;;  %v1515_v35 = vadd.f32 %v1427_v4, %v4301_v50 }
 0x1f7   : > { %2121 = vst.msk [vmem:[%s3765_s16 + $0x8] sm:$0xf] %vm2118_vm4, %v2088_v2  ;;  %v1989_v43 = vadd.f32 %v1899_v60, %v1830_v56  ;;  %2405 = vmatmul.msk.f32.gmra.mxu1 %vm411_vm2, %v4296_v30  ;;  %2439 = vmatmul.msk.f32.gmra.mxu2 %vm411_vm2, %v4215_v22  ;;  %v1902_v0 = vpop.f32.mrf.mxu0  ;;  %v4307_v2 = vld [vmem:[#allocation4_spill] sm:$0xff] }
 0x1f8   : > { %2473 = vmatmul.msk.f32.gmra.mxu3 %vm411_vm2, %v4300_v46 }
 0x1f9   : > { %v2025_v41 = vadd.f32 %v3749_v62, %v1989_v43 }
 0x1fa   : > { %v1583_v7 = vpop.f32.mrf.mxu2  ;;  %2507 = vmatmul.msk.f32.gmra.mxu0 %vm411_vm2, %v4302_v42 }
 0x1fb   : > { %v2057_v17 = vmax.f32 %v2025_v41, 0.0  ;;  %v1671_v10 = vadd.f32 %v1583_v7, %v1515_v35  ;;  %v1743_v48 = vpop.f32.mrf.mxu3  ;;  %v4308_v41 = vld [vmem:[#allocation15_spill] sm:$0xff] }
 0x1fc   : > { %v1430_v15 = vpop.f32.mrf.mxu1 }
 0x1fd   : > { %v2089_v25 = vpack.c.bf16 %v2057_v17, %v2057_v17  ;;  %v1831_v30 = vadd.f32 %v1743_v48, %v1671_v10  ;;  %v1516_v59 = vadd.f32 %v1430_v15, %v4304_v11  ;;  %v4309_v48 = vld [vmem:[#allocation23_spill] sm:$0xff]  ;;  %v4310_v15 = vld [vmem:[#allocation68_spill] sm:$0xff] }
 0x1ff   : > { %2122 = vst.msk [vmem:[%s3765_s16 + $0xc] sm:$0xf] %vm2118_vm4, %v2089_v25  ;;  %v1990_v22 = vadd.f32 %v1902_v0, %v1831_v30  ;;  %2406 = vmatmul.msk.f32.gmra.mxu1 %vm411_vm2, %v4299_v45  ;;  %2440 = vmatmul.msk.f32.gmra.mxu2 %vm411_vm2, %v4220_v31  ;;  %v1905_v18 = vpop.f32.mrf.mxu0  ;;  %v4306_v45 = vld [vmem:[#allocation18_spill] sm:$0xff] }
 0x200   : > { %2474 = vmatmul.msk.f32.gmra.mxu3 %vm411_vm2, %v4303_v26 }
 0x201   : > { %v2026_v24 = vadd.f32 %v3749_v62, %v1990_v22 }
 0x202   : > { %v1586_v60 = vpop.f32.mrf.mxu2  ;;  %2508 = vmatmul.msk.f32.gmra.mxu0 %vm411_vm2, %v4305_v21 }
 0x203   : > { %v2058_v39 = vmax.f32 %v2026_v24, 0.0  ;;  %v1672_v5 = vadd.f32 %v1586_v60, %v1516_v59  ;;  %v1746_v6 = vpop.f32.mrf.mxu3  ;;  %v4311_v59 = vld [vmem:[#allocation16_spill] sm:$0xff] }
 0x204   : > { %v1433_v23 = vpop.f32.mrf.mxu1 }
 0x205   : > { %v2090_v29 = vpack.c.bf16 %v2058_v39, %v2058_v39  ;;  %v1832_v49 = vadd.f32 %v1746_v6, %v1672_v5  ;;  %v1517_v56 = vadd.f32 %v1433_v23, %v4307_v2  ;;  %v4312_v5 = vld [vmem:[#allocation24_spill] sm:$0xff]  ;;  %v4313_v6 = vld [vmem:[#allocation30_spill] sm:$0xff] }
 0x206   : > { %v4314_v23 = vld [vmem:[#allocation6_spill] sm:$0xff] }
 0x207   : > { %2123 = vst.msk [vmem:[%s3765_s16 + $0x10] sm:$0xf] %vm2118_vm4, %v2090_v29  ;;  %v1991_v31 = vadd.f32 %v1905_v18, %v1832_v49  ;;  %2407 = vmatmul.msk.f32.gmra.mxu1 %vm411_vm2, %v4302_v42  ;;  %2441 = vmatmul.msk.f32.gmra.mxu2 %vm411_vm2, %v4224_v36  ;;  %v1908_v4 = vpop.f32.mrf.mxu0 }
 0x208   : > { %2475 = vmatmul.msk.f32.gmra.mxu3 %vm411_vm2, %v4306_v45 }
 0x209   : > { %v2027_v43 = vadd.f32 %v3749_v62, %v1991_v31 }
 0x20a   : > { %v1589_v46 = vpop.f32.mrf.mxu2  ;;  %2509 = vmatmul.msk.f32.gmra.mxu0 %vm411_vm2, %v4308_v41 }
 0x20b   : > { %v2059_v0 = vmax.f32 %v2027_v43, 0.0  ;;  %v1673_v50 = vadd.f32 %v1589_v46, %v1517_v56  ;;  %v1749_v35 = vpop.f32.mrf.mxu3  ;;  %v4315_v56 = vld [vmem:[#allocation71_spill] sm:$0xff] }
 0x20c   : > { %v1436_v7 = vpop.f32.mrf.mxu1 }
 0x20d   : > { %v2091_v17 = vpack.c.bf16 %v2059_v0, %v2059_v0  ;;  %v1833_v10 = vadd.f32 %v1749_v35, %v1673_v50  ;;  %v1518_v25 = vadd.f32 %v1436_v7, %v4310_v15  ;;  %v4316_v35 = vld [vmem:[#allocation25_spill] sm:$0xff] }
 0x20f   : > { %2124 = vst.msk [vmem:[%s3765_s16 + $0x14] sm:$0xf] %vm2118_vm4, %v2091_v17  ;;  %v1992_v36 = vadd.f32 %v1908_v4, %v1833_v10  ;;  %2408 = vmatmul.msk.f32.gmra.mxu1 %vm411_vm2, %v4305_v21  ;;  %2442 = vmatmul.msk.f32.gmra.mxu2 %vm411_vm2, %v4230_v40  ;;  %v1911_v42 = vpop.f32.mrf.mxu0  ;;  %v4318_v17 = vld [vmem:[#allocation69_spill] sm:$0xff] }
 0x210   : > { %2476 = vmatmul.msk.f32.gmra.mxu3 %vm411_vm2, %v4309_v48 }
 0x211   : > { %v2028_v30 = vadd.f32 %v3749_v62, %v1992_v36 }
 0x212   : > { %v1592_v22 = vpop.f32.mrf.mxu2  ;;  %2510 = vmatmul.msk.f32.gmra.mxu0 %vm411_vm2, %v4311_v59 }
 0x213   : > { %v2060_v26 = vmax.f32 %v2028_v30, 0.0  ;;  %v1674_v18 = vadd.f32 %v1592_v22, %v1518_v25  ;;  %v1752_v11 = vpop.f32.mrf.mxu3  ;;  %v4319_v30 = vld [vmem:[#allocation38_spill] sm:$0xff] }
 0x214   : > { %v1439_v24 = vpop.f32.mrf.mxu1 }
 0x215   : > { %v2092_v60 = vpack.c.bf16 %v2060_v26, %v2060_v26  ;;  %v1834_v39 = vadd.f32 %v1752_v11, %v1674_v18  ;;  %v1519_v29 = vadd.f32 %v1439_v24, %v4314_v23 }
 0x217   : > { %2125 = vst.msk [vmem:[%s3765_s16 + $0x18] sm:$0xf] %vm2118_vm4, %v2092_v60  ;;  %v1993_v40 = vadd.f32 %v1911_v42, %v1834_v39  ;;  %2409 = vmatmul.msk.f32.gmra.mxu1 %vm411_vm2, %v4308_v41  ;;  %2443 = vmatmul.msk.f32.gmra.mxu2 %vm411_vm2, %v4312_v5  ;;  %v1914_v21 = vpop.f32.mrf.mxu0  ;;  %v4317_v41 = vld [vmem:[#allocation37_spill] sm:$0xff]  ;;  %v4321_v60 = vld [vmem:[#allocation70_spill] sm:$0xff] }
 0x218   : > { %2477 = vmatmul.msk.f32.gmra.mxu3 %vm411_vm2, %v4313_v6 }
 0x219   : > { %v2029_v49 = vadd.f32 %v3749_v62, %v1993_v40 }
 0x21a   : > { %v1595_v31 = vpop.f32.mrf.mxu2  ;;  %2511 = vmatmul.msk.f32.gmra.mxu0 %vm411_vm2, %v4315_v56 }
 0x21b   : > { %v2061_v45 = vmax.f32 %v2029_v49, 0.0  ;;  %v1675_v4 = vadd.f32 %v1595_v31, %v1519_v29  ;;  %v1755_v2 = vpop.f32.mrf.mxu3 }
 0x21c   : > { %v1442_v43 = vpop.f32.mrf.mxu1 }
 0x21d   : > { %v2093_v46 = vpack.c.bf16 %v2061_v45, %v2061_v45  ;;  %v1835_v0 = vadd.f32 %v1755_v2, %v1675_v4  ;;  %v1520_v10 = vadd.f32 %v1442_v43, %v4318_v17  ;;  %v4322_v4 = vld [vmem:[#allocation72_spill] sm:$0xff] }
 0x21f   : > { %2126 = vst.msk [vmem:[%s3765_s16 + $0x1c] sm:$0xf] %vm2118_vm4, %v2093_v46  ;;  %v1994_v50 = vadd.f32 %v1914_v21, %v1835_v0  ;;  %2410 = vmatmul.msk.f32.gmra.mxu1 %vm411_vm2, %v4311_v59  ;;  %2444 = vmatmul.msk.f32.gmra.mxu2 %vm411_vm2, %v4316_v35  ;;  %v1917_v7 = vpop.f32.mrf.mxu0  ;;  %v4320_v59 = vld [vmem:[#allocation42_spill] sm:$0xff] }
 0x220   : > { %2478 = vmatmul.msk.f32.gmra.mxu3 %vm411_vm2, %v4317_v41  ;;  %v4323_v41 = vld [vmem:[#allocation39_spill] sm:$0xff] }
 0x221   : > { %v2030_v36 = vadd.f32 %v3749_v62, %v1994_v50 }
 0x222   : > { %v1598_v48 = vpop.f32.mrf.mxu2  ;;  %2512 = vmatmul.msk.f32.gmra.mxu0 %vm411_vm2, %v4319_v30 }
 0x223   : > { %v2062_v42 = vmax.f32 %v2030_v36, 0.0  ;;  %v1676_v15 = vadd.f32 %v1598_v48, %v1520_v10  ;;  %v1758_v25 = vpop.f32.mrf.mxu3 }
 0x224   : > { %v1445_v22 = vpop.f32.mrf.mxu1 }
 0x225   : > { %v2094_v26 = vpack.c.bf16 %v2062_v42, %v2062_v42  ;;  %v1836_v18 = vadd.f32 %v1758_v25, %v1676_v15  ;;  %v1521_v39 = vadd.f32 %v1445_v22, %v4321_v60  ;;  %v4324_v42 = vld [vmem:[#allocation27_spill] sm:$0xff] }
 0x226   : > { %v222_v22 = vld [vmem:[%s2644_s27 + $0xcc] sm:$0xff]  }
 0x227   : > { %2127 = vst.msk [vmem:[%s3765_s16 + $0x20] sm:$0xf] %vm2118_vm4, %v2094_v26  ;;  %v1995_v11 = vadd.f32 %v1917_v7, %v1836_v18  ;;  %2411 = vmatmul.msk.f32.gmra.mxu1 %vm411_vm2, %v4315_v56  ;;  %2445 = vmatmul.msk.f32.gmra.mxu2 %vm411_vm2, %v4244_v19  ;;  %v1920_v24 = vpop.f32.mrf.mxu0  ;;  %v1384_v7 = vrot.slane %v4323_v41, 2  ;;  %v276_v60 = vunpack.c.l.bf16 %v222_v22 }
 0x228   : > { %2479 = vmatmul.msk.f32.gmra.mxu3 %vm411_vm2, %v4320_v59  ;;  %v1387_v59 = vrot.slane %v275_v34, 2  ;;  %v4325_v34 = vld [vmem:[#allocation73_spill] sm:$0xff] }
 0x229   : > { %v2031_v40 = vadd.f32 %v3749_v62, %v1995_v11 }
 0x22a   : > { %v1601_v5 = vpop.f32.mrf.mxu2  ;;  %2513 = vmatmul.msk.f32.gmra.mxu0 %vm411_vm2, %v3516_v61 }
 0x22b   : > { %v2063_v6 = vmax.f32 %v2031_v40, 0.0  ;;  %v1677_v21 = vadd.f32 %v1601_v5, %v1521_v39  ;;  %v1761_v23 = vpop.f32.mrf.mxu3  ;;  %v277_v39 = vunpack.c.h.bf16 %v222_v22 }
 0x22c   : > { %v1448_v29 = vpop.f32.mrf.mxu1 }
 0x22d   : > { %v2095_v49 = vpack.c.bf16 %v2063_v6, %v2063_v6  ;;  %v1837_v31 = vadd.f32 %v1761_v23, %v1677_v21  ;;  %v1522_v2 = vadd.f32 %v1448_v29, %v4322_v4  ;;  %v1700_v23 = vrot.slane %v276_v60, 1 }
 0x22e   : > { %v1701_v29 = vrot.slane %v277_v39, 1  ;;  %v1859_v4 = vrot.slane %v276_v60, 2 }
 0x22f   : > { %2128 = vst.msk [vmem:[%s3765_s16 + $0x24] sm:$0xf] %vm2118_vm4, %v2095_v49  ;;  %v1996_v19 = vadd.f32 %v1920_v24, %v1837_v31  ;;  %2412 = vmatmul.msk.f32.gmra.mxu1 %vm411_vm2, %v4319_v30  ;;  %2446 = vmatmul.msk.f32.gmra.mxu2 %vm411_vm2, %v4250_v12  ;;  %v1923_v45 = vpop.f32.mrf.mxu0  ;;  %v1385_v12 = vrot.slane %v3508_v57, 2  ;;  %v224_v31 = vld [vmem:[%s2644_s27 + $0xd4] sm:$0x1] }
 0x230   : > { %2480 = vmatmul.msk.f32.gmra.mxu3 %vm411_vm2, %v3009_v51 }
 0x231   : > { %v2032_v56 = vadd.f32 %v3749_v62, %v1996_v19  ;;  %v1386_v48 = vsel %vm773_vm3, %v1384_v7, %v1385_v12  ;;  %v1388_v16 = vsel %vm773_vm3, %v1385_v12, %v1387_v59 }
 0x232   : > { %v1604_v43 = vpop.f32.mrf.mxu2  ;;  %2514 = vmatmul.msk.f32.gmra.mxu0 %vm411_vm2, %v3541_v38 }
 0x233   : > { %v2064_v46 = vmax.f32 %v2032_v56, 0.0  ;;  %v1678_v0 = vadd.f32 %v1604_v43, %v1522_v2  ;;  %v1764_v50 = vpop.f32.mrf.mxu3  ;;  %v1702_v43 = vsel %vm328_vm1, %v1700_v23, %v1701_v29 }
 0x234   : > { %v1451_v35 = vpop.f32.mrf.mxu1 }
 0x235   : > { %v2096_v17 = vpack.c.bf16 %v2064_v46, %v2064_v46  ;;  %v1838_v51 = vadd.f32 %v1764_v50, %v1678_v0  ;;  %v1523_v15 = vadd.f32 %v1451_v35, %v4324_v42  ;;  %v278_v46 = vunpack.c.l.bf16 %v224_v31 }
 0x237   : > { %2129 = vst.msk [vmem:[%s3765_s16 + $0x28] sm:$0xf] %vm2118_vm4, %v2096_v17  ;;  %v1997_v10 = vadd.f32 %v1923_v45, %v1838_v51  ;;  %2413 = vmatmul.msk.f32.gmra.mxu1 %vm411_vm2, %v3516_v61  ;;  %2447 = vmatmul.msk.f32.gmra.mxu2 %vm411_vm2, %v4323_v41  ;;  %v1926_v36 = vpop.f32.mrf.mxu0  ;;  %v1703_v12 = vrot.slane %v278_v46, 1  ;;  %v1862_v42 = vrot.slane %v278_v46, 2 }
 0x238   : > { %2481 = vmatmul.msk.f32.gmra.mxu3 %vm411_vm2, %v3534_v27 }
 0x239   : > { %v2033_v25 = vadd.f32 %v3749_v62, %v1997_v10 }
 0x23a   : > { %v1607_v30 = vpop.f32.mrf.mxu2  ;;  %2515 = vmatmul.msk.f32.gmra.mxu0 %vm411_vm2, %v1386_v48 }
 0x23b   : > { %v2065_v26 = vmax.f32 %v2033_v25, 0.0  ;;  %v1679_v18 = vadd.f32 %v1607_v30, %v1523_v15  ;;  %v1767_v11 = vpop.f32.mrf.mxu3  ;;  %v1704_v30 = vsel %vm328_vm1, %v1701_v29, %v1703_v12 }
 0x23c   : > { %v1454_v61 = vpop.f32.mrf.mxu1 }
 0x23d   : > { %v2097_v27 = vpack.c.bf16 %v2065_v26, %v2065_v26  ;;  %v1839_v24 = vadd.f32 %v1767_v11, %v1679_v18  ;;  %v1524_v6 = vadd.f32 %v1454_v61, %v4325_v34 }
 0x23f   : > { %2130 = vst.msk [vmem:[%s3765_s16 + $0x2c] sm:$0xf] %vm2118_vm4, %v2097_v27  ;;  %v1998_v40 = vadd.f32 %v1926_v36, %v1839_v24  ;;  %2414 = vmatmul.msk.f32.gmra.mxu1 %vm411_vm2, %v3541_v38  ;;  %2448 = vmatmul.msk.f32.gmra.mxu2 %vm411_vm2, %v3508_v57  ;;  %v1929_v5 = vpop.f32.mrf.mxu0 }
 0x240   : > { %2482 = vmatmul.msk.f32.gmra.mxu3 %vm411_vm2, %v3554_v37  ;;  %v1860_v37 = vrot.slane %v277_v39, 2 }
 0x241   : > { %v2034_v21 = vadd.f32 %v3749_v62, %v1998_v40 }
 0x242   : > { %v1610_v49 = vpop.f32.mrf.mxu2  ;;  %2516 = vmatmul.msk.f32.gmra.mxu0 %vm411_vm2, %v1388_v16  ;;  %v1861_v35 = vsel %vm773_vm3, %v1859_v4, %v1860_v37  ;;  %v1863_v26 = vsel %vm773_vm3, %v1860_v37, %v1862_v42 }
 0x243   : > { %v2066_v19 = vmax.f32 %v2034_v21, 0.0  ;;  %v1680_v38 = vadd.f32 %v1610_v49, %v1524_v6  ;;  %v1770_v45 = vpop.f32.mrf.mxu3 }
 0x244   : > { %v1457_v57 = vpop.f32.mrf.mxu1 }
 0x245   : > { %v2098_v2 = vpack.c.bf16 %v2066_v19, %v2066_v19  ;;  %v1840_v56 = vadd.f32 %v1770_v45, %v1680_v38  ;;  %v1525_v41 = vadd.f32 %v1457_v57, %v3545_v3 }
 0x247   : > { %2131 = vst.msk [vmem:[%s3765_s16 + $0x30] sm:$0xf] %vm2118_vm4, %v2098_v2  ;;  %v1999_v0 = vadd.f32 %v1929_v5, %v1840_v56  ;;  %2415 = vmatmul.msk.f32.gmra.mxu1 %vm411_vm2, %v1386_v48  ;;  %2449 = vmatmul.msk.f32.gmra.mxu2 %vm411_vm2, %v276_v60  ;;  %v1932_v50 = vpop.f32.mrf.mxu0 }
 0x248   : > { %2483 = vmatmul.msk.f32.gmra.mxu3 %vm411_vm2, %v1702_v43 }
 0x249   : > { %v2035_v7 = vadd.f32 %v3749_v62, %v1999_v0 }
 0x24a   : > { %v1613_v17 = vpop.f32.mrf.mxu2  ;;  %2517 = vmatmul.msk.f32.gmra.mxu0 %vm411_vm2, %v1861_v35 }
 0x24b   : > { %v2067_v51 = vmax.f32 %v2035_v7, 0.0  ;;  %v1681_v10 = vadd.f32 %v1613_v17, %v1525_v41  ;;  %v1773_v36 = vpop.f32.mrf.mxu3 }
 0x24c   : > { %v1460_v48 = vpop.f32.mrf.mxu1 }
 0x24d   : > { %v2099_v15 = vpack.c.bf16 %v2067_v51, %v2067_v51  ;;  %v1841_v25 = vadd.f32 %v1773_v36, %v1681_v10  ;;  %v1526_v18 = vadd.f32 %v1460_v48, %v3559_v55 }
 0x24f   : > { %2132 = vst.msk [vmem:[%s3765_s16 + $0x34] sm:$0xf] %vm2118_vm4, %v2099_v15  ;;  %v2000_v22 = vadd.f32 %v1932_v50, %v1841_v25  ;;  %2416 = vmatmul.msk.f32.gmra.mxu1 %vm411_vm2, %v1388_v16  ;;  %2450 = vmatmul.msk.f32.gmra.mxu2 %vm411_vm2, %v277_v39  ;;  %v1935_v3 = vpop.f32.mrf.mxu0 }
 0x250   : > { %2484 = vmatmul.msk.f32.gmra.mxu3 %vm411_vm2, %v1704_v30 }
 0x251   : > { %v2036_v11 = vadd.f32 %v3749_v62, %v2000_v22 }
 0x252   : > { %v1616_v61 = vpop.f32.mrf.mxu2  ;;  %2518 = vmatmul.msk.f32.gmra.mxu0 %vm411_vm2, %v1863_v26 }
 0x253   : > { %v2068_v59 = vmax.f32 %v2036_v11, 0.0  ;;  %v1682_v27 = vadd.f32 %v1616_v61, %v1526_v18  ;;  %v1776_v24 = vpop.f32.mrf.mxu3 }
 0x254   : > { %v1463_v60 = vpop.f32.mrf.mxu1 }
 0x255   : > { %v2100_v40 = vpack.c.bf16 %v2068_v59, %v2068_v59  ;;  %v1842_v5 = vadd.f32 %v1776_v24, %v1682_v27  ;;  %v1527_v34 = vadd.f32 %v1463_v60, %v3570_v47 }
 0x257   : > { %2133 = vst.msk [vmem:[%s3765_s16 + $0x38] sm:$0xf] %vm2118_vm4, %v2100_v40  ;;  %v2001_v39 = vadd.f32 %v1935_v3, %v1842_v5  ;;  %v1938_v16 = vpop.f32.mrf.mxu0 }
 0x259   : > { %v2037_v55 = vadd.f32 %v3749_v62, %v2001_v39 }
 0x25a   : > { %v1619_v6 = vpop.f32.mrf.mxu2 }
 0x25b   : > { %v2069_v21 = vmax.f32 %v2037_v55, 0.0  ;;  %v1683_v23 = vadd.f32 %v1619_v6, %v1527_v34  ;;  %v1779_v29 = vpop.f32.mrf.mxu3 }
 0x25c   : > { %v1466_v49 = vpop.f32.mrf.mxu1 }
 0x25d   : > { %v2101_v31 = vpack.c.bf16 %v2069_v21, %v2069_v21  ;;  %v1843_v19 = vadd.f32 %v1779_v29, %v1683_v23  ;;  %v1528_v57 = vadd.f32 %v1466_v49, %v3581_v52 }
 0x25f   : > { %2134 = vst.msk [vmem:[%s3765_s16 + $0x3c] sm:$0xf] %vm2118_vm4, %v2101_v31  ;;  %v2002_v38 = vadd.f32 %v1938_v16, %v1843_v19  ;;  %v1941_v45 = vpop.f32.mrf.mxu0 }
 0x261   : > { %v2038_v4 = vadd.f32 %v3749_v62, %v2002_v38 }
 0x262   : > { %v1622_v37 = vpop.f32.mrf.mxu2 }
 0x263   : > { %v2070_v47 = vmax.f32 %v2038_v4, 0.0  ;;  %v1684_v2 = vadd.f32 %v1622_v37, %v1528_v57  ;;  %v1782_v56 = vpop.f32.mrf.mxu3 }
 0x264   : > { %v1469_v43 = vpop.f32.mrf.mxu1 }
 0x265   : > { %v2102_v46 = vpack.c.bf16 %v2070_v47, %v2070_v47  ;;  %v1844_v0 = vadd.f32 %v1782_v56, %v1684_v2  ;;  %v1529_v41 = vadd.f32 %v1469_v43, %v3592_v32 }
 0x267   : > { %2135 = vst.msk [vmem:[%s3765_s16 + $0x40] sm:$0xf] %vm2118_vm4, %v2102_v46  ;;  %v2003_v50 = vadd.f32 %v1941_v45, %v1844_v0  ;;  %v1944_v35 = vpop.f32.mrf.mxu0 }
 0x269   : > { %v2039_v7 = vadd.f32 %v3749_v62, %v2003_v50 }
 0x26a   : > { %v1625_v12 = vpop.f32.mrf.mxu2 }
 0x26b   : > { %v2071_v52 = vmax.f32 %v2039_v7, 0.0  ;;  %v1685_v17 = vadd.f32 %v1625_v12, %v1529_v41  ;;  %v1785_v51 = vpop.f32.mrf.mxu3 }
 0x26c   : > { %v1472_v10 = vpop.f32.mrf.mxu1 }
 0x26d   : > { %v2103_v36 = vpack.c.bf16 %v2071_v52, %v2071_v52  ;;  %v1845_v48 = vadd.f32 %v1785_v51, %v1685_v17  ;;  %v1530_v25 = vadd.f32 %v1472_v10, %v3603_v1 }
 0x26f   : > { %2136 = vst.msk [vmem:[%s3765_s16 + $0x44] sm:$0xf] %vm2118_vm4, %v2103_v36  ;;  %v2004_v42 = vadd.f32 %v1944_v35, %v1845_v48  ;;  %v1947_v15 = vpop.f32.mrf.mxu0 }
 0x271   : > { %v2040_v30 = vadd.f32 %v3749_v62, %v2004_v42 }
 0x272   : > { %v1628_v22 = vpop.f32.mrf.mxu2 }
 0x273   : > { %v2072_v32 = vmax.f32 %v2040_v30, 0.0  ;;  %v1686_v3 = vadd.f32 %v1628_v22, %v1530_v25  ;;  %v1788_v26 = vpop.f32.mrf.mxu3 }
 0x274   : > { %v1475_v18 = vpop.f32.mrf.mxu1 }
 0x275   : > { %v2104_v11 = vpack.c.bf16 %v2072_v32, %v2072_v32  ;;  %v1846_v61 = vadd.f32 %v1788_v26, %v1686_v3  ;;  %v1531_v24 = vadd.f32 %v1475_v18, %v3614_v54 }
 0x277   : > { %2137 = vst.msk [vmem:[%s3765_s16 + $0x48] sm:$0xf] %vm2118_vm4, %v2104_v11  ;;  %v2005_v59 = vadd.f32 %v1947_v15, %v1846_v61  ;;  %v1950_v27 = vpop.f32.mrf.mxu0 }
 0x279   : > { %v2041_v60 = vadd.f32 %v3749_v62, %v2005_v59 }
 0x27a   : > { %v1631_v40 = vpop.f32.mrf.mxu2 }
 0x27b   : > { %v2073_v1 = vmax.f32 %v2041_v60, 0.0  ;;  %v1687_v5 = vadd.f32 %v1631_v40, %v1531_v24  ;;  %v1791_v39 = vpop.f32.mrf.mxu3 }
 0x27c   : > { %v1478_v16 = vpop.f32.mrf.mxu1 }
 0x27d   : > { %v2105_v34 = vpack.c.bf16 %v2073_v1, %v2073_v1  ;;  %v1847_v55 = vadd.f32 %v1791_v39, %v1687_v5  ;;  %v1532_v23 = vadd.f32 %v1478_v16, %v3625_v14 }
 0x27f   : > { %2138 = vst.msk [vmem:[%s3765_s16 + $0x4c] sm:$0xf] %vm2118_vm4, %v2105_v34  ;;  %v2006_v6 = vadd.f32 %v1950_v27, %v1847_v55  ;;  %v1953_v21 = vpop.f32.mrf.mxu0 }
 0x281   : > { %v2042_v29 = vadd.f32 %v3749_v62, %v2006_v6 }
 0x282   : > { %v1634_v49 = vpop.f32.mrf.mxu2 }
 0x283   : > { %v2074_v54 = vmax.f32 %v2042_v29, 0.0  ;;  %v1688_v31 = vadd.f32 %v1634_v49, %v1532_v23  ;;  %v1794_v19 = vpop.f32.mrf.mxu3 }
 0x284   : > { %v1481_v38 = vpop.f32.mrf.mxu1 }
 0x285   : > { %v2106_v45 = vpack.c.bf16 %v2074_v54, %v2074_v54  ;;  %v1848_v57 = vadd.f32 %v1794_v19, %v1688_v31  ;;  %v1533_v47 = vadd.f32 %v1481_v38, %v3636_v63 }
 0x287   : > { %2139 = vst.msk [vmem:[%s3765_s16 + $0x50] sm:$0xf] %vm2118_vm4, %v2106_v45  ;;  %v2007_v4 = vadd.f32 %v1953_v21, %v1848_v57  ;;  %v1956_v37 = vpop.f32.mrf.mxu0 }
 0x289   : > { %v2043_v2 = vadd.f32 %v3749_v62, %v2007_v4 }
 0x28a   : > { %v1637_v56 = vpop.f32.mrf.mxu2 }
 0x28b   : > { %v2075_v14 = vmax.f32 %v2043_v2, 0.0  ;;  %v1689_v43 = vadd.f32 %v1637_v56, %v1533_v47  ;;  %v1797_v46 = vpop.f32.mrf.mxu3 }
 0x28c   : > { %v1484_v0 = vpop.f32.mrf.mxu1 }
 0x28d   : > { %v2107_v50 = vpack.c.bf16 %v2075_v14, %v2075_v14  ;;  %v1849_v35 = vadd.f32 %v1797_v46, %v1689_v43  ;;  %v1534_v12 = vadd.f32 %v1484_v0, %v3647_v33 }
 0x28f   : > { %2140 = vst.msk [vmem:[%s3765_s16 + $0x54] sm:$0xf] %vm2118_vm4, %v2107_v50  ;;  %v2008_v41 = vadd.f32 %v1956_v37, %v1849_v35  ;;  %v1959_v7 = vpop.f32.mrf.mxu0 }
 0x291   : > { %v2044_v52 = vadd.f32 %v3749_v62, %v2008_v41 }
 0x292   : > { %v1640_v17 = vpop.f32.mrf.mxu2 }
 0x293   : > { %v2076_v63 = vmax.f32 %v2044_v52, 0.0  ;;  %v1690_v51 = vadd.f32 %v1640_v17, %v1534_v12  ;;  %v1800_v10 = vpop.f32.mrf.mxu3 }
 0x294   : > { %v1487_v36 = vpop.f32.mrf.mxu1 }
 0x295   : > { %v2108_v48 = vpack.c.bf16 %v2076_v63, %v2076_v63  ;;  %v1850_v42 = vadd.f32 %v1800_v10, %v1690_v51  ;;  %v1535_v30 = vadd.f32 %v1487_v36, %v3658_v44 }
 0x297   : > { %2141 = vst.msk [vmem:[%s3765_s16 + $0x58] sm:$0xf] %vm2118_vm4, %v2108_v48  ;;  %v2009_v15 = vadd.f32 %v1959_v7, %v1850_v42  ;;  %v1962_v25 = vpop.f32.mrf.mxu0 }
 0x299   : > { %v2045_v22 = vadd.f32 %v3749_v62, %v2009_v15 }
 0x29a   : > { %v1643_v32 = vpop.f32.mrf.mxu2 }
 0x29b   : > { %v2077_v33 = vmax.f32 %v2045_v22, 0.0  ;;  %v1691_v3 = vadd.f32 %v1643_v32, %v1535_v30  ;;  %v1803_v26 = vpop.f32.mrf.mxu3 }
 0x29c   : > { %v1490_v18 = vpop.f32.mrf.mxu1 }
 0x29d   : > { %v2109_v11 = vpack.c.bf16 %v2077_v33, %v2077_v33  ;;  %v1851_v61 = vadd.f32 %v1803_v26, %v1691_v3  ;;  %v1536_v24 = vadd.f32 %v1490_v18, %v3669_v9 }
 0x29f   : > { %2142 = vst.msk [vmem:[%s3765_s16 + $0x5c] sm:$0xf] %vm2118_vm4, %v2109_v11  ;;  %v2010_v59 = vadd.f32 %v1962_v25, %v1851_v61  ;;  %v1965_v27 = vpop.f32.mrf.mxu0 }
 0x2a1   : > { %v2046_v60 = vadd.f32 %v3749_v62, %v2010_v59 }
 0x2a2   : > { %v1646_v40 = vpop.f32.mrf.mxu2 }
 0x2a3   : > { %v2078_v44 = vmax.f32 %v2046_v60, 0.0  ;;  %v1692_v1 = vadd.f32 %v1646_v40, %v1536_v24  ;;  %v1806_v5 = vpop.f32.mrf.mxu3 }
 0x2a4   : > { %v1493_v39 = vpop.f32.mrf.mxu1 }
 0x2a5   : > { %v2110_v16 = vpack.c.bf16 %v2078_v44, %v2078_v44  ;;  %v1852_v34 = vadd.f32 %v1806_v5, %v1692_v1  ;;  %v1537_v21 = vadd.f32 %v1493_v39, %v3680_v20 }
 0x2a7   : > { %2143 = vst.msk [vmem:[%s3765_s16 + $0x60] sm:$0xf] %vm2118_vm4, %v2110_v16  ;;  %v2011_v55 = vadd.f32 %v1965_v27, %v1852_v34  ;;  %v1968_v6 = vpop.f32.mrf.mxu0 }
 0x2a9   : > { %v2047_v23 = vadd.f32 %v3749_v62, %v2011_v55 }
 0x2aa   : > { %v1649_v29 = vpop.f32.mrf.mxu2 }
 0x2ab   : > { %v2079_v9 = vmax.f32 %v2047_v23, 0.0  ;;  %v1693_v49 = vadd.f32 %v1649_v29, %v1537_v21  ;;  %v1809_v54 = vpop.f32.mrf.mxu3 }
 0x2ac   : > { %v1496_v31 = vpop.f32.mrf.mxu1 }
 0x2ad   : > { %v2111_v19 = vpack.c.bf16 %v2079_v9, %v2079_v9  ;;  %v1853_v38 = vadd.f32 %v1809_v54, %v1693_v49  ;;  %v1538_v4 = vadd.f32 %v1496_v31, %v3691_v53 }
 0x2af   : > { %2144 = vst.msk [vmem:[%s3765_s16 + $0x64] sm:$0xf] %vm2118_vm4, %v2111_v19  ;;  %v2012_v45 = vadd.f32 %v1968_v6, %v1853_v38  ;;  %v1971_v57 = vpop.f32.mrf.mxu0 }
 0x2b1   : > { %v2048_v37 = vadd.f32 %v3749_v62, %v2012_v45 }
 0x2b2   : > { %v1652_v47 = vpop.f32.mrf.mxu2 }
 0x2b3   : > { %v2080_v20 = vmax.f32 %v2048_v37, 0.0  ;;  %v1694_v2 = vadd.f32 %v1652_v47, %v1538_v4  ;;  %v1812_v56 = vpop.f32.mrf.mxu3 }
 0x2b4   : > { %v1499_v14 = vpop.f32.mrf.mxu1 }
 0x2b5   : > { %v2112_v43 = vpack.c.bf16 %v2080_v20, %v2080_v20  ;;  %v1854_v46 = vadd.f32 %v1812_v56, %v1694_v2  ;;  %v1539_v35 = vadd.f32 %v1499_v14, %v3702_v13 }
 0x2b7   : > { %2145 = vst.msk [vmem:[%s3765_s16 + $0x68] sm:$0xf] %vm2118_vm4, %v2112_v43  ;;  %v2013_v0 = vadd.f32 %v1971_v57, %v1854_v46  ;;  %v1974_v50 = vpop.f32.mrf.mxu0 }
 0x2b9   : > { %v2049_v41 = vadd.f32 %v3749_v62, %v2013_v0 }
 0x2ba   : > { %v1655_v7 = vpop.f32.mrf.mxu2 }
 0x2bb   : > { %v2081_v53 = vmax.f32 %v2049_v41, 0.0  ;;  %v1695_v12 = vadd.f32 %v1655_v7, %v1539_v35  ;;  %v1815_v52 = vpop.f32.mrf.mxu3 }
 0x2bc   : > { %v1502_v17 = vpop.f32.mrf.mxu1 }
 0x2bd   : > { %v2113_v63 = vpack.c.bf16 %v2081_v53, %v2081_v53  ;;  %v1855_v51 = vadd.f32 %v1815_v52, %v1695_v12  ;;  %v1540_v48 = vadd.f32 %v1502_v17, %v3713_v8 }
 0x2bf   : > { %2146 = vst.msk [vmem:[%s3765_s16 + $0x6c] sm:$0xf] %vm2118_vm4, %v2113_v63  ;;  %v2014_v10 = vadd.f32 %v1974_v50, %v1855_v51  ;;  %v1977_v36 = vpop.f32.mrf.mxu0 }
 0x2c1   : > { %v2050_v42 = vadd.f32 %v3749_v62, %v2014_v10 }
 0x2c2   : > { %v1658_v15 = vpop.f32.mrf.mxu2 }
 0x2c3   : > { %v2082_v13 = vmax.f32 %v2050_v42, 0.0  ;;  %v1696_v25 = vadd.f32 %v1658_v15, %v1540_v48  ;;  %v1818_v30 = vpop.f32.mrf.mxu3 }
 0x2c4   : > { %v1505_v22 = vpop.f32.mrf.mxu1 }
 0x2c5   : > { %v2114_v32 = vpack.c.bf16 %v2082_v13, %v2082_v13  ;;  %v1856_v33 = vadd.f32 %v1818_v30, %v1696_v25  ;;  %v1541_v26 = vadd.f32 %v1505_v22, %v3724_v58 }
 0x2c7   : > { %2147 = vst.msk [vmem:[%s3765_s16 + $0x70] sm:$0xf] %vm2118_vm4, %v2114_v32  ;;  %v2015_v3 = vadd.f32 %v1977_v36, %v1856_v33  ;;  %v1980_v61 = vpop.f32.mrf.mxu0 }
 0x2c9   : > { %v2051_v18 = vadd.f32 %v3749_v62, %v2015_v3 }
 0x2ca   : > { %v1661_v11 = vpop.f32.mrf.mxu2 }
 0x2cb   : > { %v2083_v8 = vmax.f32 %v2051_v18, 0.0  ;;  %v1697_v59 = vadd.f32 %v1661_v11, %v1541_v26  ;;  %v1821_v27 = vpop.f32.mrf.mxu3 }
 0x2cc   : > { %v1508_v40 = vpop.f32.mrf.mxu1 }
 0x2cd   : > { %v2115_v24 = vpack.c.bf16 %v2083_v8, %v2083_v8  ;;  %v1857_v60 = vadd.f32 %v1821_v27, %v1697_v59  ;;  %v1542_v1 = vadd.f32 %v1508_v40, %v3735_v28 }
 0x2cf   : > { %2148 = vst.msk [vmem:[%s3765_s16 + $0x74] sm:$0xf] %vm2118_vm4, %v2115_v24  ;;  %v2016_v44 = vadd.f32 %v1980_v61, %v1857_v60  ;;  %v1983_v55 = vpop.f32.mrf.mxu0 }
 0x2d1   : > { %v2052_v5 = vadd.f32 %v3749_v62, %v2016_v44 }
 0x2d2   : > { %v1664_v58 = vpop.f32.mrf.mxu2 }
 0x2d3   : > { %v2084_v39 = vmax.f32 %v2052_v5, 0.0  ;;  %v1698_v16 = vadd.f32 %v1664_v58, %v1542_v1  ;;  %v1824_v34 = vpop.f32.mrf.mxu3 }
 0x2d5   : > { %v2116_v6 = vpack.c.bf16 %v2084_v39, %v2084_v39  ;;  %v1858_v21 = vadd.f32 %v1824_v34, %v1698_v16 }
 0x2d7   : > { %2149 = vst.msk [vmem:[%s3765_s16 + $0x78] sm:$0xf] %vm2118_vm4, %v2116_v6  ;;  %v2017_v23 = vadd.f32 %v1983_v55, %v1858_v21 }
 0x2d9   : > { %v2053_v29 = vadd.f32 %v3749_v62, %v2017_v23 }
 0x2db   : > { %v2085_v9 = vmax.f32 %v2053_v29, 0.0 }
 0x2dd   : > { %v2117_v49 = vpack.c.bf16 %v2085_v9, %v2085_v9 }
 0x2df   : > { %2150 = vst.msk [vmem:[%s3765_s16 + $0x7c] sm:$0xf] %vm2118_vm4, %v2117_v49 }
 0x2e0 PF: > { %s13_s12 = sadd.s32 1, %s2585_s12  }
 0x2e1   : > { %p10_p4 = scmp.ge.s32.totalorder %s13_s12, 10  }
 0x2e3   :  { %12 = sbr.rel (!%p10_p4) target bundleno = 1 (0x1), region = 70 }

// kernel: cnn_lstm_attention_forward.7
= control target key start
LH: loop header
LB: loop body
LE: loop exit
PB: predicated region body
PF: predicated region fallthrough
CT: control target
= control target key end

     0   :  { %s1040_s12 = smov 0   ;;  %s1443_s0 = inlined_call_operand.vmem [shape: bf16[8,10,10,16], index: 0, kind: input, shape index: {}]   ;;  %s1444_s1 = inlined_call_operand.vmem [shape: f32[9,16,32], index: 1, kind: input, shape index: {}]   ;;  %s1445_s2 = inlined_call_operand.vmem [shape: f32[1,32], index: 2, kind: input, shape index: {}]   ;;  %s1446_s3 = inlined_call_operand.vmem [shape: bf16[8,64,32], index: 3, kind: output, shape index: {}]  }
   0x1 LB: > { %s897_s13 = sadd.s32 4294967295, %s1018_s12   ;;  %p901_p0 = scmp.ge.s32.totalorder %s1018_s12, 1  ;;  %s1018_s12 = sphi %s1040_s12, %s13_s12  }
   0x2   : > { %p137_p1 = scmp.lt.s32.totalorder %s1018_s12, 9 }
   0x4   : > { %p138_p2 = pnand %p901_p0, %p137_p1 }
   0x5   : > { %p161_p3 = scmp.lt.s32.totalorder (!%p138_p2), %s897_s13, 7 }
   0x6   : > { %141 = sbr.rel (%p138_p2) target bundleno = 303 (0x12f), region = 32 }
   0xb   : > { %v906_v0 = vld [vmem:[%s1444_s1 + $0x18] sm:$0xff]  ;;  %v905_v1 = vld [vmem:[%s1444_s1 + $0x10] sm:$0xff]  ;;  %v924_v2 = vld [vmem:[%s1444_s1 + $0x28] sm:$0xff]  ;;  %s1448_s13 = smov (!%p161_p3, %s897_s13), 7  ;;  %vm229_vm0 = vcmask 1046528   ;;  %vm257_vm1 = vcmask 130048  }
   0xc   : > { %996 = vmatpush.msra.mxu1 %v906_v0  ;;  %997 = vmatpush.msra.mxu2 %v906_v0  ;;  %v934_v3 = vld [vmem:[%s1444_s1 + $0x38] sm:$0xff]  ;;  %v212_v4 = vld [vmem:[%s1444_s1 + $0x8] sm:$0xff]  ;;  %v923_v5 = vld [vmem:[%s1444_s1 + $0x20] sm:$0xff]  ;;  %s1002_s26 = smul.u32 80, %s1448_s13  ;;  %vm372_vm2 = vcmask 1045504   ;;  %s995_s4 = sshll.u32 %s1448_s13, 5 }
   0xd   : > { %998 = vmatpush.msra.mxu3 %v906_v0  ;;  %288 = vmatpush.msra.mxu0 %v906_v0  ;;  %v933_v6 = vld [vmem:[%s1444_s1 + $0x30] sm:$0xff]  ;;  %v944_v7 = vld [vmem:[%s1444_s1 + $0x48] sm:$0xff]  ;;  %v211_v8 = vld [vmem:[%s1444_s1] sm:$0xff]  ;;  %s1393_s7 = scalar_lea.vmem %s1446_s3, %s995_s4  ;;  %vm833_vm3 = vcmask 257024  }
   0xe   : > { %999 = vmatpush.msra.mxu1 %v905_v1  ;;  %1000 = vmatpush.msra.mxu2 %v905_v1  ;;  %s1081_s8 = scalar_lea.vmem %s1443_s0, %s1002_s26  ;;  %v943_v9 = vld [vmem:[%s1444_s1 + $0x40] sm:$0xff]  ;;  %v964_v35 = vld [vmem:[%s1444_s1 + $0x68] sm:$0xff]  ;;  %v974_v41 = vld [vmem:[%s1444_s1 + $0x78] sm:$0xff] }
   0xf   : > { %1001 = vmatpush.msra.mxu3 %v905_v1  ;;  %289 = vmatpush.msra.mxu0 %v905_v1  ;;  %v175_v10 = vld [vmem:[%s1081_s8 + $0x10] sm:$0xf]  ;;  %v1088_v11 = vld [vmem:[%s1081_s8 + $0x14] sm:$0x1]  ;;  %v179_v12 = vld [vmem:[%s1081_s8 + $0x20] sm:$0xf] }
  0x10   : > { %430 = vmatpush.msrb.mxu2 %v924_v2  ;;  %345 = vmatpush.msrb.mxu1 %v212_v4  ;;  %v1091_v13 = vunpack.c.l.bf16 %v175_v10  ;;  %v196_v14 = vunpack.c.l.bf16 %v1088_v11  ;;  %v1095_v15 = vld [vmem:[%s1081_s8 + $0x24] sm:$0x1]  ;;  %v1097_v16 = vunpack.c.l.bf16 %v179_v12  ;;  %v183_v17 = vld [vmem:[%s1081_s8 + $0x30] sm:$0xf]  ;;  %v1101_v18 = vld [vmem:[%s1081_s8 + $0x34] sm:$0x1] }
  0x11   : > { %485 = vmatpush.msrb.mxu3 %v934_v3  ;;  %543 = vmatpush.msrb.mxu0 %v944_v7  ;;  %v200_v19 = vunpack.c.l.bf16 %v1095_v15  ;;  %v1104_v20 = vunpack.c.l.bf16 %v183_v17  ;;  %v204_v21 = vunpack.c.l.bf16 %v1101_v18  ;;  %v177_v22 = vld [vmem:[%s1081_s8 + $0x18] sm:$0xf]  ;;  %v1109_v23 = vld [vmem:[%s1081_s8 + $0x1c] sm:$0x1]  ;;  %v181_v24 = vld [vmem:[%s1081_s8 + $0x28] sm:$0xf] }
  0x12   : > { %431 = vmatpush.msrb.mxu2 %v923_v5  ;;  %346 = vmatpush.msrb.mxu1 %v211_v8  ;;  %v236_v25 = vrot.slane %v1091_v13, 1  ;;  %v237_v26 = vrot.slane %v196_v14, 1  ;;  %v242_v27 = vrot.slane %v1097_v16, 1  ;;  %v1116_v28 = vunpack.c.l.bf16 %v177_v22  ;;  %v1119_v29 = vld [vmem:[%s1081_s8 + $0x2c] sm:$0x1]  ;;  %v954_v46 = vld [vmem:[%s1444_s1 + $0x58] sm:$0xff] }
  0x13   : > { %486 = vmatpush.msrb.mxu3 %v933_v6  ;;  %544 = vmatpush.msrb.mxu0 %v943_v9  ;;  %v243_v30 = vrot.slane %v200_v19, 1  ;;  %v248_v31 = vrot.slane %v1104_v20, 1  ;;  %v249_v32 = vrot.slane %v204_v21, 1  ;;  %v198_v33 = vunpack.c.l.bf16 %v1109_v23  ;;  %v171_v34 = vld [vmem:[%s1081_s8] sm:$0xf]  ;;  %v984_v62 = vld [vmem:[%s1444_s1 + $0x88] sm:$0xff] }
  0x14   : > { %v1132_v36 = vsel %vm229_vm0, %v236_v25, %v237_v26  ;;  %v1134_v37 = vunpack.c.l.bf16 %v181_v24  ;;  %v202_v38 = vunpack.c.l.bf16 %v1119_v29  ;;  %v172_v39 = vld [vmem:[%s1081_s8 + $0x4] sm:$0x1]  ;;  %v185_v40 = vld [vmem:[%s1081_s8 + $0x38] sm:$0xf]  ;;  %v191_v44 = vunpack.c.l.bf16 %v171_v34  ;;  %v1151_v45 = vld [vmem:[%s1081_s8 + $0x3c] sm:$0x1] }
  0x15   : > { %909 = vmatmul.msk.f32.vlgmr.msra.gmra.mxu1 %vm257_vm1, %v1132_v36  ;;  %v1145_v42 = vsel %vm229_vm0, %v242_v27, %v243_v30  ;;  %v1148_v43 = vsel %vm229_vm0, %v248_v31, %v249_v32  ;;  %v239_v47 = vrot.slane %v1116_v28, 1  ;;  %v240_v48 = vrot.slane %v198_v33, 1  ;;  %v173_v51 = vld [vmem:[%s1081_s8 + $0x8] sm:$0xf]  ;;  %v174_v52 = vld [vmem:[%s1081_s8 + $0xc] sm:$0x1] }
  0x16   : > { %911 = vmatmul.msk.f32.vlgmr.msra.gmra.mxu2 %vm257_vm1, %v1145_v42  ;;  %913 = vmatmul.msk.f32.vlgmr.msra.gmra.mxu3 %vm257_vm1, %v1148_v43  ;;  %v192_v49 = vunpack.c.l.bf16 %v172_v39  ;;  %v1163_v50 = vunpack.c.l.bf16 %v185_v40  ;;  %v245_v53 = vrot.slane %v1134_v37, 1  ;;  %v246_v54 = vrot.slane %v202_v38, 1  ;;  %v963_v9 = vld [vmem:[%s1444_s1 + $0x60] sm:$0xff]  ;;  %v973_v10 = vld [vmem:[%s1444_s1 + $0x70] sm:$0xff] }
  0x17   : > { %v230_v55 = vrot.slane %v191_v44, 1  ;;  %v206_v56 = vunpack.c.l.bf16 %v1151_v45  ;;  %655 = vmatpush.msra.mxu2 %v964_v35  ;;  %713 = vmatpush.msra.mxu3 %v974_v41  ;;  %v193_v60 = vunpack.c.l.bf16 %v173_v51  ;;  %v194_v61 = vunpack.c.l.bf16 %v174_v52  ;;  %v953_v12 = vld [vmem:[%s1444_s1 + $0x50] sm:$0xff]  ;;  %v983_v25 = vld [vmem:[%s1444_s1 + $0x80] sm:$0xff] }
  0x18   : > { %v231_v57 = vrot.slane %v192_v49, 1  ;;  %v251_v58 = vrot.slane %v1163_v50, 1  ;;  %600 = vmatpush.msra.mxu1 %v954_v46  ;;  %v1178_v63 = vsel %vm229_vm0, %v239_v47, %v240_v48  ;;  %v1182_v1 = vsel %vm229_vm0, %v245_v53, %v246_v54  ;;  %v188_v39 = vld [vmem:[%s1081_s8 + $0x44] sm:$0x1] }
  0x19   : > { %v252_v59 = vrot.slane %v206_v56, 1  ;;  %v233_v3 = vrot.slane %v193_v60, 1  ;;  %v234_v4 = vrot.slane %v194_v61, 1  ;;  %v373_v5 = vrot.slane %v191_v44, 2  ;;  %656 = vmatpush.msra.mxu2 %v963_v9  ;;  %714 = vmatpush.msra.mxu3 %v973_v10 }
  0x1a   : > { %v232_v0 = vsel %vm229_vm0, %v230_v55, %v231_v57  ;;  %v374_v6 = vrot.slane %v192_v49, 2  ;;  %v376_v17 = vrot.slane %v193_v60, 2  ;;  %v377_v22 = vrot.slane %v194_v61, 2  ;;  %601 = vmatpush.msra.mxu1 %v953_v12 }
  0x1b   : > { %907 = vmatmul.msk.f32.vlgmr.msra.gmra.mxu0 %vm257_vm1, %v232_v0  ;;  %v1186_v2 = vsel %vm229_vm0, %v251_v58, %v252_v59  ;;  %v235_v7 = vsel %vm229_vm0, %v233_v3, %v234_v4  ;;  %v379_v26 = vrot.slane %v1091_v13, 2  ;;  %v380_v27 = vrot.slane %v196_v14, 2 }
  0x1c   : > { %770 = vmatpush.msra.mxu0 %v984_v62  ;;  %v375_v8 = vsel %vm372_vm2, %v373_v5, %v374_v6  ;;  %v378_v24 = vsel %vm372_vm2, %v376_v17, %v377_v22  ;;  %v382_v31 = vrot.slane %v1116_v28, 2  ;;  %v383_v11 = vrot.slane %v198_v33, 2 }
  0x1d   : > { %910 = vmatmul.msk.f32.gmra.mxu1 %vm257_vm1, %v1178_v63  ;;  %v381_v30 = vsel %vm372_vm2, %v379_v26, %v380_v27  ;;  %v385_v32 = vrot.slane %v1097_v16, 2  ;;  %v386_v34 = vrot.slane %v200_v19, 2  ;;  %v388_v33 = vrot.slane %v1134_v37, 2 }
  0x1e   : > { %912 = vmatmul.msk.f32.gmra.mxu2 %vm257_vm1, %v1182_v1  ;;  %914 = vmatmul.msk.f32.gmra.mxu3 %vm257_vm1, %v1186_v2  ;;  %v384_v14 = vsel %vm372_vm2, %v382_v31, %v383_v11  ;;  %v389_v15 = vrot.slane %v202_v38, 2  ;;  %v391_v35 = vrot.slane %v1104_v20, 2  ;;  %v392_v29 = vrot.slane %v204_v21, 2  ;;  %v187_v21 = vld [vmem:[%s1081_s8 + $0x40] sm:$0xf] }
  0x1f   : > { %771 = vmatpush.msra.mxu0 %v983_v25  ;;  %v387_v23 = vsel %vm372_vm2, %v385_v32, %v386_v34  ;;  %v394_v40 = vrot.slane %v1163_v50, 2  ;;  %v395_v18 = vrot.slane %v206_v56, 2  ;;  %v208_v41 = vunpack.c.l.bf16 %v188_v39 }
  0x20   : > { %v390_v19 = vsel %vm372_vm2, %v388_v33, %v389_v15  ;;  %v393_v38 = vsel %vm372_vm2, %v391_v35, %v392_v29 }
  0x21   : > { %v396_v46 = vsel %vm372_vm2, %v394_v40, %v395_v18  ;;  %v522_v48 = vrot.slane %v208_v41, 1 }
  0x23   : > { %908 = vmatmul.msk.f32.gmra.mxu0 %vm257_vm1, %v235_v7 }
  0x25   : > { %915 = vmatmul.msk.f32.vlgmr.msrb.gmra.mxu1 %vm257_vm1, %v191_v44  ;;  %v207_v44 = vunpack.c.l.bf16 %v187_v21 }
  0x26   : > { %925 = vmatmul.msk.f32.vlgmr.msrb.gmra.mxu2 %vm257_vm1, %v375_v8  ;;  %935 = vmatmul.msk.f32.vlgmr.msrb.gmra.mxu3 %vm257_vm1, %v193_v60 }
  0x27   : > { %v521_v47 = vrot.slane %v207_v44, 1 }
  0x29   : > { %v523_v45 = vsel %vm229_vm0, %v521_v47, %v522_v48 }
  0x2b   : > { %945 = vmatmul.msk.f32.vlgmr.msrb.gmra.mxu0 %vm257_vm1, %v235_v7 }
  0x2d   : > { %916 = vmatmul.msk.f32.gmra.mxu1 %vm257_vm1, %v193_v60 }
  0x2e   : > { %926 = vmatmul.msk.f32.gmra.mxu2 %vm257_vm1, %v378_v24  ;;  %936 = vmatmul.msk.f32.gmra.mxu3 %vm257_vm1, %v1091_v13 }
  0x33   : > { %946 = vmatmul.msk.f32.gmra.mxu0 %vm257_vm1, %v1132_v36 }
  0x35   : > { %917 = vmatmul.msk.f32.gmra.mxu1 %vm257_vm1, %v1091_v13 }
  0x36   : > { %927 = vmatmul.msk.f32.gmra.mxu2 %vm257_vm1, %v381_v30  ;;  %937 = vmatmul.msk.f32.gmra.mxu3 %vm257_vm1, %v1116_v28 }
  0x3b   : > { %947 = vmatmul.msk.f32.gmra.mxu0 %vm257_vm1, %v1178_v63 }
  0x3d   : > { %918 = vmatmul.msk.f32.gmra.mxu1 %vm257_vm1, %v1116_v28 }
  0x3e   : > { %928 = vmatmul.msk.f32.gmra.mxu2 %vm257_vm1, %v384_v14  ;;  %938 = vmatmul.msk.f32.gmra.mxu3 %vm257_vm1, %v1097_v16 }
  0x43   : > { %948 = vmatmul.msk.f32.gmra.mxu0 %vm257_vm1, %v1145_v42 }
  0x45   : > { %919 = vmatmul.msk.f32.gmra.mxu1 %vm257_vm1, %v1097_v16 }
  0x46   : > { %929 = vmatmul.msk.f32.gmra.mxu2 %vm257_vm1, %v387_v23  ;;  %939 = vmatmul.msk.f32.gmra.mxu3 %vm257_vm1, %v1134_v37 }
  0x4b   : > { %949 = vmatmul.msk.f32.gmra.mxu0 %vm257_vm1, %v1182_v1 }
  0x4d   : > { %920 = vmatmul.msk.f32.gmra.mxu1 %vm257_vm1, %v1134_v37 }
  0x4e   : > { %930 = vmatmul.msk.f32.gmra.mxu2 %vm257_vm1, %v390_v19  ;;  %940 = vmatmul.msk.f32.gmra.mxu3 %vm257_vm1, %v1104_v20 }
  0x53   : > { %950 = vmatmul.msk.f32.gmra.mxu0 %vm257_vm1, %v1148_v43 }
  0x55   : > { %921 = vmatmul.msk.f32.gmra.mxu1 %vm257_vm1, %v1104_v20 }
  0x56   : > { %931 = vmatmul.msk.f32.gmra.mxu2 %vm257_vm1, %v393_v38  ;;  %941 = vmatmul.msk.f32.gmra.mxu3 %vm257_vm1, %v1163_v50 }
  0x5b   : > { %951 = vmatmul.msk.f32.gmra.mxu0 %vm257_vm1, %v1186_v2 }
  0x5d   : > { %922 = vmatmul.msk.f32.gmra.mxu1 %vm257_vm1, %v1163_v50 }
  0x5e   : > { %932 = vmatmul.msk.f32.gmra.mxu2 %vm257_vm1, %v396_v46  ;;  %942 = vmatmul.msk.f32.gmra.mxu3 %vm257_vm1, %v207_v44 }
  0x63   : > { %952 = vmatmul.msk.f32.gmra.mxu0 %vm257_vm1, %v523_v45 }
  0x65   : > { %955 = vmatmul.msk.f32.vlgmr.msra.gmra.mxu1 %vm257_vm1, %v378_v24 }
  0x66   : > { %965 = vmatmul.msk.f32.vlgmr.msra.gmra.mxu2 %vm257_vm1, %v1091_v13  ;;  %975 = vmatmul.msk.f32.vlgmr.msra.gmra.mxu3 %vm257_vm1, %v1132_v36  ;;  %v189_v13 = vld [vmem:[%s1081_s8 + $0x48] sm:$0xf] }
  0x6b   : > { %985 = vmatmul.msk.f32.vlgmr.msra.gmra.mxu0 %vm257_vm1, %v381_v30 }
  0x6d   : > { %956 = vmatmul.msk.f32.gmra.mxu1 %vm257_vm1, %v381_v30 }
  0x6e   : > { %966 = vmatmul.msk.f32.gmra.mxu2 %vm257_vm1, %v1116_v28  ;;  %976 = vmatmul.msk.f32.gmra.mxu3 %vm257_vm1, %v1178_v63 }
  0x73   : > { %986 = vmatmul.msk.f32.gmra.mxu0 %vm257_vm1, %v384_v14 }
  0x75   : > { %957 = vmatmul.msk.f32.gmra.mxu1 %vm257_vm1, %v384_v14 }
  0x76   : > { %967 = vmatmul.msk.f32.gmra.mxu2 %vm257_vm1, %v1097_v16  ;;  %977 = vmatmul.msk.f32.gmra.mxu3 %vm257_vm1, %v1145_v42  ;;  %v190_v16 = vld [vmem:[%s1081_s8 + $0x4c] sm:$0x1]  ;;  %v579_v42 = vrot.slane %v208_v41, 2 }
  0x77   : > { %v210_v36 = vunpack.c.l.bf16 %v190_v16 }
  0x79   : > { %v692_v49 = vrot.slane %v210_v36, 1  ;;  %v749_v57 = vrot.slane %v210_v36, 2 }
  0x7b   : > { %987 = vmatmul.msk.f32.gmra.mxu0 %vm257_vm1, %v387_v23 }
  0x7d   : > { %958 = vmatmul.msk.f32.gmra.mxu1 %vm257_vm1, %v387_v23 }
  0x7e   : > { %968 = vmatmul.msk.f32.gmra.mxu2 %vm257_vm1, %v1134_v37  ;;  %978 = vmatmul.msk.f32.gmra.mxu3 %vm257_vm1, %v1182_v1  ;;  %v578_v37 = vrot.slane %v207_v44, 2 }
  0x80   : > { %v580_v54 = vsel %vm372_vm2, %v578_v37, %v579_v42  ;;  %v1386_v42 = vld [vmem:[%s1445_s2] ss:$0 sm:$0xff] }
  0x83   : > { %988 = vmatmul.msk.f32.gmra.mxu0 %vm257_vm1, %v390_v19 }
  0x85   : > { %959 = vmatmul.msk.f32.gmra.mxu1 %vm257_vm1, %v390_v19 }
  0x86   : > { %969 = vmatmul.msk.f32.gmra.mxu2 %vm257_vm1, %v1104_v20  ;;  %979 = vmatmul.msk.f32.gmra.mxu3 %vm257_vm1, %v1148_v43  ;;  %v209_v20 = vunpack.c.l.bf16 %v189_v13 }
  0x88   : > { %v691_v43 = vrot.slane %v209_v20, 1  ;;  %v748_v56 = vrot.slane %v209_v20, 2 }
  0x8a   : > { %v693_v55 = vsel %vm229_vm0, %v691_v43, %v692_v49  ;;  %v750_v59 = vsel %vm372_vm2, %v748_v56, %v749_v57 }
  0x8b   : > { %989 = vmatmul.msk.f32.gmra.mxu0 %vm257_vm1, %v393_v38 }
  0x8d   : > { %960 = vmatmul.msk.f32.gmra.mxu1 %vm257_vm1, %v393_v38 }
  0x8e   : > { %970 = vmatmul.msk.f32.gmra.mxu2 %vm257_vm1, %v1163_v50  ;;  %980 = vmatmul.msk.f32.gmra.mxu3 %vm257_vm1, %v1186_v2 }
  0x92   : > { %v1324_v28 = vpop.f32.mrf.mxu1 }
  0x93   : > { %990 = vmatmul.msk.f32.gmra.mxu0 %vm257_vm1, %v396_v46 }
  0x95   : > { %961 = vmatmul.msk.f32.gmra.mxu1 %vm257_vm1, %v396_v46 }
  0x96   : > { %971 = vmatmul.msk.f32.gmra.mxu2 %vm257_vm1, %v207_v44  ;;  %981 = vmatmul.msk.f32.gmra.mxu3 %vm257_vm1, %v523_v45 }
  0x98   : > { %v291_v50 = vpop.f32.mrf.mxu0 }
  0x99   : > { %v1330_v51 = vpop.f32.mrf.mxu2  ;;  %v1332_v52 = vpop.f32.mrf.mxu3 }
  0x9a   : > { %v1334_v53 = vpop.f32.mrf.mxu1 }
  0x9b   : > { %991 = vmatmul.msk.f32.gmra.mxu0 %vm257_vm1, %v580_v54 }
  0x9d   : > { %962 = vmatmul.msk.f32.gmra.mxu1 %vm257_vm1, %v580_v54 }
  0x9e   : > { %972 = vmatmul.msk.f32.gmra.mxu2 %vm257_vm1, %v209_v20  ;;  %982 = vmatmul.msk.f32.gmra.mxu3 %vm257_vm1, %v693_v55 }
  0xa0   : > { %v294_v58 = vpop.f32.mrf.mxu0 }
  0xa1   : > { %v1343_v60 = vpop.f32.mrf.mxu2  ;;  %v1345_v61 = vpop.f32.mrf.mxu3 }
  0xa2   : > { %v348_v62 = vpop.f32.mrf.mxu1 }
  0xa3   : > { %992 = vmatmul.msk.f32.gmra.mxu0 %vm257_vm1, %v750_v59  ;;  %v349_v19 = vadd.f32 %v348_v62, %v291_v50 }
  0xa8   : > { %v546_v63 = vpop.f32.mrf.mxu0 }
  0xa9   : > { %v433_v0 = vpop.f32.mrf.mxu2  ;;  %v488_v1 = vpop.f32.mrf.mxu3 }
  0xaa   : > { %v351_v2 = vpop.f32.mrf.mxu1  ;;  %v457_v35 = vadd.f32 %v433_v0, %v349_v19 }
  0xab   : > { %v352_v21 = vadd.f32 %v351_v2, %v294_v58 }
  0xac   : > { %v512_v40 = vadd.f32 %v488_v1, %v457_v35 }
  0xae   : > { %v570_v41 = vadd.f32 %v546_v63, %v512_v40 }
  0xb0   : > { %v549_v3 = vpop.f32.mrf.mxu0 }
  0xb1   : > { %v436_v4 = vpop.f32.mrf.mxu2  ;;  %v491_v5 = vpop.f32.mrf.mxu3 }
  0xb2   : > { %v354_v6 = vpop.f32.mrf.mxu1  ;;  %v458_v44 = vadd.f32 %v436_v4, %v352_v21 }
  0xb3   : > { %v355_v36 = vadd.f32 %v354_v6, %v1324_v28 }
  0xb4   : > { %v513_v13 = vadd.f32 %v491_v5, %v458_v44 }
  0xb6   : > { %v571_v43 = vadd.f32 %v549_v3, %v513_v13 }
  0xb8   : > { %v552_v7 = vpop.f32.mrf.mxu0 }
  0xb9   : > { %v439_v8 = vpop.f32.mrf.mxu2  ;;  %v494_v9 = vpop.f32.mrf.mxu3 }
  0xba   : > { %v357_v10 = vpop.f32.mrf.mxu1  ;;  %v459_v49 = vadd.f32 %v439_v8, %v355_v36 }
  0xbb   : > { %v358_v0 = vadd.f32 %v357_v10, %v1334_v53 }
  0xbc   : > { %v514_v59 = vadd.f32 %v494_v9, %v459_v49 }
  0xbe   : > { %v572_v3 = vadd.f32 %v552_v7, %v514_v59 }
  0xc0   : > { %v1348_v12 = vpop.f32.mrf.mxu0 }
  0xc1   : > { %v442_v17 = vpop.f32.mrf.mxu2  ;;  %v497_v22 = vpop.f32.mrf.mxu3 }
  0xc2   : > { %v1350_v24 = vpop.f32.mrf.mxu1  ;;  %v460_v4 = vadd.f32 %v442_v17, %v358_v0 }
  0xc3   : > { %v361_v53 = vadd.f32 %v1350_v24, %v1330_v51 }
  0xc4   : > { %v515_v40 = vadd.f32 %v497_v22, %v460_v4 }
  0xc6   : > { %v573_v17 = vadd.f32 %v1348_v12, %v515_v40 }
  0xc8   : > { %v1352_v25 = vpop.f32.mrf.mxu0 }
  0xc9   : > { %v1354_v26 = vpop.f32.mrf.mxu2  ;;  %v1356_v27 = vpop.f32.mrf.mxu3 }
  0xca   : > { %v1358_v30 = vpop.f32.mrf.mxu1  ;;  %v461_v44 = vadd.f32 %v1354_v26, %v361_v53 }
  0xcb   : > { %v364_v12 = vadd.f32 %v1358_v30, %v1343_v60 }
  0xd0   : > { %v1360_v31 = vpop.f32.mrf.mxu0 }
  0xd1   : > { %v1362_v11 = vpop.f32.mrf.mxu2  ;;  %v1364_v14 = vpop.f32.mrf.mxu3 }
  0xd2   : > { %v1366_v32 = vpop.f32.mrf.mxu1 }
  0xd8   : > { %v1368_v34 = vpop.f32.mrf.mxu0 }
  0xd9   : > { %v1370_v23 = vpop.f32.mrf.mxu2  ;;  %v1372_v33 = vpop.f32.mrf.mxu3 }
  0xda   : > { %v1374_v15 = vpop.f32.mrf.mxu1 }
  0xe0   : > { %v1376_v29 = vpop.f32.mrf.mxu0 }
  0xe1   : > { %v1378_v38 = vpop.f32.mrf.mxu2  ;;  %v1380_v39 = vpop.f32.mrf.mxu3 }
  0xe2   : > { %v603_v18 = vpop.f32.mrf.mxu1 }
  0xe3   : > { %v627_v46 = vadd.f32 %v603_v18, %v570_v41 }
  0xe8   : > { %v773_v47 = vpop.f32.mrf.mxu0 }
  0xe9   : > { %v658_v48 = vpop.f32.mrf.mxu2  ;;  %v716_v45 = vpop.f32.mrf.mxu3 }
  0xea   : > { %v682_v16 = vadd.f32 %v658_v48, %v627_v46  ;;  %v606_v20 = vpop.f32.mrf.mxu1 }
  0xeb   : > { %v628_v54 = vadd.f32 %v606_v20, %v571_v43  ;;  %v462_v43 = vadd.f32 %v1362_v11, %v364_v12 }
  0xec   : > { %v740_v37 = vadd.f32 %v716_v45, %v682_v16  ;;  %v516_v16 = vadd.f32 %v1356_v27, %v461_v44 }
  0xee   : > { %v797_v50 = vadd.f32 %v773_v47, %v740_v37  ;;  %v574_v37 = vadd.f32 %v1352_v25, %v516_v16  ;;  %v367_v25 = vadd.f32 %v1366_v32, %v1332_v52 }
  0xf0   : > { %v809_v55 = vadd.f32 %v1386_v42, %v797_v50  ;;  %v776_v56 = vpop.f32.mrf.mxu0 }
  0xf1   : > { %v661_v57 = vpop.f32.mrf.mxu2  ;;  %v719_v58 = vpop.f32.mrf.mxu3 }
  0xf2   : > { %v817_v62 = vmax.f32 %v809_v55, 0.0  ;;  %v683_v63 = vadd.f32 %v661_v57, %v628_v54  ;;  %v609_v28 = vpop.f32.mrf.mxu1  ;;  %v517_v57 = vadd.f32 %v1364_v14, %v462_v43 }
  0xf3   : > { %v629_v6 = vadd.f32 %v609_v28, %v572_v3 }
  0xf4   : > { %v825_v1 = vpack.c.bf16 %v817_v62, %v817_v62  ;;  %v741_v2 = vadd.f32 %v719_v58, %v683_v63  ;;  %v575_v62 = vadd.f32 %v1360_v31, %v517_v57  ;;  %v463_v63 = vadd.f32 %v1370_v23, %v367_v25 }
  0xf5   : > { %v370_v31 = vadd.f32 %v1374_v15, %v1345_v61 }
  0xf6   : > { %834 = vst.msk [vmem:[%s1393_s7] sm:$0xf] %vm833_vm3, %v825_v1  ;;  %v798_v5 = vadd.f32 %v776_v56, %v741_v2  ;;  %v518_v4 = vadd.f32 %v1372_v33, %v463_v63 }
  0xf8   : > { %v810_v8 = vadd.f32 %v1386_v42, %v798_v5  ;;  %v779_v9 = vpop.f32.mrf.mxu0 }
  0xf9   : > { %v664_v19 = vpop.f32.mrf.mxu2  ;;  %v722_v35 = vpop.f32.mrf.mxu3 }
  0xfa   : > { %v818_v18 = vmax.f32 %v810_v8, 0.0  ;;  %v684_v21 = vadd.f32 %v664_v19, %v629_v6  ;;  %v612_v41 = vpop.f32.mrf.mxu1  ;;  %v576_v8 = vadd.f32 %v1368_v34, %v518_v4 }
  0xfb   : > { %v630_v47 = vadd.f32 %v612_v41, %v573_v17 }
  0xfc   : > { %v826_v10 = vpack.c.bf16 %v818_v18, %v818_v18  ;;  %v742_v7 = vadd.f32 %v722_v35, %v684_v21 }
  0xfe   : > { %835 = vst.msk [vmem:[%s1393_s7 + $0x4] sm:$0xf] %vm833_vm3, %v826_v10  ;;  %v799_v46 = vadd.f32 %v779_v9, %v742_v7  ;;  %v464_v9 = vadd.f32 %v1378_v38, %v370_v31 }
 0x100   : > { %v811_v48 = vadd.f32 %v1386_v42, %v799_v46  ;;  %v782_v22 = vpop.f32.mrf.mxu0  ;;  %v519_v41 = vadd.f32 %v1380_v39, %v464_v9 }
 0x101   : > { %v667_v45 = vpop.f32.mrf.mxu2  ;;  %v725_v13 = vpop.f32.mrf.mxu3 }
 0x102   : > { %v819_v20 = vmax.f32 %v811_v48, 0.0  ;;  %v685_v51 = vadd.f32 %v667_v45, %v630_v47  ;;  %v615_v24 = vpop.f32.mrf.mxu1  ;;  %v577_v7 = vadd.f32 %v1376_v29, %v519_v41 }
 0x103   : > { %v631_v50 = vadd.f32 %v615_v24, %v574_v37 }
 0x104   : > { %v827_v36 = vpack.c.bf16 %v819_v20, %v819_v20  ;;  %v743_v26 = vadd.f32 %v725_v13, %v685_v51 }
 0x106   : > { %836 = vst.msk [vmem:[%s1393_s7 + $0x8] sm:$0xf] %vm833_vm3, %v827_v36  ;;  %v800_v49 = vadd.f32 %v782_v22, %v743_v26 }
 0x108   : > { %v812_v54 = vadd.f32 %v1386_v42, %v800_v49  ;;  %v785_v27 = vpop.f32.mrf.mxu0 }
 0x109   : > { %v670_v55 = vpop.f32.mrf.mxu2  ;;  %v728_v56 = vpop.f32.mrf.mxu3 }
 0x10a   : > { %v820_v58 = vmax.f32 %v812_v54, 0.0  ;;  %v686_v60 = vadd.f32 %v670_v55, %v631_v50  ;;  %v618_v30 = vpop.f32.mrf.mxu1 }
 0x10b   : > { %v632_v0 = vadd.f32 %v618_v30, %v575_v62 }
 0x10c   : > { %v828_v59 = vpack.c.bf16 %v820_v58, %v820_v58  ;;  %v744_v11 = vadd.f32 %v728_v56, %v686_v60 }
 0x10e   : > { %837 = vst.msk [vmem:[%s1393_s7 + $0xc] sm:$0xf] %vm833_vm3, %v828_v59  ;;  %v801_v28 = vadd.f32 %v785_v27, %v744_v11 }
 0x110   : > { %v813_v1 = vadd.f32 %v1386_v42, %v801_v28  ;;  %v788_v14 = vpop.f32.mrf.mxu0 }
 0x111   : > { %v673_v2 = vpop.f32.mrf.mxu2  ;;  %v731_v3 = vpop.f32.mrf.mxu3 }
 0x112   : > { %v821_v5 = vmax.f32 %v813_v1, 0.0  ;;  %v687_v52 = vadd.f32 %v673_v2, %v632_v0  ;;  %v621_v32 = vpop.f32.mrf.mxu1 }
 0x113   : > { %v633_v35 = vadd.f32 %v621_v32, %v576_v8 }
 0x114   : > { %v829_v6 = vpack.c.bf16 %v821_v5, %v821_v5  ;;  %v745_v23 = vadd.f32 %v731_v3, %v687_v52 }
 0x116   : > { %838 = vst.msk [vmem:[%s1393_s7 + $0x10] sm:$0xf] %vm833_vm3, %v829_v6  ;;  %v802_v19 = vadd.f32 %v788_v14, %v745_v23 }
 0x118   : > { %v814_v40 = vadd.f32 %v1386_v42, %v802_v19  ;;  %v791_v33 = vpop.f32.mrf.mxu0 }
 0x119   : > { %v676_v18 = vpop.f32.mrf.mxu2  ;;  %v734_v21 = vpop.f32.mrf.mxu3 }
 0x11a   : > { %v822_v53 = vmax.f32 %v814_v40, 0.0  ;;  %v688_v61 = vadd.f32 %v676_v18, %v633_v35  ;;  %v624_v34 = vpop.f32.mrf.mxu1 }
 0x11b   : > { %v634_v17 = vadd.f32 %v624_v34, %v577_v7 }
 0x11c   : > { %v830_v15 = vpack.c.bf16 %v822_v53, %v822_v53  ;;  %v746_v10 = vadd.f32 %v734_v21, %v688_v61 }
 0x11e   : > { %839 = vst.msk [vmem:[%s1393_s7 + $0x14] sm:$0xf] %vm833_vm3, %v830_v15  ;;  %v803_v38 = vadd.f32 %v791_v33, %v746_v10 }
 0x120   : > { %v815_v44 = vadd.f32 %v1386_v42, %v803_v38  ;;  %v794_v39 = vpop.f32.mrf.mxu0 }
 0x121   : > { %v679_v46 = vpop.f32.mrf.mxu2  ;;  %v737_v47 = vpop.f32.mrf.mxu3 }
 0x122   : > { %v823_v48 = vmax.f32 %v815_v44, 0.0  ;;  %v689_v22 = vadd.f32 %v679_v46, %v634_v17 }
 0x124   : > { %v831_v45 = vpack.c.bf16 %v823_v48, %v823_v48  ;;  %v747_v13 = vadd.f32 %v737_v47, %v689_v22 }
 0x126   : > { %840 = vst.msk [vmem:[%s1393_s7 + $0x18] sm:$0xf] %vm833_vm3, %v831_v45  ;;  %v804_v16 = vadd.f32 %v794_v39, %v747_v13 }
 0x128   : > { %v816_v20 = vadd.f32 %v1386_v42, %v804_v16 }
 0x12a   : > { %v824_v29 = vmax.f32 %v816_v20, 0.0 }
 0x12c   : > { %v832_v51 = vpack.c.bf16 %v824_v29, %v824_v29 }
 0x12e   : > { %841 = vst.msk [vmem:[%s1393_s7 + $0x1c] sm:$0xf] %vm833_vm3, %v832_v51 }
 0x12f PF: > { %s13_s12 = sadd.s32 1, %s1018_s12  }
 0x130   : > { %p10_p4 = scmp.ge.s32.totalorder %s13_s12, 10  }
 0x132   :  { %12 = sbr.rel (!%p10_p4) target bundleno = 1 (0x1), region = 70 }

// kernel: cnn_lstm_attention_forward.8
= control target key start
LH: loop header
LB: loop body
LE: loop exit
PB: predicated region body
PF: predicated region fallthrough
CT: control target
= control target key end

     0   :  { %s650_s1 = inlined_call_operand.vmem [shape: bf16[512,128], index: 1, kind: input, shape index: {}]   ;;  %s651_s0 = inlined_call_operand.vmem [shape: bf16[8,512], index: 0, kind: input, shape index: {}]   ;;  %s652_s2 = inlined_call_operand.vmem [shape: f32[1,128], index: 2, kind: input, shape index: {}]   ;;  %s653_s3 = inlined_call_operand.vmem [shape: f32[8,128], index: 3, kind: output, shape index: {}]  }
   0x1   :  { %v496_v0 = vld [vmem:[%s650_s1 + $0x38] sm:$0xff]  ;;  %v495_v4 = vld [vmem:[%s650_s1 + $0x30] sm:$0xff]  ;;  %v494_v8 = vld [vmem:[%s650_s1 + $0x28] sm:$0xff] }
   0x2   :  { %v504_v1 = vld [vmem:[%s650_s1 + $0x78] sm:$0xff]  ;;  %292 = vmatpush.bf16.msra.mxu0 %v496_v0  ;;  %v503_v5 = vld [vmem:[%s650_s1 + $0x70] sm:$0xff]  ;;  %v502_v9 = vld [vmem:[%s650_s1 + $0x68] sm:$0xff] }
   0x3   :  { %v512_v2 = vld [vmem:[%s650_s1 + $0xb8] sm:$0xff]  ;;  %305 = vmatpush.bf16.msra.mxu1 %v504_v1  ;;  %v511_v6 = vld [vmem:[%s650_s1 + $0xb0] sm:$0xff]  ;;  %v510_v10 = vld [vmem:[%s650_s1 + $0xa8] sm:$0xff] }
   0x4   :  { %v520_v3 = vld [vmem:[%s650_s1 + $0xf8] sm:$0xff]  ;;  %318 = vmatpush.bf16.msra.mxu2 %v512_v2  ;;  %v519_v7 = vld [vmem:[%s650_s1 + $0xf0] sm:$0xff]  ;;  %v518_v11 = vld [vmem:[%s650_s1 + $0xe8] sm:$0xff] }
   0x5   :  { %331 = vmatpush.bf16.msra.mxu3 %v520_v3  ;;  %v493_v12 = vld [vmem:[%s650_s1 + $0x20] sm:$0xff]  ;;  %v492_v16 = vld [vmem:[%s650_s1 + $0x18] sm:$0xff]  ;;  %v491_v20 = vld [vmem:[%s650_s1 + $0x10] sm:$0xff] }
   0x6   :  { %293 = vmatpush.bf16.msra.mxu0 %v495_v4  ;;  %v501_v13 = vld [vmem:[%s650_s1 + $0x60] sm:$0xff]  ;;  %v500_v17 = vld [vmem:[%s650_s1 + $0x58] sm:$0xff]  ;;  %v499_v21 = vld [vmem:[%s650_s1 + $0x50] sm:$0xff] }
   0x7   :  { %306 = vmatpush.bf16.msra.mxu1 %v503_v5  ;;  %v509_v14 = vld [vmem:[%s650_s1 + $0xa0] sm:$0xff]  ;;  %v508_v18 = vld [vmem:[%s650_s1 + $0x98] sm:$0xff]  ;;  %v507_v22 = vld [vmem:[%s650_s1 + $0x90] sm:$0xff] }
   0x8   :  { %319 = vmatpush.bf16.msra.mxu2 %v511_v6  ;;  %v517_v15 = vld [vmem:[%s650_s1 + $0xe0] sm:$0xff]  ;;  %v516_v19 = vld [vmem:[%s650_s1 + $0xd8] sm:$0xff]  ;;  %v515_v23 = vld [vmem:[%s650_s1 + $0xd0] sm:$0xff] }
   0x9   :  { %332 = vmatpush.bf16.msra.mxu3 %v519_v7  ;;  %v490_v24 = vld [vmem:[%s650_s1 + $0x8] sm:$0xff]  ;;  %v20_v26 = vld [vmem:[%s651_s0] sm:$0xff] }
   0xa   :  { %294 = vmatpush.bf16.msra.mxu0 %v494_v8  ;;  %v498_v25 = vld [vmem:[%s650_s1 + $0x48] sm:$0xff]  ;;  %v88_v30 = vunpack.c.l.b16 %v20_v26  ;;  %v89_v31 = vunpack.c.h.b16 %v20_v26  ;;  %v489_v32 = vld [vmem:[%s650_s1] sm:$0xff] }
   0xb   :  { %307 = vmatpush.bf16.msra.mxu1 %v502_v9  ;;  %v506_v27 = vld [vmem:[%s650_s1 + $0x88] sm:$0xff]  ;;  %v497_v33 = vld [vmem:[%s650_s1 + $0x40] sm:$0xff] }
   0xc   :  { %320 = vmatpush.bf16.msra.mxu2 %v510_v10  ;;  %v514_v28 = vld [vmem:[%s650_s1 + $0xc8] sm:$0xff]  ;;  %v505_v36 = vld [vmem:[%s650_s1 + $0x80] sm:$0xff]  ;;  %v92_v38 = vpack.c.b16 %v88_v30, %v88_v30  ;;  %v93_v39 = vpack.c.b16 %v89_v31, %v89_v31 }
   0xd   :  { %333 = vmatpush.bf16.msra.mxu3 %v518_v11  ;;  %v21_v29 = vld [vmem:[%s651_s0 + $0x8] sm:$0xff]  ;;  %v513_v37 = vld [vmem:[%s650_s1 + $0xc0] sm:$0xff] }
   0xe   :  { %295 = vmatpush.bf16.msra.mxu0 %v493_v12  ;;  %v90_v34 = vunpack.c.l.b16 %v21_v29  ;;  %v91_v35 = vunpack.c.h.b16 %v21_v29  ;;  %v521_v48 = vld [vmem:[%s652_s2] ss:$0 sm:$0xff] }
   0xf   :  { %308 = vmatpush.bf16.msra.mxu1 %v501_v13 }
  0x10   :  { %321 = vmatpush.bf16.msra.mxu2 %v509_v14  ;;  %v94_v40 = vpack.c.b16 %v90_v34, %v90_v34  ;;  %v95_v41 = vpack.c.b16 %v91_v35, %v91_v35 }
  0x11   :  { %334 = vmatpush.bf16.msra.mxu3 %v517_v15 }
  0x12   :  { %296 = vmatpush.bf16.msra.mxu0 %v492_v16 }
  0x13   :  { %309 = vmatpush.bf16.msra.mxu1 %v500_v17 }
  0x14   :  { %322 = vmatpush.bf16.msra.mxu2 %v508_v18 }
  0x15   :  { %335 = vmatpush.bf16.msra.mxu3 %v516_v19 }
  0x16   :  { %297 = vmatpush.bf16.msra.mxu0 %v491_v20 }
  0x17   :  { %310 = vmatpush.bf16.msra.mxu1 %v499_v21 }
  0x18   :  { %323 = vmatpush.bf16.msra.mxu2 %v507_v22 }
  0x19   :  { %336 = vmatpush.bf16.msra.mxu3 %v515_v23 }
  0x1a   :  { %298 = vmatpush.bf16.msra.mxu0 %v490_v24 }
  0x1b   :  { %311 = vmatpush.bf16.msra.mxu1 %v498_v25 }
  0x1c   :  { %324 = vmatpush.bf16.msra.mxu2 %v506_v27 }
  0x1d   :  { %337 = vmatpush.bf16.msra.mxu3 %v514_v28 }
  0x1e   :  { %299 = vmatpush.bf16.msra.mxu0 %v489_v32 }
  0x1f   :  { %312 = vmatpush.bf16.msra.mxu1 %v497_v33 }
  0x20   :  { %325 = vmatpush.bf16.msra.mxu2 %v505_v36 }
  0x21   :  { %338 = vmatpush.bf16.msra.mxu3 %v513_v37  ;;  %300 = vmatmul.bf16.vlgmr.msra.gmra.mxu0 %v92_v38 }
  0x22   :  { %313 = vmatmul.bf16.vlgmr.msra.gmra.mxu1 %v93_v39 }
  0x23   :  { %326 = vmatmul.bf16.vlgmr.msra.gmra.mxu2 %v94_v40 }
  0x24   :  { %339 = vmatmul.bf16.vlgmr.msra.gmra.mxu3 %v95_v41 }
  0x9e   :  { %v301_v42 = vpop.f32.mrf.mxu0 }
  0x9f   :  { %v314_v43 = vpop.f32.mrf.mxu1 }
  0xa0   :  { %v315_v44 = vadd.f32 %v314_v43, %v301_v42 }
  0xa6   :  { %v327_v45 = vpop.f32.mrf.mxu2  ;;  %v303_v49 = vpop.f32.mrf.mxu0 }
  0xa7   :  { %v340_v46 = vpop.f32.mrf.mxu3  ;;  %v328_v47 = vadd.f32 %v327_v45, %v315_v44  ;;  %v316_v50 = vpop.f32.mrf.mxu1 }
  0xa9   :  { %v341_v51 = vadd.f32 %v340_v46, %v328_v47 }
  0xab   :  { %v354_v52 = vadd.f32 %v521_v48, %v341_v51 }
  0xad   :  { %v355_v53 = vmax.f32 %v354_v52, 0.0 }
  0xae   :  { %v329_v54 = vpop.f32.mrf.mxu2 }
  0xaf   :  { %v342_v55 = vpop.f32.mrf.mxu3  ;;  %356 = vst [vmem:[%s653_s3] sm:$0xff] %v355_v53 }

// kernel: cnn_lstm_attention_forward.9
= control target key start
LH: loop header
LB: loop body
LE: loop exit
PB: predicated region body
PF: predicated region fallthrough
CT: control target
= control target key end

     0   :  { %s698_s1 = inlined_call_operand.vmem [shape: bf16[128,512], index: 1, kind: input, shape index: {}]   ;;  %s699_s0 = inlined_call_operand.vmem [shape: bf16[8,128], index: 0, kind: input, shape index: {}]   ;;  %s700_s2 = inlined_call_operand.vmem [shape: f32[1,512], index: 2, kind: input, shape index: {}]   ;;  %s701_s3 = inlined_call_operand.vmem [shape: f32[8,512], index: 3, kind: output, shape index: {}]  }
   0x1   :  { %v422_v0 = vld [vmem:[%s698_s1 + $0xe0] sm:$0xf]  ;;  %v466_v1 = vld [vmem:[%s698_s1 + $0xec] sm:$0xf0]  ;;  %v464_v2 = vld [vmem:[%s698_s1 + $0xe4] sm:$0xf] }
   0x2   :  { %v423_v3 = vor.u32 %v466_v1, %v422_v0  ;;  %v424_v4 = vld [vmem:[%s698_s1 + $0xf0] sm:$0xf0]  ;;  %v430_v5 = vld [vmem:[%s698_s1 + $0xe8] sm:$0xf]  ;;  %v467_v6 = vld [vmem:[%s698_s1 + $0xf4] sm:$0xf0] }
   0x3   :  { %v427_v7 = vor.u32 %v464_v2, %v424_v4  ;;  %v431_v8 = vor.u32 %v467_v6, %v430_v5  ;;  %v465_v9 = vld [vmem:[%s698_s1 + $0xec] sm:$0xf]  ;;  %v432_v10 = vld [vmem:[%s698_s1 + $0xf8] sm:$0xf0]  ;;  %v406_v11 = vld [vmem:[%s698_s1 + $0xc0] sm:$0xf] }
   0x4   :  { %219 = vmatpush.bf16.msra.mxu0 %v423_v3  ;;  %v435_v12 = vor.u32 %v465_v9, %v432_v10  ;;  %v462_v13 = vld [vmem:[%s698_s1 + $0xcc] sm:$0xf0]  ;;  %v460_v14 = vld [vmem:[%s698_s1 + $0xc4] sm:$0xf]  ;;  %v408_v15 = vld [vmem:[%s698_s1 + $0xd0] sm:$0xf0] }
   0x5   :  { %232 = vmatpush.bf16.msra.mxu1 %v427_v7  ;;  %245 = vmatpush.bf16.msra.mxu2 %v431_v8  ;;  %v407_v16 = vor.u32 %v462_v13, %v406_v11  ;;  %v411_v17 = vor.u32 %v460_v14, %v408_v15  ;;  %v414_v18 = vld [vmem:[%s698_s1 + $0xc8] sm:$0xf]  ;;  %v463_v19 = vld [vmem:[%s698_s1 + $0xd4] sm:$0xf0]  ;;  %v461_v20 = vld [vmem:[%s698_s1 + $0xcc] sm:$0xf] }
   0x6   :  { %258 = vmatpush.bf16.msra.mxu3 %v435_v12  ;;  %v415_v21 = vor.u32 %v463_v19, %v414_v18  ;;  %v416_v22 = vld [vmem:[%s698_s1 + $0xd8] sm:$0xf0]  ;;  %v390_v23 = vld [vmem:[%s698_s1 + $0xa0] sm:$0xf]  ;;  %v458_v24 = vld [vmem:[%s698_s1 + $0xac] sm:$0xf0] }
   0x7   :  { %v419_v25 = vor.u32 %v461_v20, %v416_v22  ;;  %v456_v26 = vld [vmem:[%s698_s1 + $0xa4] sm:$0xf]  ;;  %v392_v27 = vld [vmem:[%s698_s1 + $0xb0] sm:$0xf0]  ;;  %v398_v28 = vld [vmem:[%s698_s1 + $0xa8] sm:$0xf]  ;;  %v391_v29 = vor.u32 %v458_v24, %v390_v23 }
   0x8   :  { %220 = vmatpush.bf16.msra.mxu0 %v407_v16  ;;  %v459_v30 = vld [vmem:[%s698_s1 + $0xb4] sm:$0xf0]  ;;  %v457_v31 = vld [vmem:[%s698_s1 + $0xac] sm:$0xf]  ;;  %v400_v32 = vld [vmem:[%s698_s1 + $0xb8] sm:$0xf0]  ;;  %v395_v33 = vor.u32 %v456_v26, %v392_v27 }
   0x9   :  { %233 = vmatpush.bf16.msra.mxu1 %v411_v17  ;;  %246 = vmatpush.bf16.msra.mxu2 %v415_v21  ;;  %v399_v34 = vor.u32 %v459_v30, %v398_v28  ;;  %v374_v35 = vld [vmem:[%s698_s1 + $0x80] sm:$0xf]  ;;  %v454_v36 = vld [vmem:[%s698_s1 + $0x8c] sm:$0xf0]  ;;  %v452_v37 = vld [vmem:[%s698_s1 + $0x84] sm:$0xf]  ;;  %v403_v38 = vor.u32 %v457_v31, %v400_v32 }
   0xa   :  { %259 = vmatpush.bf16.msra.mxu3 %v419_v25  ;;  %v376_v39 = vld [vmem:[%s698_s1 + $0x90] sm:$0xf0]  ;;  %v382_v40 = vld [vmem:[%s698_s1 + $0x88] sm:$0xf]  ;;  %v455_v41 = vld [vmem:[%s698_s1 + $0x94] sm:$0xf0]  ;;  %v375_v44 = vor.u32 %v454_v36, %v374_v35 }
   0xb   :  { %v453_v42 = vld [vmem:[%s698_s1 + $0x8c] sm:$0xf]  ;;  %v384_v43 = vld [vmem:[%s698_s1 + $0x98] sm:$0xf0]  ;;  %v379_v45 = vor.u32 %v452_v37, %v376_v39  ;;  %v383_v46 = vor.u32 %v455_v41, %v382_v40  ;;  %v358_v47 = vld [vmem:[%s698_s1 + $0x60] sm:$0xf] }
   0xc   :  { %221 = vmatpush.bf16.msra.mxu0 %v391_v29  ;;  %v450_v48 = vld [vmem:[%s698_s1 + $0x6c] sm:$0xf0]  ;;  %v448_v49 = vld [vmem:[%s698_s1 + $0x64] sm:$0xf]  ;;  %v387_v50 = vor.u32 %v453_v42, %v384_v43  ;;  %v360_v51 = vld [vmem:[%s698_s1 + $0x70] sm:$0xf0] }
   0xd   :  { %234 = vmatpush.bf16.msra.mxu1 %v395_v33  ;;  %247 = vmatpush.bf16.msra.mxu2 %v399_v34  ;;  %v366_v52 = vld [vmem:[%s698_s1 + $0x68] sm:$0xf]  ;;  %v451_v53 = vld [vmem:[%s698_s1 + $0x74] sm:$0xf0]  ;;  %v449_v54 = vld [vmem:[%s698_s1 + $0x6c] sm:$0xf]  ;;  %v359_v56 = vor.u32 %v450_v48, %v358_v47  ;;  %v363_v57 = vor.u32 %v448_v49, %v360_v51 }
   0xe   :  { %260 = vmatpush.bf16.msra.mxu3 %v403_v38  ;;  %v368_v55 = vld [vmem:[%s698_s1 + $0x78] sm:$0xf0]  ;;  %v367_v58 = vor.u32 %v451_v53, %v366_v52  ;;  %v342_v59 = vld [vmem:[%s698_s1 + $0x40] sm:$0xf]  ;;  %v446_v60 = vld [vmem:[%s698_s1 + $0x4c] sm:$0xf0] }
   0xf   :  { %v444_v61 = vld [vmem:[%s698_s1 + $0x44] sm:$0xf]  ;;  %v371_v62 = vor.u32 %v449_v54, %v368_v55  ;;  %v344_v63 = vld [vmem:[%s698_s1 + $0x50] sm:$0xf0]  ;;  %v350_v0 = vld [vmem:[%s698_s1 + $0x48] sm:$0xf]  ;;  %v343_v4 = vor.u32 %v446_v60, %v342_v59 }
  0x10   :  { %222 = vmatpush.bf16.msra.mxu0 %v375_v44  ;;  %v447_v1 = vld [vmem:[%s698_s1 + $0x54] sm:$0xf0]  ;;  %v445_v2 = vld [vmem:[%s698_s1 + $0x4c] sm:$0xf]  ;;  %v352_v3 = vld [vmem:[%s698_s1 + $0x58] sm:$0xf0]  ;;  %v347_v5 = vor.u32 %v444_v61, %v344_v63 }
  0x11   :  { %235 = vmatpush.bf16.msra.mxu1 %v379_v45  ;;  %248 = vmatpush.bf16.msra.mxu2 %v383_v46  ;;  %v351_v6 = vor.u32 %v447_v1, %v350_v0  ;;  %v326_v7 = vld [vmem:[%s698_s1 + $0x20] sm:$0xf]  ;;  %v442_v8 = vld [vmem:[%s698_s1 + $0x2c] sm:$0xf0]  ;;  %v440_v9 = vld [vmem:[%s698_s1 + $0x24] sm:$0xf]  ;;  %v355_v10 = vor.u32 %v445_v2, %v352_v3 }
  0x12   :  { %261 = vmatpush.bf16.msra.mxu3 %v387_v50  ;;  %v328_v11 = vld [vmem:[%s698_s1 + $0x30] sm:$0xf0]  ;;  %v334_v12 = vld [vmem:[%s698_s1 + $0x28] sm:$0xf]  ;;  %v443_v13 = vld [vmem:[%s698_s1 + $0x34] sm:$0xf0]  ;;  %v327_v16 = vor.u32 %v442_v8, %v326_v7 }
  0x13   :  { %v441_v14 = vld [vmem:[%s698_s1 + $0x2c] sm:$0xf]  ;;  %v336_v15 = vld [vmem:[%s698_s1 + $0x38] sm:$0xf0]  ;;  %v331_v17 = vor.u32 %v440_v9, %v328_v11  ;;  %v335_v18 = vor.u32 %v443_v13, %v334_v12  ;;  %v310_v19 = vld [vmem:[%s698_s1] sm:$0xf] }
  0x14   :  { %223 = vmatpush.bf16.msra.mxu0 %v359_v56  ;;  %v438_v20 = vld [vmem:[%s698_s1 + $0xc] sm:$0xf0]  ;;  %v436_v21 = vld [vmem:[%s698_s1 + $0x4] sm:$0xf]  ;;  %v339_v22 = vor.u32 %v441_v14, %v336_v15  ;;  %v312_v23 = vld [vmem:[%s698_s1 + $0x10] sm:$0xf0] }
  0x15   :  { %236 = vmatpush.bf16.msra.mxu1 %v363_v57  ;;  %249 = vmatpush.bf16.msra.mxu2 %v367_v58  ;;  %v318_v24 = vld [vmem:[%s698_s1 + $0x8] sm:$0xf]  ;;  %v439_v25 = vld [vmem:[%s698_s1 + $0x14] sm:$0xf0]  ;;  %v437_v26 = vld [vmem:[%s698_s1 + $0xc] sm:$0xf]  ;;  %v311_v28 = vor.u32 %v438_v20, %v310_v19  ;;  %v315_v29 = vor.u32 %v436_v21, %v312_v23 }
  0x16   :  { %262 = vmatpush.bf16.msra.mxu3 %v371_v62  ;;  %v320_v27 = vld [vmem:[%s698_s1 + $0x18] sm:$0xf0]  ;;  %v319_v30 = vor.u32 %v439_v25, %v318_v24  ;;  %v26_v32 = vld [vmem:[%s699_s0] sm:$0xf] }
  0x17   :  { %v323_v31 = vor.u32 %v437_v26, %v320_v27  ;;  %v286_v33 = vld [vmem:[%s700_s2] sm:$0xf] }
  0x18   :  { %224 = vmatpush.bf16.msra.mxu0 %v343_v4  ;;  %v288_v34 = vperm.slane %v286_v33, 0  ;;  %v289_v35 = vperm.slane %v286_v33, 1  ;;  %v290_v40 = vperm.slane %v286_v33, 2  ;;  %v291_v41 = vperm.slane %v286_v33, 3 }
  0x19   :  { %237 = vmatpush.bf16.msra.mxu1 %v347_v5  ;;  %250 = vmatpush.bf16.msra.mxu2 %v351_v6 }
  0x1a   :  { %263 = vmatpush.bf16.msra.mxu3 %v355_v10 }
  0x1c   :  { %225 = vmatpush.bf16.msra.mxu0 %v327_v16 }
  0x1d   :  { %238 = vmatpush.bf16.msra.mxu1 %v331_v17  ;;  %251 = vmatpush.bf16.msra.mxu2 %v335_v18 }
  0x1e   :  { %264 = vmatpush.bf16.msra.mxu3 %v339_v22 }
  0x20   :  { %226 = vmatpush.bf16.msra.mxu0 %v311_v28 }
  0x21   :  { %239 = vmatpush.bf16.msra.mxu1 %v315_v29  ;;  %252 = vmatpush.bf16.msra.mxu2 %v319_v30 }
  0x22   :  { %265 = vmatpush.bf16.msra.mxu3 %v323_v31 }
  0x23   :  { %227 = vmatmul.bf16.vlgmr.msra.gmra.mxu0 %v26_v32 }
  0x24   :  { %240 = vmatmul.bf16.vlgmr.msra.gmra.mxu1 %v26_v32  ;;  %253 = vmatmul.bf16.vlgmr.msra.gmra.mxu2 %v26_v32 }
  0x25   :  { %266 = vmatmul.bf16.vlgmr.msra.gmra.mxu3 %v26_v32 }
  0xa0   :  { %v228_v36 = vpop.f32.mrf.mxu0 }
  0xa1   :  { %v296_v37 = vadd.f32 %v288_v34, %v228_v36  ;;  %v241_v38 = vpop.f32.mrf.mxu1 }
  0xa2   :  { %v297_v39 = vadd.f32 %v289_v35, %v241_v38 }
  0xa3   :  { %300 = vst [vmem:[%s701_s3] sm:$0xff] %v296_v37 }
  0xa4   :  { %301 = vst [vmem:[%s701_s3 + $0x8] sm:$0xff] %v297_v39 }
  0xa7   :  { %v254_v42 = vpop.f32.mrf.mxu2 }
  0xa8   :  { %v298_v43 = vadd.f32 %v290_v40, %v254_v42  ;;  %v267_v44 = vpop.f32.mrf.mxu3  ;;  %v230_v45 = vpop.f32.mrf.mxu0 }
  0xa9   :  { %v299_v46 = vadd.f32 %v291_v41, %v267_v44  ;;  %v243_v47 = vpop.f32.mrf.mxu1 }
  0xaa   :  { %302 = vst [vmem:[%s701_s3 + $0x10] sm:$0xff] %v298_v43 }
  0xab   :  { %303 = vst [vmem:[%s701_s3 + $0x18] sm:$0xff] %v299_v46 }
  0xaf   :  { %v256_v48 = vpop.f32.mrf.mxu2 }
  0xb0   :  { %v269_v49 = vpop.f32.mrf.mxu3 }

// kernel: cnn_lstm_attention_forward.11
= control target key start
LH: loop header
LB: loop body
LE: loop exit
PB: predicated region body
PF: predicated region fallthrough
CT: control target
= control target key end

     0   :  { %s195_s0 = inlined_call_operand.vmem [shape: f32[2,4,128], index: 0, kind: input, shape index: {}]   ;;  %s196_s1 = inlined_call_operand.vmem [shape: f32[1,128], index: 1, kind: input, shape index: {}]   ;;  %s197_s2 = inlined_call_operand.<no memory space> [shape: f32[1,1], index: 2, kind: input, shape index: {}]   ;;  %s198_s3 = inlined_call_operand.hbm [shape: f32[2,128], index: 3, kind: output, shape index: {}]  }
   0x1   :  { %v8_v0 = vstv %s197_s2 }
   0x2   :  { %9 = vst [vmem:[#allocation2] sm:$0x1] %v8_v0 }
   0x3   :  { %v17_v1 = vld [vmem:[%s195_s0] sm:$0xf]  ;;  %vm25_vm0 = vcmask 1043456  }
   0x4   :  { %v116_v2 = vld [vmem:[%s196_s1] ss:$0 sm:$0xff] }
   0x5   :  { %v23_v4 = vmul.f32 %v116_v2, %v17_v1 }
   0x9   :  { %v32_v3 = vld [vmem:[#allocation2] sm:$0x1] }
   0xa   :  { %113 = vpush %v32_v3 }
   0xb   :  { %10 = vsyncpa [#allocation4], 0  ;;  %v18_v5 = vld [vmem:[%s195_s0 + $0x4] sm:$0xf]  ;;  %v26_v6 = vsel %vm25_vm0, %v23_v4, 0.0  ;;  %s151_s0 = smov [#allocation3]  }
   0xc   :  { %27 = vadd.xlane.f32.xlu0 %v26_v6  ;;  %v24_v7 = vmul.f32 %v116_v2, %v18_v5  ;;  %s102_s1 = sshll.u32 %s151_s0, 4  ;;  %s104_s22 = sshll.u32 %s198_s3, 4  ;;  %vm93_vm1 = vcmask 1041409   ;;  %s103_s1 = int_to_ptr.vmem [resolvable:$true] %s102_s1  ;;  %s105_s22 = int_to_ptr.hbm [resolvable:$true] %s104_s22 }
   0xe   :  { %v29_v8 = vsel %vm25_vm0, %v24_v7, 0.0 }
  0x14   :  { %30 = vadd.xlane.f32.xlu0 %v29_v8 }
  0x3b   :  { %s114_s2 = spop %113 }
  0x3c   :  { %v34_v9 = vstv %s114_s2 }
  0x7f   :  { %v28_v10 = vpop.xlane.xlu0 %27 }
  0x80   :  { %v35_v11 = vadd.f32 %v34_v9, %v28_v10 }
  0x82   :  { %v37_v12 = vsel %vm25_vm0, %v35_v11, -inf }
  0x83   :  { %v38_v13 = vrot.slane %v37_v12, 4 }
  0x85   :  { %v39_v14 = vmax.f32 %v37_v12, %v38_v13 }
  0x87   :  { %v40_v15 = vrot.slane %v39_v14, 2  ;;  %v31_v16 = vpop.xlane.xlu0 %30 }
  0x88   :  { %v36_v17 = vadd.f32 %v34_v9, %v31_v16 }
  0x89   :  { %v41_v18 = vmax.f32 %v39_v14, %v40_v15 }
  0x8a   :  { %v44_v19 = vsel %vm25_vm0, %v36_v17, -inf }
  0x8b   :  { %v42_v20 = vrot.slane %v41_v18, 1  ;;  %v45_v21 = vrot.slane %v44_v19, 4 }
  0x8d   :  { %v43_v22 = vmax.f32 %v41_v18, %v42_v20  ;;  %v46_v23 = vmax.f32 %v44_v19, %v45_v21 }
  0x8f   :  { %v51_v24 = vsub.f32 %v35_v11, %v43_v22  ;;  %v47_v25 = vrot.slane %v46_v23, 2 }
  0x91   :  { %v53_v26 = vmul.f32 1.442695, %v51_v24  ;;  %v48_v27 = vmax.f32 %v46_v23, %v47_v25 }
  0x93   :  { %117 = vpow2.f32 %v53_v26  ;;  %v49_v28 = vrot.slane %v48_v27, 1 }
  0x95   :  { %v50_v29 = vmax.f32 %v48_v27, %v49_v28 }
  0x97   :  { %v52_v30 = vsub.f32 %v36_v17, %v50_v29 }
  0x99   :  { %v118_v31 = vpop.eup %117  ;;  %v55_v32 = vmul.f32 1.442695, %v52_v30 }
  0x9a   :  { %v57_v33 = vsel %vm25_vm0, %v118_v31, 0.0 }
  0x9b   :  { %v58_v34 = vrot.slane %v57_v33, 4  ;;  %119 = vpow2.f32 %v55_v32 }
  0x9d   :  { %v59_v35 = vadd.f32 %v58_v34, %v57_v33 }
  0x9f   :  { %v60_v36 = vrot.slane %v59_v35, 2 }
  0xa1   :  { %v120_v37 = vpop.eup %119  ;;  %v61_v38 = vadd.f32 %v60_v36, %v59_v35 }
  0xa2   :  { %v64_v39 = vsel %vm25_vm0, %v120_v37, 0.0 }
  0xa3   :  { %v62_v40 = vrot.slane %v61_v38, 1  ;;  %v65_v41 = vrot.slane %v64_v39, 4 }
  0xa5   :  { %v63_v42 = vadd.f32 %v62_v40, %v61_v38  ;;  %v66_v43 = vadd.f32 %v65_v41, %v64_v39 }
  0xa7   :  { %121 = vrcp.f32 %v63_v42  ;;  %v67_v44 = vrot.slane %v66_v43, 2 }
  0xa9   :  { %v68_v45 = vadd.f32 %v67_v44, %v66_v43 }
  0xab   :  { %v69_v46 = vrot.slane %v68_v45, 1 }
  0xad   :  { %v122_v47 = vpop.eup %121  ;;  %v70_v48 = vadd.f32 %v69_v46, %v68_v45 }
  0xae   :  { %v73_v49 = vmul.f32 %v122_v47, %v118_v31 }
  0xaf   :  { %123 = vrcp.f32 %v70_v48 }
  0xb0   :  { %v75_v50 = vmul.f32 %v73_v49, %v17_v1 }
  0xb2   :  { %v77_v51 = vsel %vm25_vm0, %v75_v50, 0.0 }
  0xb3   :  { %v78_v52 = vrot.slane %v77_v51, 4 }
  0xb5   :  { %v124_v53 = vpop.eup %123  ;;  %v79_v54 = vadd.f32 %v78_v52, %v77_v51 }
  0xb6   :  { %v74_v55 = vmul.f32 %v124_v53, %v120_v37 }
  0xb7   :  { %v80_v57 = vrot.slane %v79_v54, 2 }
  0xb8   :  { %v76_v56 = vmul.f32 %v74_v55, %v18_v5 }
  0xb9   :  { %v81_v60 = vadd.f32 %v80_v57, %v79_v54 }
  0xba   :  { %v84_v58 = vsel %vm25_vm0, %v76_v56, 0.0 }
  0xbb   :  { %v85_v59 = vrot.slane %v84_v58, 4  ;;  %v82_v63 = vrot.slane %v81_v60, 1 }
  0xbd   :  { %v86_v61 = vadd.f32 %v85_v59, %v84_v58  ;;  %v83_v1 = vadd.f32 %v82_v63, %v81_v60 }
  0xbf   :  { %v87_v62 = vrot.slane %v86_v61, 2 }
  0xc1   :  { %v88_v0 = vadd.f32 %v87_v62, %v86_v61 }
  0xc3   :  { %v89_v2 = vrot.slane %v88_v0, 1 }
  0xc5   :  { %v90_v3 = vadd.f32 %v89_v2, %v88_v0 }
  0xc7   :  { %v94_v4 = vsel %vm93_vm1, %v90_v3, %v83_v1 }
  0xc8   :  { %96 = vst [vmem:[#allocation3] sm:$0x3] %v94_v4 }
  0xc9   :  { %107 = dma.vmem_to_hbm [thread:$0]  %s103_s1, 32, %s105_s22, [#allocation4]  }
  0xca   :  { %149 = dma.done.wait [#allocation4], 32  }
  0xcb   :  { %150 = vsyncadd [#allocation4], 4294967264 }
  0xcc   :  { %112 = vsyncpa [#allocation4], 1 }

// kernel: cnn_lstm_attention_forward.10
= control target key start
LH: loop header
LB: loop body
LE: loop exit
PB: predicated region body
PF: predicated region fallthrough
CT: control target
= control target key end

     0   :  { %v827_v62 = vmov 0.0   ;;  %vm163_vm0 = vcmask 1041408   ;;  %vm165_vm1 = vcmask 1045508   ;;  %vm167_vm2 = vcmask 1043456   ;;  %s1467_s1 = inlined_call_operand.vmem [shape: f32[128,512], index: 1, kind: input, shape index: {}]   ;;  %s1468_s0 = inlined_call_operand.vmem [shape: f32[4,2,512], index: 0, kind: input, shape index: {}]   ;;  %s1469_s2 = inlined_call_operand.vmem [shape: f32[4,2,128], index: 2, kind: output, shape index: {}]  }
   0x1   :  { %v846_v0 = vld [vmem:[%s1467_s1 + $0x1f0] sm:$0xff]  ;;  %v851_v1 = vld [vmem:[%s1467_s1 + $0x1f8] sm:$0xff]  ;;  %v878_v6 = vld [vmem:[%s1467_s1 + $0x1e8] sm:$0xff] }
   0x2   :  { %v856_v2 = vld [vmem:[%s1467_s1 + $0x1d0] sm:$0xff]  ;;  %116 = vmatpush.msra.mxu2 %v846_v0  ;;  %136 = vmatpush.msra.mxu3 %v851_v1  ;;  %v863_v3 = vld [vmem:[%s1467_s1 + $0x1d8] sm:$0xff]  ;;  %v885_v7 = vld [vmem:[%s1467_s1 + $0x1e0] sm:$0xff] }
   0x3   :  { %v868_v4 = vld [vmem:[%s1467_s1 + $0x1b0] sm:$0xff]  ;;  %v873_v5 = vld [vmem:[%s1467_s1 + $0x1b8] sm:$0xff]  ;;  %v890_v8 = vld [vmem:[%s1467_s1 + $0x1c8] sm:$0xff]  ;;  %96 = vmatpush.msra.mxu1 %v878_v6  ;;  %76 = vmatpush.msra.mxu0 %v885_v7 }
   0x4   :  { %117 = vmatpush.msra.mxu2 %v856_v2  ;;  %137 = vmatpush.msra.mxu3 %v863_v3  ;;  %v896_v9 = vld [vmem:[%s1467_s1 + $0x190] sm:$0xff]  ;;  %v901_v10 = vld [vmem:[%s1467_s1 + $0x198] sm:$0xff]  ;;  %v907_v11 = vld [vmem:[%s1467_s1 + $0x1c0] sm:$0xff] }
   0x5   :  { %v914_v12 = vld [vmem:[%s1467_s1 + $0x1a8] sm:$0xff]  ;;  %v919_v13 = vld [vmem:[%s1467_s1 + $0x1a0] sm:$0xff]  ;;  %97 = vmatpush.msra.mxu1 %v890_v8  ;;  %v925_v14 = vld [vmem:[%s1467_s1 + $0x170] sm:$0xff]  ;;  %77 = vmatpush.msra.mxu0 %v907_v11 }
   0x6   :  { %118 = vmatpush.msra.mxu2 %v868_v4  ;;  %138 = vmatpush.msra.mxu3 %v873_v5  ;;  %v930_v15 = vld [vmem:[%s1467_s1 + $0x178] sm:$0xff]  ;;  %v938_v16 = vld [vmem:[%s1467_s1 + $0x188] sm:$0xff]  ;;  %v943_v17 = vld [vmem:[%s1467_s1 + $0x180] sm:$0xff] }
   0x7   :  { %98 = vmatpush.msra.mxu1 %v914_v12  ;;  %v949_v18 = vld [vmem:[%s1467_s1 + $0x150] sm:$0xff]  ;;  %v954_v19 = vld [vmem:[%s1467_s1 + $0x158] sm:$0xff]  ;;  %78 = vmatpush.msra.mxu0 %v919_v13  ;;  %v962_v20 = vld [vmem:[%s1467_s1 + $0x168] sm:$0xff] }
   0x8   :  { %119 = vmatpush.msra.mxu2 %v896_v9  ;;  %139 = vmatpush.msra.mxu3 %v901_v10  ;;  %v967_v21 = vld [vmem:[%s1467_s1 + $0x160] sm:$0xff]  ;;  %v973_v22 = vld [vmem:[%s1467_s1 + $0x130] sm:$0xff]  ;;  %v978_v23 = vld [vmem:[%s1467_s1 + $0x138] sm:$0xff] }
   0x9   :  { %99 = vmatpush.msra.mxu1 %v938_v16  ;;  %79 = vmatpush.msra.mxu0 %v943_v17  ;;  %v986_v24 = vld [vmem:[%s1467_s1 + $0x148] sm:$0xff]  ;;  %v991_v25 = vld [vmem:[%s1467_s1 + $0x140] sm:$0xff]  ;;  %v997_v26 = vld [vmem:[%s1467_s1 + $0x110] sm:$0xff] }
   0xa   :  { %120 = vmatpush.msra.mxu2 %v925_v14  ;;  %140 = vmatpush.msra.mxu3 %v930_v15  ;;  %v1002_v27 = vld [vmem:[%s1467_s1 + $0x118] sm:$0xff]  ;;  %v1010_v28 = vld [vmem:[%s1467_s1 + $0x128] sm:$0xff]  ;;  %v1015_v29 = vld [vmem:[%s1467_s1 + $0x120] sm:$0xff] }
   0xb   :  { %100 = vmatpush.msra.mxu1 %v962_v20  ;;  %80 = vmatpush.msra.mxu0 %v967_v21  ;;  %v1021_v30 = vld [vmem:[%s1467_s1 + $0xf0] sm:$0xff]  ;;  %v1026_v31 = vld [vmem:[%s1467_s1 + $0xf8] sm:$0xff]  ;;  %v1034_v32 = vld [vmem:[%s1467_s1 + $0x108] sm:$0xff] }
   0xc   :  { %121 = vmatpush.msra.mxu2 %v949_v18  ;;  %141 = vmatpush.msra.mxu3 %v954_v19  ;;  %v1039_v33 = vld [vmem:[%s1467_s1 + $0x100] sm:$0xff]  ;;  %v1045_v34 = vld [vmem:[%s1467_s1 + $0xd0] sm:$0xff]  ;;  %v1050_v35 = vld [vmem:[%s1467_s1 + $0xd8] sm:$0xff] }
   0xd   :  { %101 = vmatpush.msra.mxu1 %v986_v24  ;;  %81 = vmatpush.msra.mxu0 %v991_v25  ;;  %1498 = vst [vmem:[#allocation2_spill] sm:$0xff] %v1045_v34  ;;  %v1058_v36 = vld [vmem:[%s1467_s1 + $0xe8] sm:$0xff]  ;;  %v1063_v37 = vld [vmem:[%s1467_s1 + $0xe0] sm:$0xff]  ;;  %v1069_v38 = vld [vmem:[%s1467_s1 + $0xb0] sm:$0xff] }
   0xe   :  { %122 = vmatpush.msra.mxu2 %v973_v22  ;;  %142 = vmatpush.msra.mxu3 %v978_v23  ;;  %1499 = vst [vmem:[#allocation3_spill] sm:$0xff] %v1050_v35  ;;  %v1074_v39 = vld [vmem:[%s1467_s1 + $0xb8] sm:$0xff]  ;;  %v1082_v40 = vld [vmem:[%s1467_s1 + $0xc8] sm:$0xff]  ;;  %v1087_v41 = vld [vmem:[%s1467_s1 + $0xc0] sm:$0xff] }
   0xf   :  { %102 = vmatpush.msra.mxu1 %v1010_v28  ;;  %82 = vmatpush.msra.mxu0 %v1015_v29  ;;  %1500 = vst [vmem:[#allocation4_spill] sm:$0xff] %v1069_v38  ;;  %v1093_v42 = vld [vmem:[%s1467_s1 + $0x90] sm:$0xff]  ;;  %v1098_v43 = vld [vmem:[%s1467_s1 + $0x98] sm:$0xff]  ;;  %v1106_v44 = vld [vmem:[%s1467_s1 + $0xa8] sm:$0xff] }
  0x10   :  { %123 = vmatpush.msra.mxu2 %v997_v26  ;;  %143 = vmatpush.msra.mxu3 %v1002_v27  ;;  %1501 = vst [vmem:[#allocation5_spill] sm:$0xff] %v1074_v39  ;;  %v1111_v45 = vld [vmem:[%s1467_s1 + $0xa0] sm:$0xff]  ;;  %v1117_v46 = vld [vmem:[%s1467_s1 + $0x70] sm:$0xff]  ;;  %v1122_v47 = vld [vmem:[%s1467_s1 + $0x78] sm:$0xff] }
  0x11   :  { %103 = vmatpush.msra.mxu1 %v1034_v32  ;;  %83 = vmatpush.msra.mxu0 %v1039_v33  ;;  %1502 = vst [vmem:[#allocation6_spill] sm:$0xff] %v1093_v42  ;;  %v1130_v48 = vld [vmem:[%s1467_s1 + $0x88] sm:$0xff]  ;;  %v1135_v49 = vld [vmem:[%s1467_s1 + $0x80] sm:$0xff]  ;;  %v1141_v50 = vld [vmem:[%s1467_s1 + $0x50] sm:$0xff] }
  0x12   :  { %124 = vmatpush.msra.mxu2 %v1021_v30  ;;  %144 = vmatpush.msra.mxu3 %v1026_v31  ;;  %1503 = vst [vmem:[#allocation7_spill] sm:$0xff] %v1098_v43  ;;  %v1146_v51 = vld [vmem:[%s1467_s1 + $0x58] sm:$0xff]  ;;  %v1154_v52 = vld [vmem:[%s1467_s1 + $0x68] sm:$0xff]  ;;  %v1159_v53 = vld [vmem:[%s1467_s1 + $0x60] sm:$0xff] }
  0x13   :  { %104 = vmatpush.msra.mxu1 %v1058_v36  ;;  %84 = vmatpush.msra.mxu0 %v1063_v37  ;;  %1504 = vst [vmem:[#allocation8_spill] sm:$0xff] %v1106_v44  ;;  %v1165_v54 = vld [vmem:[%s1467_s1 + $0x30] sm:$0xff]  ;;  %v1170_v55 = vld [vmem:[%s1467_s1 + $0x38] sm:$0xff]  ;;  %v1178_v56 = vld [vmem:[%s1467_s1 + $0x48] sm:$0xff] }
  0x14   :  { %125 = vmatpush.msra.mxu2 %v1045_v34  ;;  %145 = vmatpush.msra.mxu3 %v1050_v35  ;;  %1505 = vst [vmem:[#allocation9_spill] sm:$0xff] %v1111_v45  ;;  %v1183_v57 = vld [vmem:[%s1467_s1 + $0x40] sm:$0xff]  ;;  %v1189_v58 = vld [vmem:[%s1467_s1 + $0x10] sm:$0xff]  ;;  %v1194_v59 = vld [vmem:[%s1467_s1 + $0x18] sm:$0xff] }
  0x15   :  { %105 = vmatpush.msra.mxu1 %v1082_v40  ;;  %1506 = vst [vmem:[#allocation10_spill] sm:$0xff] %v1117_v46  ;;  %85 = vmatpush.msra.mxu0 %v1087_v41  ;;  %v1204_v60 = vld [vmem:[%s1467_s1 + $0x28] sm:$0xff]  ;;  %v1209_v61 = vld [vmem:[%s1467_s1 + $0x20] sm:$0xff] }
  0x16   :  { %126 = vmatpush.msra.mxu2 %v1069_v38  ;;  %146 = vmatpush.msra.mxu3 %v1074_v39  ;;  %1507 = vst [vmem:[#allocation11_spill] sm:$0xff] %v1122_v47  ;;  %v1216_v63 = vld [vmem:[%s1467_s1 + $0x8] sm:$0xff] }
  0x17   :  { %1508 = vst [vmem:[#allocation12_spill] sm:$0xff] %v1130_v48  ;;  %106 = vmatpush.msra.mxu1 %v1106_v44  ;;  %86 = vmatpush.msra.mxu0 %v1111_v45 }
  0x18   :  { %127 = vmatpush.msra.mxu2 %v1093_v42  ;;  %147 = vmatpush.msra.mxu3 %v1098_v43  ;;  %1509 = vst [vmem:[#allocation13_spill] sm:$0xff] %v1135_v49 }
  0x19   :  { %1510 = vst [vmem:[#allocation14_spill] sm:$0xff] %v1141_v50  ;;  %107 = vmatpush.msra.mxu1 %v1130_v48  ;;  %87 = vmatpush.msra.mxu0 %v1135_v49 }
  0x1a   :  { %1511 = vst [vmem:[#allocation15_spill] sm:$0xff] %v1146_v51  ;;  %128 = vmatpush.msra.mxu2 %v1117_v46  ;;  %148 = vmatpush.msra.mxu3 %v1122_v47 }
  0x1b   :  { %1512 = vst [vmem:[#allocation16_spill] sm:$0xff] %v1154_v52  ;;  %108 = vmatpush.msra.mxu1 %v1154_v52  ;;  %88 = vmatpush.msra.mxu0 %v1159_v53 }
  0x1c   :  { %1513 = vst [vmem:[#allocation17_spill] sm:$0xff] %v1159_v53  ;;  %129 = vmatpush.msra.mxu2 %v1141_v50  ;;  %149 = vmatpush.msra.mxu3 %v1146_v51 }
  0x1d   :  { %1514 = vst [vmem:[#allocation18_spill] sm:$0xff] %v1165_v54  ;;  %109 = vmatpush.msra.mxu1 %v1178_v56  ;;  %89 = vmatpush.msra.mxu0 %v1183_v57 }
  0x1e   :  { %1515 = vst [vmem:[#allocation19_spill] sm:$0xff] %v1170_v55  ;;  %130 = vmatpush.msra.mxu2 %v1165_v54  ;;  %150 = vmatpush.msra.mxu3 %v1170_v55  ;;  %v1221_v55 = vld [vmem:[%s1467_s1] sm:$0xff] }
  0x1f   :  { %1516 = vst [vmem:[#allocation20_spill] sm:$0xff] %v1178_v56  ;;  %110 = vmatpush.msra.mxu1 %v1204_v60  ;;  %90 = vmatpush.msra.mxu0 %v1209_v61 }
  0x20   :  { %1517 = vst [vmem:[#allocation21_spill] sm:$0xff] %v1183_v57  ;;  %131 = vmatpush.msra.mxu2 %v1189_v58  ;;  %151 = vmatpush.msra.mxu3 %v1194_v59 }
  0x21   :  { %1518 = vst [vmem:[#allocation22_spill] sm:$0xff] %v1189_v58  ;;  %132 = vmatmul.f32.vlgmr.msra.gmra.mxu2 %v827_v62  ;;  %152 = vmatmul.f32.vlgmr.msra.gmra.mxu3 %v827_v62 }
  0x22   :  { %1519 = vst [vmem:[#allocation23_spill] sm:$0xff] %v1194_v59  ;;  %284 = vmatpush.msrb.mxu2 %v846_v0  ;;  %304 = vmatpush.msrb.mxu3 %v851_v1 }
  0x23   :  { %1520 = vst [vmem:[#allocation24_spill] sm:$0xff] %v1204_v60  ;;  %111 = vmatpush.msra.mxu1 %v1216_v63  ;;  %91 = vmatpush.msra.mxu0 %v1221_v55 }
  0x24   :  { %1521 = vst [vmem:[#allocation25_spill] sm:$0xff] %v1209_v61  ;;  %112 = vmatmul.f32.vlgmr.msra.gmra.mxu1 %v827_v62  ;;  %92 = vmatmul.f32.vlgmr.msra.gmra.mxu0 %v827_v62 }
  0x25   :  { %1522 = vst [vmem:[#allocation26_spill] sm:$0xff] %v1216_v63  ;;  %244 = vmatpush.msrb.mxu0 %v885_v7  ;;  %264 = vmatpush.msrb.mxu1 %v878_v6  ;;  %v1524_v62 = vld [vmem:[#allocation19_spill] sm:$0xff] }
  0x26   :  { %1523 = vst [vmem:[#allocation27_spill] sm:$0xff] %v1221_v55  ;;  %285 = vmatpush.msrb.mxu2 %v856_v2  ;;  %305 = vmatpush.msrb.mxu3 %v863_v3 }
  0x27   :  { %245 = vmatpush.msrb.mxu0 %v907_v11  ;;  %265 = vmatpush.msrb.mxu1 %v890_v8 }
  0x28   :  { %286 = vmatpush.msrb.mxu2 %v868_v4  ;;  %306 = vmatpush.msrb.mxu3 %v873_v5 }
  0x29   :  { %246 = vmatpush.msrb.mxu0 %v919_v13  ;;  %266 = vmatpush.msrb.mxu1 %v914_v12 }
  0x2a   :  { %287 = vmatpush.msrb.mxu2 %v896_v9  ;;  %307 = vmatpush.msrb.mxu3 %v901_v10 }
  0x2b   :  { %247 = vmatpush.msrb.mxu0 %v943_v17  ;;  %267 = vmatpush.msrb.mxu1 %v938_v16 }
  0x2c   :  { %288 = vmatpush.msrb.mxu2 %v925_v14  ;;  %308 = vmatpush.msrb.mxu3 %v930_v15 }
  0x2d   :  { %248 = vmatpush.msrb.mxu0 %v967_v21  ;;  %268 = vmatpush.msrb.mxu1 %v962_v20 }
  0x2e   :  { %289 = vmatpush.msrb.mxu2 %v949_v18  ;;  %309 = vmatpush.msrb.mxu3 %v954_v19 }
  0x2f   :  { %249 = vmatpush.msrb.mxu0 %v991_v25  ;;  %269 = vmatpush.msrb.mxu1 %v986_v24 }
  0x30   :  { %290 = vmatpush.msrb.mxu2 %v973_v22  ;;  %310 = vmatpush.msrb.mxu3 %v978_v23 }
  0x31   :  { %250 = vmatpush.msrb.mxu0 %v1015_v29  ;;  %270 = vmatpush.msrb.mxu1 %v1010_v28 }
  0x32   :  { %291 = vmatpush.msrb.mxu2 %v997_v26  ;;  %311 = vmatpush.msrb.mxu3 %v1002_v27 }
  0x33   :  { %251 = vmatpush.msrb.mxu0 %v1039_v33  ;;  %271 = vmatpush.msrb.mxu1 %v1034_v32 }
  0x34   :  { %292 = vmatpush.msrb.mxu2 %v1021_v30  ;;  %312 = vmatpush.msrb.mxu3 %v1026_v31 }
  0x35   :  { %252 = vmatpush.msrb.mxu0 %v1063_v37  ;;  %272 = vmatpush.msrb.mxu1 %v1058_v36 }
  0x36   :  { %293 = vmatpush.msrb.mxu2 %v1045_v34  ;;  %313 = vmatpush.msrb.mxu3 %v1050_v35 }
  0x37   :  { %253 = vmatpush.msrb.mxu0 %v1087_v41  ;;  %273 = vmatpush.msrb.mxu1 %v1082_v40 }
  0x38   :  { %294 = vmatpush.msrb.mxu2 %v1069_v38  ;;  %314 = vmatpush.msrb.mxu3 %v1074_v39 }
  0x39   :  { %254 = vmatpush.msrb.mxu0 %v1111_v45  ;;  %274 = vmatpush.msrb.mxu1 %v1106_v44 }
  0x3a   :  { %295 = vmatpush.msrb.mxu2 %v1093_v42  ;;  %315 = vmatpush.msrb.mxu3 %v1098_v43 }
  0x3b   :  { %255 = vmatpush.msrb.mxu0 %v1135_v49  ;;  %275 = vmatpush.msrb.mxu1 %v1130_v48 }
  0x3c   :  { %296 = vmatpush.msrb.mxu2 %v1117_v46  ;;  %316 = vmatpush.msrb.mxu3 %v1122_v47 }
  0x3d   :  { %256 = vmatpush.msrb.mxu0 %v1159_v53  ;;  %276 = vmatpush.msrb.mxu1 %v1154_v52 }
  0x3e   :  { %297 = vmatpush.msrb.mxu2 %v1141_v50  ;;  %317 = vmatpush.msrb.mxu3 %v1146_v51 }
  0x3f   :  { %257 = vmatpush.msrb.mxu0 %v1183_v57  ;;  %277 = vmatpush.msrb.mxu1 %v1178_v56 }
  0x40   :  { %298 = vmatpush.msrb.mxu2 %v1165_v54  ;;  %318 = vmatpush.msrb.mxu3 %v1524_v62 }
  0x41   :  { %258 = vmatpush.msrb.mxu0 %v1209_v61  ;;  %278 = vmatpush.msrb.mxu1 %v1204_v60 }
  0x42   :  { %299 = vmatpush.msrb.mxu2 %v1189_v58  ;;  %319 = vmatpush.msrb.mxu3 %v1194_v59 }
  0x43   :  { %259 = vmatpush.msrb.mxu0 %v1221_v55  ;;  %279 = vmatpush.msrb.mxu1 %v1216_v63 }
  0x44   :  { %450 = vmatpush.msra.mxu2 %v846_v0  ;;  %470 = vmatpush.msra.mxu3 %v851_v1 }
  0x45   :  { %410 = vmatpush.msra.mxu0 %v885_v7  ;;  %430 = vmatpush.msra.mxu1 %v878_v6 }
  0x46   :  { %451 = vmatpush.msra.mxu2 %v856_v2  ;;  %471 = vmatpush.msra.mxu3 %v863_v3 }
  0x47   :  { %411 = vmatpush.msra.mxu0 %v907_v11  ;;  %431 = vmatpush.msra.mxu1 %v890_v8 }
  0x48   :  { %452 = vmatpush.msra.mxu2 %v868_v4  ;;  %472 = vmatpush.msra.mxu3 %v873_v5 }
  0x49   :  { %412 = vmatpush.msra.mxu0 %v919_v13  ;;  %432 = vmatpush.msra.mxu1 %v914_v12 }
  0x4a   :  { %453 = vmatpush.msra.mxu2 %v896_v9  ;;  %473 = vmatpush.msra.mxu3 %v901_v10 }
  0x4b   :  { %413 = vmatpush.msra.mxu0 %v943_v17  ;;  %433 = vmatpush.msra.mxu1 %v938_v16 }
  0x4c   :  { %454 = vmatpush.msra.mxu2 %v925_v14  ;;  %474 = vmatpush.msra.mxu3 %v930_v15 }
  0x4d   :  { %414 = vmatpush.msra.mxu0 %v967_v21  ;;  %434 = vmatpush.msra.mxu1 %v962_v20 }
  0x4e   :  { %455 = vmatpush.msra.mxu2 %v949_v18  ;;  %475 = vmatpush.msra.mxu3 %v954_v19 }
  0x4f   :  { %415 = vmatpush.msra.mxu0 %v991_v25  ;;  %435 = vmatpush.msra.mxu1 %v986_v24 }
  0x50   :  { %456 = vmatpush.msra.mxu2 %v973_v22  ;;  %476 = vmatpush.msra.mxu3 %v978_v23 }
  0x51   :  { %416 = vmatpush.msra.mxu0 %v1015_v29  ;;  %436 = vmatpush.msra.mxu1 %v1010_v28 }
  0x52   :  { %457 = vmatpush.msra.mxu2 %v997_v26  ;;  %477 = vmatpush.msra.mxu3 %v1002_v27 }
  0x53   :  { %417 = vmatpush.msra.mxu0 %v1039_v33  ;;  %437 = vmatpush.msra.mxu1 %v1034_v32 }
  0x54   :  { %458 = vmatpush.msra.mxu2 %v1021_v30  ;;  %478 = vmatpush.msra.mxu3 %v1026_v31 }
  0x55   :  { %418 = vmatpush.msra.mxu0 %v1063_v37  ;;  %438 = vmatpush.msra.mxu1 %v1058_v36 }
  0x56   :  { %459 = vmatpush.msra.mxu2 %v1045_v34  ;;  %479 = vmatpush.msra.mxu3 %v1050_v35 }
  0x57   :  { %419 = vmatpush.msra.mxu0 %v1087_v41  ;;  %439 = vmatpush.msra.mxu1 %v1082_v40 }
  0x58   :  { %460 = vmatpush.msra.mxu2 %v1069_v38  ;;  %480 = vmatpush.msra.mxu3 %v1074_v39 }
  0x59   :  { %420 = vmatpush.msra.mxu0 %v1111_v45  ;;  %440 = vmatpush.msra.mxu1 %v1106_v44 }
  0x5a   :  { %461 = vmatpush.msra.mxu2 %v1093_v42  ;;  %481 = vmatpush.msra.mxu3 %v1098_v43 }
  0x5b   :  { %421 = vmatpush.msra.mxu0 %v1135_v49  ;;  %441 = vmatpush.msra.mxu1 %v1130_v48 }
  0x5c   :  { %462 = vmatpush.msra.mxu2 %v1117_v46  ;;  %482 = vmatpush.msra.mxu3 %v1122_v47 }
  0x5d   :  { %422 = vmatpush.msra.mxu0 %v1159_v53  ;;  %442 = vmatpush.msra.mxu1 %v1154_v52 }
  0x5e   :  { %463 = vmatpush.msra.mxu2 %v1141_v50  ;;  %483 = vmatpush.msra.mxu3 %v1146_v51 }
  0x5f   :  { %423 = vmatpush.msra.mxu0 %v1183_v57  ;;  %443 = vmatpush.msra.mxu1 %v1178_v56 }
  0x60   :  { %464 = vmatpush.msra.mxu2 %v1165_v54  ;;  %484 = vmatpush.msra.mxu3 %v1524_v62 }
  0x61   :  { %424 = vmatpush.msra.mxu0 %v1209_v61  ;;  %444 = vmatpush.msra.mxu1 %v1204_v60 }
  0x62   :  { %465 = vmatpush.msra.mxu2 %v1189_v58  ;;  %485 = vmatpush.msra.mxu3 %v1194_v59 }
  0x63   :  { %425 = vmatpush.msra.mxu0 %v1221_v55  ;;  %445 = vmatpush.msra.mxu1 %v1216_v63  ;;  %v75_v63 = vld [vmem:[%s1468_s0] sm:$0xff] }
  0xa1   :  { %v113_v56 = vpop.f32.mrf.mxu1  ;;  %v93_v50 = vpop.f32.mrf.mxu0 }
  0xa2   :  { %v160_v51 = vrot.slane %v113_v56, 6 }
  0xa4   :  { %v133_v57 = vpop.f32.mrf.mxu2  ;;  %v153_v61 = vpop.f32.mrf.mxu3  ;;  %v164_v54 = vsel %vm163_vm0, %v93_v50, %v160_v51 }
  0xa5   :  { %v161_v60 = vrot.slane %v133_v57, 4  ;;  %v162_v47 = vrot.slane %v153_v61, 2 }
  0xa7   :  { %v166_v58 = vsel %vm165_vm1, %v161_v60, %v162_v47 }
  0xa8   :  { %v168_v59 = vsel %vm167_vm2, %v164_v54, %v166_v58 }
  0xa9   :  { %v170_v55 = vadd.f32 %v168_v59, %v75_v63 }
  0xab   :  { %v744_v62 = vmul.f32 -1.442695, %v170_v55  ;;  %v191_v46 = vrot.slane %v170_v55, 2  ;;  %v215_v56 = vrot.slane %v170_v55, 6  ;;  %v212_v60 = vrot.slane %v170_v55, 4 }
  0xad   :  { %763 = vpow2.f32 %v744_v62  ;;  %v745_v52 = vmul.f32 -1.442695, %v191_v46  ;;  %v746_v53 = vmul.f32 -1.442695, %v215_v56 }
  0xaf   :  { %765 = vpow2.f32 %v745_v52 }
  0xb0   :  { %767 = vpow2.f32 %v746_v53 }
  0xb3   :  { %v764_v57 = vpop.eup %763 }
  0xb4   :  { %v174_v50 = vadd.f32 1.0, %v764_v57 }
  0xb5   :  { %v766_v51 = vpop.eup %765 }
  0xb6   :  { %v768_v61 = vpop.eup %767  ;;  %769 = vrcp.f32 %v174_v50  ;;  %v196_v43 = vadd.f32 1.0, %v766_v51  ;;  %v186_v52 = vand.u32 2147483648, %v174_v50  ;;  %v184_v56 = vand.u32 2147483647, %v174_v50 }
  0xb7   :  { %v220_v42 = vadd.f32 1.0, %v768_v61  ;;  %vm180_vm4 = vweird.f32 %v174_v50 }
  0xb8   :  { %771 = vrcp.f32 %v196_v43  ;;  %v208_v51 = vand.u32 2147483648, %v196_v43  ;;  %v206_v49 = vand.u32 2147483647, %v196_v43  ;;  %v187_v38 = vor.u32 1.1754944e-38, %v186_v52 }
  0xb9   :  { %773 = vrcp.f32 %v220_v42  ;;  %vm185_vm7 = vcmp.eq.f32.partialorder %v184_v56, 8.507059e+37  ;;  %vm202_vm8 = vweird.f32 %v196_v43  ;;  %vm226_vm12 = vweird.f32 %v220_v42 }
  0xba   :  { %775 = vtanh.f32 %v212_v60  ;;  %v209_v44 = vor.u32 1.1754944e-38, %v208_v51  ;;  %vm207_vm10 = vcmp.eq.f32.partialorder %v206_v49, 8.507059e+37 }
  0xbc   :  { %v770_v47 = vpop.eup %769 }
  0xbd   :  { %v176_v54 = vmul.f32 %v770_v47, %v174_v50  ;;  %vm181_vm3 = vweird.f32 %v770_v47 }
  0xbe   :  { %v772_v58 = vpop.eup %771  ;;  %vm182_vm5 = vmor %vm180_vm4, %vm181_vm3 }
  0xbf   :  { %v177_v59 = vsub.f32 1.0, %v176_v54  ;;  %v774_v63 = vpop.eup %773  ;;  %v198_v62 = vmul.f32 %v772_v58, %v196_v43  ;;  %vm203_vm6 = vweird.f32 %v772_v58  ;;  %v230_v43 = vand.u32 2147483647, %v220_v42 }
  0xc0   :  { %v222_v53 = vmul.f32 %v774_v63, %v220_v42  ;;  %vm204_vm9 = vmor %vm202_vm8, %vm203_vm6  ;;  %vm227_vm11 = vweird.f32 %v774_v63 }
  0xc1   :  { %v178_v46 = vmul.f32 %v770_v47, %v177_v59  ;;  %v199_v57 = vsub.f32 1.0, %v198_v62  ;;  %v776_v62 = vpop.eup %775  ;;  %vm228_vm13 = vmor %vm226_vm12, %vm227_vm11  ;;  %vm231_vm14 = vcmp.eq.f32.partialorder %v230_v43, 8.507059e+37 }
  0xc2   :  { %v223_v54 = vsub.f32 1.0, %v222_v53 }
  0xc3   :  { %v179_v48 = vadd.f32 %v770_v47, %v178_v46  ;;  %v200_v61 = vmul.f32 %v772_v58, %v199_v57 }
  0xc4   :  { %v224_v50 = vmul.f32 %v774_v63, %v223_v54 }
  0xc5   :  { %v183_v39 = vsel %vm182_vm5, %v770_v47, %v179_v48  ;;  %v201_v55 = vadd.f32 %v772_v58, %v200_v61  ;;  %v232_v48 = vand.u32 2147483648, %v220_v42 }
  0xc6   :  { %v188_v59 = vsel %vm185_vm7, %v187_v38, %v183_v39  ;;  %v225_v57 = vadd.f32 %v774_v63, %v224_v50 }
  0xc7   :  { %v205_v45 = vsel %vm204_vm9, %v772_v58, %v201_v55  ;;  %v237_v60 = vmul.f32 %v776_v62, %v188_v59  ;;  %v233_v39 = vor.u32 1.1754944e-38, %v232_v48 }
  0xc8   :  { %v210_v46 = vsel %vm207_vm10, %v209_v44, %v205_v45  ;;  %v229_v38 = vsel %vm228_vm13, %v774_v63, %v225_v57 }
  0xc9   :  { %v236_v35 = vmul.f32 0.0, %v210_v46  ;;  %v234_v49 = vsel %vm231_vm14, %v233_v39, %v229_v38 }
  0xcb   :  { %v1361_v34 = vadd.f32 %v237_v60, %v236_v35 }
  0xcd   :  { %777 = vtanh.f32 %v1361_v34 }
  0xd3   :  { %v778_v47 = vpop.eup %777 }
  0xd4   :  { %v240_v58 = vmul.f32 %v778_v47, %v234_v49 }
  0xd6   :  { %241 = vst [vmem:[%s1469_s2] sm:$0x3] %v240_v58  ;;  %260 = vmatmul.f32.vlgmr.msrb.gmra.mxu0 %v240_v58  ;;  %280 = vmatmul.f32.vlgmr.msrb.gmra.mxu1 %v240_v58 }
  0xd7   :  { %300 = vmatmul.f32.vlgmr.msrb.gmra.mxu2 %v240_v58  ;;  %320 = vmatmul.f32.vlgmr.msrb.gmra.mxu3 %v240_v58 }
  0xd8   :  { %576 = vmatpush.msrb.mxu0 %v885_v7  ;;  %596 = vmatpush.msrb.mxu1 %v878_v6  ;;  %v1531_v6 = vld [vmem:[#allocation13_spill] sm:$0xff]  ;;  %v1532_v7 = vld [vmem:[#allocation12_spill] sm:$0xff] }
  0xd9   :  { %616 = vmatpush.msrb.mxu2 %v846_v0  ;;  %636 = vmatpush.msrb.mxu3 %v851_v1  ;;  %v1525_v0 = vld [vmem:[#allocation2_spill] sm:$0xff]  ;;  %v1526_v1 = vld [vmem:[#allocation3_spill] sm:$0xff] }
  0xda   :  { %577 = vmatpush.msrb.mxu0 %v907_v11  ;;  %597 = vmatpush.msrb.mxu1 %v890_v8  ;;  %v1533_v8 = vld [vmem:[#allocation6_spill] sm:$0xff]  ;;  %v1536_v11 = vld [vmem:[#allocation16_spill] sm:$0xff] }
  0xdb   :  { %617 = vmatpush.msrb.mxu2 %v856_v2  ;;  %637 = vmatpush.msrb.mxu3 %v863_v3  ;;  %v1527_v2 = vld [vmem:[#allocation9_spill] sm:$0xff]  ;;  %v1528_v3 = vld [vmem:[#allocation8_spill] sm:$0xff] }
  0xdc   :  { %578 = vmatpush.msrb.mxu0 %v919_v13  ;;  %598 = vmatpush.msrb.mxu1 %v914_v12  ;;  %v1537_v12 = vld [vmem:[#allocation10_spill] sm:$0xff]  ;;  %v1538_v13 = vld [vmem:[#allocation11_spill] sm:$0xff] }
  0xdd   :  { %618 = vmatpush.msrb.mxu2 %v868_v4  ;;  %638 = vmatpush.msrb.mxu3 %v873_v5  ;;  %v1529_v4 = vld [vmem:[#allocation4_spill] sm:$0xff]  ;;  %v1530_v5 = vld [vmem:[#allocation5_spill] sm:$0xff] }
  0xde   :  { %579 = vmatpush.msrb.mxu0 %v943_v17  ;;  %599 = vmatpush.msrb.mxu1 %v938_v16  ;;  %v1541_v16 = vld [vmem:[#allocation14_spill] sm:$0xff]  ;;  %v1542_v17 = vld [vmem:[#allocation15_spill] sm:$0xff] }
  0xdf   :  { %619 = vmatpush.msrb.mxu2 %v896_v9  ;;  %639 = vmatpush.msrb.mxu3 %v901_v10  ;;  %v1534_v9 = vld [vmem:[#allocation7_spill] sm:$0xff]  ;;  %v1535_v10 = vld [vmem:[#allocation17_spill] sm:$0xff] }
  0xe0   :  { %580 = vmatpush.msrb.mxu0 %v967_v21  ;;  %600 = vmatpush.msrb.mxu1 %v962_v20  ;;  %v1545_v20 = vld [vmem:[#allocation18_spill] sm:$0xff]  ;;  %v1546_v21 = vld [vmem:[#allocation19_spill] sm:$0xff] }
  0xe1   :  { %620 = vmatpush.msrb.mxu2 %v925_v14  ;;  %640 = vmatpush.msrb.mxu3 %v930_v15  ;;  %v1539_v14 = vld [vmem:[#allocation21_spill] sm:$0xff]  ;;  %v1540_v15 = vld [vmem:[#allocation20_spill] sm:$0xff] }
  0xe2   :  { %581 = vmatpush.msrb.mxu0 %v991_v25  ;;  %601 = vmatpush.msrb.mxu1 %v986_v24  ;;  %v1549_v24 = vld [vmem:[#allocation22_spill] sm:$0xff]  ;;  %v1550_v25 = vld [vmem:[#allocation23_spill] sm:$0xff] }
  0xe3   :  { %621 = vmatpush.msrb.mxu2 %v949_v18  ;;  %641 = vmatpush.msrb.mxu3 %v954_v19  ;;  %v1543_v18 = vld [vmem:[#allocation25_spill] sm:$0xff]  ;;  %v1544_v19 = vld [vmem:[#allocation24_spill] sm:$0xff] }
  0xe4   :  { %582 = vmatpush.msrb.mxu0 %v1015_v29  ;;  %602 = vmatpush.msrb.mxu1 %v1010_v28 }
  0xe5   :  { %622 = vmatpush.msrb.mxu2 %v973_v22  ;;  %642 = vmatpush.msrb.mxu3 %v978_v23  ;;  %v1547_v22 = vld [vmem:[#allocation27_spill] sm:$0xff]  ;;  %v1548_v23 = vld [vmem:[#allocation26_spill] sm:$0xff] }
  0xe6   :  { %583 = vmatpush.msrb.mxu0 %v1039_v33  ;;  %603 = vmatpush.msrb.mxu1 %v1034_v32  ;;  %v747_v33 = vld [vmem:[%s1468_s0 + $0x8] sm:$0xff] }
  0xe7   :  { %623 = vmatpush.msrb.mxu2 %v997_v26  ;;  %643 = vmatpush.msrb.mxu3 %v1002_v27 }
  0xe8   :  { %584 = vmatpush.msrb.mxu0 %v1063_v37  ;;  %604 = vmatpush.msrb.mxu1 %v1058_v36 }
  0xe9   :  { %624 = vmatpush.msrb.mxu2 %v1021_v30  ;;  %644 = vmatpush.msrb.mxu3 %v1026_v31 }
  0xea   :  { %585 = vmatpush.msrb.mxu0 %v1087_v41  ;;  %605 = vmatpush.msrb.mxu1 %v1082_v40 }
  0xeb   :  { %625 = vmatpush.msrb.mxu2 %v1525_v0  ;;  %645 = vmatpush.msrb.mxu3 %v1526_v1 }
  0xec   :  { %586 = vmatpush.msrb.mxu0 %v1527_v2  ;;  %606 = vmatpush.msrb.mxu1 %v1528_v3 }
  0xed   :  { %626 = vmatpush.msrb.mxu2 %v1529_v4  ;;  %646 = vmatpush.msrb.mxu3 %v1530_v5 }
  0xee   :  { %587 = vmatpush.msrb.mxu0 %v1531_v6  ;;  %607 = vmatpush.msrb.mxu1 %v1532_v7 }
  0xef   :  { %627 = vmatpush.msrb.mxu2 %v1533_v8  ;;  %647 = vmatpush.msrb.mxu3 %v1534_v9 }
  0xf0   :  { %588 = vmatpush.msrb.mxu0 %v1535_v10  ;;  %608 = vmatpush.msrb.mxu1 %v1536_v11 }
  0xf1   :  { %628 = vmatpush.msrb.mxu2 %v1537_v12  ;;  %648 = vmatpush.msrb.mxu3 %v1538_v13 }
  0xf2   :  { %589 = vmatpush.msrb.mxu0 %v1539_v14  ;;  %609 = vmatpush.msrb.mxu1 %v1540_v15 }
  0xf3   :  { %629 = vmatpush.msrb.mxu2 %v1541_v16  ;;  %649 = vmatpush.msrb.mxu3 %v1542_v17 }
  0xf4   :  { %590 = vmatpush.msrb.mxu0 %v1543_v18  ;;  %610 = vmatpush.msrb.mxu1 %v1544_v19 }
  0xf5   :  { %630 = vmatpush.msrb.mxu2 %v1545_v20  ;;  %650 = vmatpush.msrb.mxu3 %v1546_v21 }
  0xf6   :  { %591 = vmatpush.msrb.mxu0 %v1547_v22  ;;  %611 = vmatpush.msrb.mxu1 %v1548_v23 }
  0xf7   :  { %631 = vmatpush.msrb.mxu2 %v1549_v24  ;;  %651 = vmatpush.msrb.mxu3 %v1550_v25 }
 0x153   :  { %v281_v26 = vpop.f32.mrf.mxu1  ;;  %v261_v32 = vpop.f32.mrf.mxu0 }
 0x154   :  { %v328_v27 = vrot.slane %v281_v26, 6 }
 0x156   :  { %v331_v35 = vsel %vm163_vm0, %v261_v32, %v328_v27 }
 0x15a   :  { %v301_v28 = vpop.f32.mrf.mxu2  ;;  %v321_v29 = vpop.f32.mrf.mxu3 }
 0x15b   :  { %v329_v30 = vrot.slane %v301_v28, 4  ;;  %v330_v31 = vrot.slane %v321_v29, 2  ;;  %v752_v29 = vld [vmem:[%s1468_s0 + $0x10] sm:$0xff] }
 0x15d   :  { %v332_v36 = vsel %vm165_vm1, %v329_v30, %v330_v31 }
 0x15e   :  { %v333_v37 = vsel %vm167_vm2, %v331_v35, %v332_v36 }
 0x15f   :  { %v335_v40 = vadd.f32 %v747_v33, %v333_v37 }
 0x161   :  { %v748_v41 = vmul.f32 -1.442695, %v335_v40  ;;  %v356_v42 = vrot.slane %v335_v40, 2  ;;  %v380_v44 = vrot.slane %v335_v40, 6  ;;  %v377_v46 = vrot.slane %v335_v40, 4 }
 0x163   :  { %779 = vpow2.f32 %v748_v41  ;;  %v749_v45 = vmul.f32 -1.442695, %v356_v42  ;;  %v750_v63 = vmul.f32 -1.442695, %v380_v44 }
 0x165   :  { %781 = vpow2.f32 %v749_v45 }
 0x166   :  { %783 = vpow2.f32 %v750_v63 }
 0x169   :  { %v780_v52 = vpop.eup %779 }
 0x16a   :  { %v339_v53 = vadd.f32 1.0, %v780_v52 }
 0x16b   :  { %v782_v56 = vpop.eup %781 }
 0x16c   :  { %v784_v51 = vpop.eup %783  ;;  %785 = vrcp.f32 %v339_v53  ;;  %v361_v61 = vadd.f32 1.0, %v782_v56  ;;  %v351_v48 = vand.u32 2147483648, %v339_v53  ;;  %v349_v47 = vand.u32 2147483647, %v339_v53 }
 0x16d   :  { %v385_v54 = vadd.f32 1.0, %v784_v51  ;;  %vm345_vm3 = vweird.f32 %v339_v53 }
 0x16e   :  { %787 = vrcp.f32 %v361_v61  ;;  %v373_v49 = vand.u32 2147483648, %v361_v61  ;;  %v371_v1 = vand.u32 2147483647, %v361_v61  ;;  %v352_v2 = vor.u32 1.1754944e-38, %v351_v48 }
 0x16f   :  { %789 = vrcp.f32 %v385_v54  ;;  %vm350_vm6 = vcmp.eq.f32.partialorder %v349_v47, 8.507059e+37  ;;  %vm367_vm7 = vweird.f32 %v361_v61  ;;  %v397_v16 = vand.u32 2147483648, %v385_v54 }
 0x170   :  { %791 = vtanh.f32 %v377_v46  ;;  %v374_v7 = vor.u32 1.1754944e-38, %v373_v49  ;;  %vm372_vm9 = vcmp.eq.f32.partialorder %v371_v1, 8.507059e+37  ;;  %vm391_vm11 = vweird.f32 %v385_v54 }
 0x171   :  { %v395_v17 = vand.u32 2147483647, %v385_v54  ;;  %v398_v19 = vor.u32 1.1754944e-38, %v397_v16 }
 0x172   :  { %v786_v55 = vpop.eup %785 }
 0x173   :  { %v341_v59 = vmul.f32 %v786_v55, %v339_v53  ;;  %vm346_vm15 = vweird.f32 %v786_v55  ;;  %vm396_vm13 = vcmp.eq.f32.partialorder %v395_v17, 8.507059e+37 }
 0x174   :  { %v788_v62 = vpop.eup %787  ;;  %vm347_vm5 = vmor %vm345_vm3, %vm346_vm15 }
 0x175   :  { %v790_v50 = vpop.eup %789  ;;  %v342_v60 = vsub.f32 1.0, %v341_v59  ;;  %v363_v57 = vmul.f32 %v788_v62, %v361_v61  ;;  %vm368_vm4 = vweird.f32 %v788_v62 }
 0x176   :  { %v387_v43 = vmul.f32 %v790_v50, %v385_v54  ;;  %vm369_vm8 = vmor %vm367_vm7, %vm368_vm4  ;;  %v792_v9 = vpop.eup %791  ;;  %vm392_vm10 = vweird.f32 %v790_v50 }
 0x177   :  { %v364_v38 = vsub.f32 1.0, %v363_v57  ;;  %v343_v39 = vmul.f32 %v786_v55, %v342_v60  ;;  %vm393_vm12 = vmor %vm391_vm11, %vm392_vm10 }
 0x178   :  { %v388_v3 = vsub.f32 1.0, %v387_v43 }
 0x179   :  { %v344_v58 = vadd.f32 %v786_v55, %v343_v39  ;;  %v365_v0 = vmul.f32 %v788_v62, %v364_v38 }
 0x17a   :  { %v389_v11 = vmul.f32 %v790_v50, %v388_v3 }
 0x17b   :  { %v348_v4 = vsel %vm347_vm5, %v786_v55, %v344_v58  ;;  %v366_v5 = vadd.f32 %v788_v62, %v365_v0 }
 0x17c   :  { %v353_v6 = vsel %vm350_vm6, %v352_v2, %v348_v4  ;;  %v390_v15 = vadd.f32 %v790_v50, %v389_v11 }
 0x17d   :  { %v370_v8 = vsel %vm369_vm8, %v788_v62, %v366_v5  ;;  %v402_v13 = vmul.f32 %v792_v9, %v353_v6 }
 0x17e   :  { %v375_v10 = vsel %vm372_vm9, %v374_v7, %v370_v8  ;;  %v394_v18 = vsel %vm393_vm12, %v790_v50, %v390_v15 }
 0x17f   :  { %v401_v12 = vmul.f32 %v375_v10, %v1361_v34  ;;  %v399_v21 = vsel %vm396_vm13, %v398_v19, %v394_v18 }
 0x181   :  { %v1438_v14 = vadd.f32 %v402_v13, %v401_v12 }
 0x183   :  { %793 = vtanh.f32 %v1438_v14 }
 0x189   :  { %v794_v20 = vpop.eup %793 }
 0x18a   :  { %v405_v22 = vmul.f32 %v794_v20, %v399_v21 }
 0x18c   :  { %751 = vst [vmem:[%s1469_s2 + $0x2] sm:$0x3] %v405_v22  ;;  %426 = vmatmul.f32.vlgmr.msra.gmra.mxu0 %v405_v22  ;;  %446 = vmatmul.f32.vlgmr.msra.gmra.mxu1 %v405_v22 }
 0x18d   :  { %466 = vmatmul.f32.vlgmr.msra.gmra.mxu2 %v405_v22  ;;  %486 = vmatmul.f32.vlgmr.msra.gmra.mxu3 %v405_v22 }
 0x209   :  { %v447_v34 = vpop.f32.mrf.mxu1  ;;  %v427_v28 = vpop.f32.mrf.mxu0 }
 0x20a   :  { %v494_v23 = vrot.slane %v447_v34, 6 }
 0x20c   :  { %v497_v30 = vsel %vm163_vm0, %v427_v28, %v494_v23 }
 0x210   :  { %v467_v24 = vpop.f32.mrf.mxu2  ;;  %v487_v25 = vpop.f32.mrf.mxu3 }
 0x211   :  { %v495_v26 = vrot.slane %v467_v24, 4  ;;  %v496_v27 = vrot.slane %v487_v25, 2  ;;  %v757_v25 = vld [vmem:[%s1468_s0 + $0x18] sm:$0xff] }
 0x213   :  { %v498_v31 = vsel %vm165_vm1, %v495_v26, %v496_v27 }
 0x214   :  { %v499_v32 = vsel %vm167_vm2, %v497_v30, %v498_v31 }
 0x215   :  { %v501_v33 = vadd.f32 %v752_v29, %v499_v32 }
 0x217   :  { %v753_v35 = vmul.f32 -1.442695, %v501_v33  ;;  %v522_v36 = vrot.slane %v501_v33, 2  ;;  %v546_v37 = vrot.slane %v501_v33, 6  ;;  %v543_v54 = vrot.slane %v501_v33, 4 }
 0x219   :  { %795 = vpow2.f32 %v753_v35  ;;  %v754_v40 = vmul.f32 -1.442695, %v522_v36  ;;  %v755_v41 = vmul.f32 -1.442695, %v546_v37 }
 0x21b   :  { %797 = vpow2.f32 %v754_v40 }
 0x21c   :  { %799 = vpow2.f32 %v755_v41 }
 0x21f   :  { %v796_v42 = vpop.eup %795 }
 0x220   :  { %v505_v44 = vadd.f32 1.0, %v796_v42 }
 0x221   :  { %v798_v45 = vpop.eup %797 }
 0x222   :  { %v800_v63 = vpop.eup %799  ;;  %801 = vrcp.f32 %v505_v44  ;;  %v527_v52 = vadd.f32 1.0, %v798_v45  ;;  %v517_v46 = vand.u32 2147483648, %v505_v44  ;;  %v515_v48 = vand.u32 2147483647, %v505_v44 }
 0x223   :  { %v551_v53 = vadd.f32 1.0, %v800_v63  ;;  %vm511_vm15 = vweird.f32 %v505_v44 }
 0x224   :  { %803 = vrcp.f32 %v527_v52  ;;  %v539_v43 = vand.u32 2147483648, %v527_v52  ;;  %v537_v47 = vand.u32 2147483647, %v527_v52  ;;  %v518_v49 = vor.u32 1.1754944e-38, %v517_v46 }
 0x225   :  { %805 = vrcp.f32 %v551_v53  ;;  %vm516_vm5 = vcmp.eq.f32.partialorder %v515_v48, 8.507059e+37  ;;  %vm533_vm6 = vweird.f32 %v527_v52  ;;  %v563_v12 = vand.u32 2147483648, %v551_v53 }
 0x226   :  { %807 = vtanh.f32 %v543_v54  ;;  %v540_v3 = vor.u32 1.1754944e-38, %v539_v43  ;;  %vm538_vm8 = vcmp.eq.f32.partialorder %v537_v47, 8.507059e+37  ;;  %vm557_vm10 = vweird.f32 %v551_v53 }
 0x227   :  { %v561_v13 = vand.u32 2147483647, %v551_v53  ;;  %v564_v16 = vor.u32 1.1754944e-38, %v563_v12 }
 0x228   :  { %v802_v56 = vpop.eup %801 }
 0x229   :  { %v507_v51 = vmul.f32 %v802_v56, %v505_v44  ;;  %vm512_vm14 = vweird.f32 %v802_v56  ;;  %vm562_vm12 = vcmp.eq.f32.partialorder %v561_v13, 8.507059e+37 }
 0x22a   :  { %v804_v61 = vpop.eup %803  ;;  %vm513_vm4 = vmor %vm511_vm15, %vm512_vm14 }
 0x22b   :  { %v806_v55 = vpop.eup %805  ;;  %v508_v59 = vsub.f32 1.0, %v507_v51  ;;  %v529_v62 = vmul.f32 %v804_v61, %v527_v52  ;;  %vm534_vm3 = vweird.f32 %v804_v61 }
 0x22c   :  { %v553_v50 = vmul.f32 %v806_v55, %v551_v53  ;;  %vm535_vm7 = vmor %vm533_vm6, %vm534_vm3  ;;  %v808_v5 = vpop.eup %807  ;;  %vm558_vm9 = vweird.f32 %v806_v55 }
 0x22d   :  { %v530_v60 = vsub.f32 1.0, %v529_v62  ;;  %v509_v57 = vmul.f32 %v802_v56, %v508_v59  ;;  %vm559_vm11 = vmor %vm557_vm10, %vm558_vm9 }
 0x22e   :  { %v554_v58 = vsub.f32 1.0, %v553_v50 }
 0x22f   :  { %v510_v38 = vadd.f32 %v802_v56, %v509_v57  ;;  %v531_v39 = vmul.f32 %v804_v61, %v530_v60 }
 0x230   :  { %v555_v7 = vmul.f32 %v806_v55, %v554_v58 }
 0x231   :  { %v514_v0 = vsel %vm513_vm4, %v802_v56, %v510_v38  ;;  %v532_v1 = vadd.f32 %v804_v61, %v531_v39 }
 0x232   :  { %v519_v2 = vsel %vm516_vm5, %v518_v49, %v514_v0  ;;  %v556_v11 = vadd.f32 %v806_v55, %v555_v7 }
 0x233   :  { %v536_v4 = vsel %vm535_vm7, %v804_v61, %v532_v1  ;;  %v568_v9 = vmul.f32 %v808_v5, %v519_v2 }
 0x234   :  { %v541_v6 = vsel %vm538_vm8, %v540_v3, %v536_v4  ;;  %v560_v15 = vsel %vm559_vm11, %v806_v55, %v556_v11 }
 0x235   :  { %v567_v8 = vmul.f32 %v541_v6, %v1438_v14  ;;  %v565_v18 = vsel %vm562_vm12, %v564_v16, %v560_v15 }
 0x237   :  { %v1451_v10 = vadd.f32 %v568_v9, %v567_v8 }
 0x239   :  { %809 = vtanh.f32 %v1451_v10 }
 0x23f   :  { %v810_v17 = vpop.eup %809 }
 0x240   :  { %v571_v19 = vmul.f32 %v810_v17, %v565_v18 }
 0x242   :  { %756 = vst [vmem:[%s1469_s2 + $0x4] sm:$0x3] %v571_v19  ;;  %592 = vmatmul.f32.vlgmr.msrb.gmra.mxu0 %v571_v19  ;;  %612 = vmatmul.f32.vlgmr.msrb.gmra.mxu1 %v571_v19 }
 0x243   :  { %632 = vmatmul.f32.vlgmr.msrb.gmra.mxu2 %v571_v19  ;;  %652 = vmatmul.f32.vlgmr.msrb.gmra.mxu3 %v571_v19 }
 0x2bf   :  { %v613_v14 = vpop.f32.mrf.mxu1  ;;  %v593_v24 = vpop.f32.mrf.mxu0 }
 0x2c0   :  { %v660_v20 = vrot.slane %v613_v14, 6 }
 0x2c2   :  { %v663_v26 = vsel %vm163_vm0, %v593_v24, %v660_v20 }
 0x2c6   :  { %v633_v21 = vpop.f32.mrf.mxu2  ;;  %v653_v22 = vpop.f32.mrf.mxu3 }
 0x2c7   :  { %v661_v34 = vrot.slane %v633_v21, 4  ;;  %v662_v23 = vrot.slane %v653_v22, 2 }
 0x2c9   :  { %v664_v27 = vsel %vm165_vm1, %v661_v34, %v662_v23 }
 0x2ca   :  { %v665_v28 = vsel %vm167_vm2, %v663_v26, %v664_v27 }
 0x2cb   :  { %v667_v29 = vadd.f32 %v757_v25, %v665_v28 }
 0x2cd   :  { %v758_v30 = vmul.f32 -1.442695, %v667_v29  ;;  %v688_v31 = vrot.slane %v667_v29, 2  ;;  %v712_v32 = vrot.slane %v667_v29, 6  ;;  %v709_v56 = vrot.slane %v667_v29, 4 }
 0x2cf   :  { %811 = vpow2.f32 %v758_v30  ;;  %v759_v33 = vmul.f32 -1.442695, %v688_v31  ;;  %v760_v35 = vmul.f32 -1.442695, %v712_v32 }
 0x2d1   :  { %813 = vpow2.f32 %v759_v33 }
 0x2d2   :  { %815 = vpow2.f32 %v760_v35 }
 0x2d5   :  { %v812_v36 = vpop.eup %811 }
 0x2d6   :  { %v671_v37 = vadd.f32 1.0, %v812_v36 }
 0x2d7   :  { %v814_v40 = vpop.eup %813 }
 0x2d8   :  { %v816_v41 = vpop.eup %815  ;;  %817 = vrcp.f32 %v671_v37  ;;  %v693_v42 = vadd.f32 1.0, %v814_v40  ;;  %v683_v55 = vand.u32 2147483648, %v671_v37  ;;  %v681_v62 = vand.u32 2147483647, %v671_v37 }
 0x2d9   :  { %v717_v44 = vadd.f32 1.0, %v816_v41  ;;  %vm677_vm1 = vweird.f32 %v671_v37 }
 0x2da   :  { %819 = vrcp.f32 %v693_v42  ;;  %v705_v60 = vand.u32 2147483648, %v693_v42  ;;  %v703_v48 = vand.u32 2147483647, %v693_v42  ;;  %v684_v38 = vor.u32 1.1754944e-38, %v683_v55 }
 0x2db   :  { %821 = vrcp.f32 %v717_v44  ;;  %vm682_vm14 = vcmp.eq.f32.partialorder %v681_v62, 8.507059e+37  ;;  %vm699_vm15 = vweird.f32 %v693_v42  ;;  %v729_v8 = vand.u32 2147483648, %v717_v44 }
 0x2dc   :  { %823 = vtanh.f32 %v709_v56  ;;  %v706_v58 = vor.u32 1.1754944e-38, %v705_v60  ;;  %vm704_vm4 = vcmp.eq.f32.partialorder %v703_v48, 8.507059e+37  ;;  %vm723_vm6 = vweird.f32 %v717_v44 }
 0x2dd   :  { %v727_v9 = vand.u32 2147483647, %v717_v44  ;;  %v730_v12 = vor.u32 1.1754944e-38, %v729_v8 }
 0x2de   :  { %v818_v45 = vpop.eup %817 }
 0x2df   :  { %v673_v63 = vmul.f32 %v818_v45, %v671_v37  ;;  %vm678_vm0 = vweird.f32 %v818_v45  ;;  %vm728_vm8 = vcmp.eq.f32.partialorder %v727_v9, 8.507059e+37 }
 0x2e0   :  { %v820_v52 = vpop.eup %819  ;;  %vm679_vm2 = vmor %vm677_vm1, %vm678_vm0 }
 0x2e1   :  { %v674_v53 = vsub.f32 1.0, %v673_v63  ;;  %v822_v51 = vpop.eup %821  ;;  %v695_v61 = vmul.f32 %v820_v52, %v693_v42  ;;  %vm700_vm13 = vweird.f32 %v820_v52 }
 0x2e2   :  { %v719_v59 = vmul.f32 %v822_v51, %v717_v44  ;;  %vm701_vm3 = vmor %vm699_vm15, %vm700_vm13  ;;  %v824_v1 = vpop.eup %823  ;;  %vm724_vm5 = vweird.f32 %v822_v51 }
 0x2e3   :  { %v675_v54 = vmul.f32 %v818_v45, %v674_v53  ;;  %v696_v46 = vsub.f32 1.0, %v695_v61  ;;  %vm725_vm7 = vmor %vm723_vm6, %vm724_vm5 }
 0x2e4   :  { %v720_v39 = vsub.f32 1.0, %v719_v59 }
 0x2e5   :  { %v676_v50 = vadd.f32 %v818_v45, %v675_v54  ;;  %v697_v57 = vmul.f32 %v820_v52, %v696_v46 }
 0x2e6   :  { %v721_v3 = vmul.f32 %v822_v51, %v720_v39 }
 0x2e7   :  { %v680_v43 = vsel %vm679_vm2, %v818_v45, %v676_v50  ;;  %v698_v47 = vadd.f32 %v820_v52, %v697_v57 }
 0x2e8   :  { %v685_v49 = vsel %vm682_vm14, %v684_v38, %v680_v43  ;;  %v722_v7 = vadd.f32 %v822_v51, %v721_v3 }
 0x2e9   :  { %v702_v0 = vsel %vm701_vm3, %v820_v52, %v698_v47  ;;  %v734_v5 = vmul.f32 %v824_v1, %v685_v49 }
 0x2ea   :  { %v707_v2 = vsel %vm704_vm4, %v706_v58, %v702_v0  ;;  %v726_v11 = vsel %vm725_vm7, %v822_v51, %v722_v7 }
 0x2eb   :  { %v733_v4 = vmul.f32 %v707_v2, %v1451_v10  ;;  %v731_v15 = vsel %vm728_vm8, %v730_v12, %v726_v11 }
 0x2ed   :  { %v735_v6 = vadd.f32 %v734_v5, %v733_v4 }
 0x2ef   :  { %825 = vtanh.f32 %v735_v6 }
 0x2f5   :  { %v826_v13 = vpop.eup %825 }
 0x2f6   :  { %v737_v16 = vmul.f32 %v826_v13, %v731_v15 }
 0x2f8   :  { %761 = vst [vmem:[%s1469_s2 + $0x6] sm:$0x3] %v737_v16 }

</bundles_post_ra>
